<compile_context>
chip_gen: v6e
topology: v6e:2x2x1
jax: 0.10.0
libtpu: 0.0.40
codegen_flags: <defaults>
</compile_context>

<pallas_src>
import numpy as np
import jax
import jax.numpy as jnp
from jax.experimental import pallas as pl
from jax.experimental.pallas import tpu as pltpu  # noqa: F401  (kept for users adding compiler params)

T_EMB_DIM = 64
HIDDEN = 512
BN_EPS = 1e-5
N_DENOISERS = 3


def _round_up(x, m):
    return (x + m - 1) // m * m


# ----------------------------------------------------------------------------
# Fused Pallas kernel: ONE grid step runs all three denoisers' full MLPs.
#   Linear(no bias) -> BatchNorm1d(train, fused scale/shift) -> ReLU
#   -> Linear -> ReLU -> Linear -> Sigmoid
# ----------------------------------------------------------------------------
def _make_fused_kernel(out_pad):
    def kernel(x_ref, w1_ref, vec_ref, w2_ref, w3_ref, o_ref):
        batch = x_ref.shape[1]
        inv_b = jnp.float32(1.0 / batch)

        # Unrolled over the 3 denoisers (static indices -> plain VMEM views).
        for i in range(N_DENOISERS):
            x = x_ref[i]                      # (B, IN_PAD) bf16 (pre-cast outside)
            vec_i = vec_ref[i]                # (4, 512) f32: gamma, beta, b2, b3

            # Linear 1 (no bias; b1 cancelled by train-mode BN mean subtraction)
            h = jnp.dot(x, w1_ref[i], preferred_element_type=jnp.float32)  # (B,512) f32

            # BatchNorm1d (training mode) — single sweep for sum & sum-of-squares.
            s1 = jnp.sum(h, axis=0, keepdims=True)
            s2 = jnp.sum(h * h, axis=0, keepdims=True)
            mean = s1 * inv_b
            var = s2 * inv_b - mean * mean          # biased batch variance
            scale = vec_i[0:1, :] * jax.lax.rsqrt(var + BN_EPS)   # gamma * inv_std
            h = (h - mean) * scale + vec_i[1:2, :]                 # + beta
            h = jnp.maximum(h, 0.0)

            # Linear 2 + ReLU
            h = jnp.dot(h.astype(jnp.bfloat16), w2_ref[i],
                        preferred_element_type=jnp.float32) + vec_i[2:3, :]
            h = jnp.maximum(h, 0.0)

            # Linear 3 + Sigmoid (padded output columns sliced off outside)
            h = jnp.dot(h.astype(jnp.bfloat16), w3_ref[i],
                        preferred_element_type=jnp.float32) + vec_i[3:4, :out_pad]
            o_ref[i] = jax.nn.sigmoid(h)

    return kernel


def run_fused_denoisers(x, w1, vec, w2, w3):
    """x: (3, B, IN_PAD) bf16; w1: (3, IN_PAD, 512) bf16; vec: (3, 4, 512) f32;
    w2: (3, 512, 512) bf16; w3: (3, 512, OUT_PAD) bf16."""
    n, batch, in_pad = x.shape
    out_pad = w3.shape[2]
    return pl.pallas_call(
        _make_fused_kernel(out_pad),
        out_shape=jax.ShapeDtypeStruct((n, batch, out_pad), jnp.float32),
        grid=(1,),
        in_specs=[
            pl.BlockSpec((n, batch, in_pad), lambda i: (0, 0, 0)),
            pl.BlockSpec((n, in_pad, HIDDEN), lambda i: (0, 0, 0)),
            pl.BlockSpec((n, 4, HIDDEN), lambda i: (0, 0, 0)),
            pl.BlockSpec((n, HIDDEN, HIDDEN), lambda i: (0, 0, 0)),
            pl.BlockSpec((n, HIDDEN, out_pad), lambda i: (0, 0, 0)),
        ],
        out_specs=pl.BlockSpec((n, batch, out_pad), lambda i: (0, 0, 0)),
    )(x, w1, vec, w2, w3)


# ----------------------------------------------------------------------------
# Glue (plain JAX, jit-compiled)
# ----------------------------------------------------------------------------
def get_timestep_embedding(t, embedding_dim=T_EMB_DIM):
    half_dim = embedding_dim // 2
    emb = jnp.exp(
        jnp.arange(half_dim, dtype=jnp.float32) * (-np.log(10000.0) / (half_dim - 1))
    )
    emb = t.reshape(-1, 1).astype(jnp.float32) * emb[None, :]
    return jnp.concatenate([jnp.sin(emb), jnp.cos(emb)], axis=-1)  # (B, 64)


def init_denoiser_params(key, in_dim, out_dim):
    """PyTorch-shaped parameters with nn.Linear-style init."""
    ks = jax.random.split(key, 6)

    def lin(kw, kb, fan_in, fan_out):
        bound = 1.0 / np.sqrt(fan_in)
        w = jax.random.uniform(kw, (fan_out, fan_in), jnp.float32, -bound, bound)
        b = jax.random.uniform(kb, (fan_out,), jnp.float32, -bound, bound)
        return w, b

    w1, b1 = lin(ks[0], ks[1], in_dim, HIDDEN)
    w2, b2 = lin(ks[2], ks[3], HIDDEN, HIDDEN)
    w3, b3 = lin(ks[4], ks[5], HIDDEN, out_dim)
    return {
        "w1": w1, "b1": b1,   # b1 kept for fidelity; cancelled by train-mode BN
        "gamma": jnp.ones((HIDDEN,), jnp.float32),
        "beta": jnp.zeros((HIDDEN,), jnp.float32),
        "w2": w2, "b2": b2,
        "w3": w3, "b3": b3,
    }


def pack_fused_params(params_list, rank):
    """One-time packing: transpose, zero-pad to lane-dense shapes, stack over
    the 3 denoisers, cast weights to bf16."""
    in_pad = _round_up(51 * rank + T_EMB_DIM, 128)
    out_pad = _round_up(51 * rank, 128)
    assert out_pad <= HIDDEN, "b3 packing assumes out_pad <= HIDDEN"

    w1s, w2s, w3s, vecs = [], [], [], []
    for p in params_list:
        in_dim = p["w1"].shape[1]
        out_dim = p["w3"].shape[0]
        # NOTE: denoiser C's in_dim is smaller than the shared IN_PAD; the
        # extra zero K-columns are a ~6% one-time weight-byte cost (accepted).
        w1 = jnp.zeros((in_pad, HIDDEN), jnp.float32).at[:in_dim, :].set(p["w1"].T)
        w3 = jnp.zeros((HIDDEN, out_pad), jnp.float32).at[:, :out_dim].set(p["w3"].T)
        b3 = jnp.zeros((HIDDEN,), jnp.float32).at[:out_dim].set(p["b3"])
        vec = jnp.stack([p["gamma"], p["beta"], p["b2"], b3], axis=0)  # (4, 512)
        w1s.append(w1)
        w2s.append(p["w2"].T)
        w3s.append(w3)
        vecs.append(vec)

    return {
        "w1": jnp.stack(w1s).astype(jnp.bfloat16),   # (3, IN_PAD, 512)
        "w2": jnp.stack(w2s).astype(jnp.bfloat16),   # (3, 512, 512)
        "w3": jnp.stack(w3s).astype(jnp.bfloat16),   # (3, 512, OUT_PAD)
        "vec": jnp.stack(vecs).astype(jnp.float32),  # (3, 4, 512)
    }


def factor_diffusion_forward(fused, A, B, C, t):
    batch, _, rank = A.shape
    in_pad = fused["w1"].shape[1]

    t_embed = get_timestep_embedding(t.reshape(batch, 1), T_EMB_DIM)  # (B, 64)

    def prep(x):
        x = jnp.concatenate([x.reshape(batch, -1), t_embed], axis=1)
        return jnp.pad(x, ((0, 0), (0, in_pad - x.shape[1])))

    # NOTE: never zero-pad the batch axis — it would corrupt in-kernel BN stats.
    x = jnp.stack([prep(A), prep(B), prep(C)], axis=0).astype(jnp.bfloat16)  # (3,B,IN_PAD)

    out = run_fused_denoisers(x, fused["w1"], fused["vec"], fused["w2"], fused["w3"])

    A_out = out[0, :, :51 * rank].reshape(batch, 51, rank)
    B_out = out[1, :, :51 * rank].reshape(batch, 51, rank)
    C_out = out[2, :, :25 * rank].reshape(batch, 25, rank)
    return A_out, B_out, C_out


factor_diffusion_forward_jit = jax.jit(factor_diffusion_forward)


if __name__ == "__main__":
    rank = 4
    batch = 8

    root = jax.random.PRNGKey(0)
    k_pa, k_pb, k_pc, k_a, k_b, k_c, k_t = jax.random.split(root, 7)

    params_A = init_denoiser_params(k_pa, 51 * rank + T_EMB_DIM, 51 * rank)
    params_B = init_denoiser_params(k_pb, 51 * rank + T_EMB_DIM, 51 * rank)
    params_C = init_denoiser_params(k_pc, 25 * rank + T_EMB_DIM, 25 * rank)
    fused = pack_fused_params([params_A, params_B, params_C], rank)

    A = jax.random.normal(k_a, (batch, 51, rank), jnp.float32)
    B = jax.random.normal(k_b, (batch, 51, rank), jnp.float32)
    C = jax.random.normal(k_c, (batch, 25, rank), jnp.float32)
    t = jax.random.uniform(k_t, (batch,), jnp.float32, 0.0, 1000.0)

    A_out, B_out, C_out = factor_diffusion_forward_jit(fused, A, B, C, t)
    jax.block_until_ready((A_out, B_out, C_out))

    assert A_out.shape == (batch, 51, rank)
    assert B_out.shape == (batch, 51, rank)
    assert C_out.shape == (batch, 25, rank)
    assert bool(jnp.all((A_out >= 0) & (A_out <= 1)))
    assert bool(jnp.all((B_out >= 0) & (B_out <= 1)))
    assert bool(jnp.all((C_out >= 0) & (C_out <= 1)))
    assert bool(jnp.all(jnp.isfinite(A_out)))
    assert bool(jnp.all(jnp.isfinite(B_out)))
    assert bool(jnp.all(jnp.isfinite(C_out)))
    print("KERNEL_OK")
</pallas_src>

<mosaic_0001>
module attributes {stable_mosaic.version = 11 : i64} {
  func.func @kernel(%arg0: i32, %arg1: memref<3x8x384xbf16, #tpu.memory_space<vmem>>, %arg2: memref<3x384x512xbf16, #tpu.memory_space<vmem>>, %arg3: memref<3x4x512xf32, #tpu.memory_space<vmem>>, %arg4: memref<3x512x512xbf16, #tpu.memory_space<vmem>>, %arg5: memref<3x512x256xbf16, #tpu.memory_space<vmem>>, %arg6: memref<3x8x256xf32, #tpu.memory_space<vmem>>) attributes {dimension_semantics = [#tpu.dimension_semantics<arbitrary>], iteration_bounds = array<i64: 1>, scalar_prefetch = 0 : i64, scratch_operands = 0 : i64, tpu.core_type = #tpu.core_type<tc>, window_params = [{pipeline_mode = #tpu.pipeline_mode<synchronous>, transform_indices = @transform_0, window_bounds = array<i64: 3, 8, 384>}, {pipeline_mode = #tpu.pipeline_mode<synchronous>, transform_indices = @transform_1, window_bounds = array<i64: 3, 384, 512>}, {pipeline_mode = #tpu.pipeline_mode<synchronous>, transform_indices = @transform_2, window_bounds = array<i64: 3, 4, 512>}, {pipeline_mode = #tpu.pipeline_mode<synchronous>, transform_indices = @transform_3, window_bounds = array<i64: 3, 512, 512>}, {pipeline_mode = #tpu.pipeline_mode<synchronous>, transform_indices = @transform_4, window_bounds = array<i64: 3, 512, 256>}, {pipeline_mode = #tpu.pipeline_mode<synchronous>, transform_indices = @transform_5, window_bounds = array<i64: 3, 8, 256>}]} {
    %c0 = arith.constant 0 : index
    %c0_0 = arith.constant 0 : index
    %c0_1 = arith.constant 0 : index
    %0 = vector.load %arg1[%c0, %c0_0, %c0_1] : memref<3x8x384xbf16, #tpu.memory_space<vmem>>, vector<1x8x384xbf16>
    %1 = vector.shape_cast %0 : vector<1x8x384xbf16> to vector<8x384xbf16>
    %c0_2 = arith.constant 0 : index
    %c0_3 = arith.constant 0 : index
    %c0_4 = arith.constant 0 : index
    %2 = vector.load %arg3[%c0_2, %c0_3, %c0_4] : memref<3x4x512xf32, #tpu.memory_space<vmem>>, vector<1x4x512xf32>
    %3 = vector.shape_cast %2 : vector<1x4x512xf32> to vector<4x512xf32>
    %c0_5 = arith.constant 0 : index
    %c0_6 = arith.constant 0 : index
    %c0_7 = arith.constant 0 : index
    %4 = vector.load %arg2[%c0_5, %c0_6, %c0_7] : memref<3x384x512xbf16, #tpu.memory_space<vmem>>, vector<1x384x512xbf16>
    %5 = vector.shape_cast %4 : vector<1x384x512xbf16> to vector<384x512xbf16>
    %cst = arith.constant dense<0.000000e+00> : vector<8x512xf32>
    %6 = tpu.matmul %1, %5, %cst {dimension_numbers = #tpu.dot_dimension_numbers<[1], [0], [0], [1], [0, 0, 1, 1], [], []>} : vector<8x384xbf16>, vector<384x512xbf16>, vector<8x512xf32> -> vector<8x512xf32>
    %cst_8 = arith.constant dense<0.000000e+00> : vector<512xf32>
    %7 = vector.multi_reduction <add>, %6, %cst_8 [0] : vector<8x512xf32> to vector<512xf32>
    %8 = vector.shape_cast %7 : vector<512xf32> to vector<1x512xf32>
    %9 = arith.mulf %6, %6 : vector<8x512xf32>
    %cst_9 = arith.constant dense<0.000000e+00> : vector<512xf32>
    %10 = vector.multi_reduction <add>, %9, %cst_9 [0] : vector<8x512xf32> to vector<512xf32>
    %11 = vector.shape_cast %10 : vector<512xf32> to vector<1x512xf32>
    %cst_10 = arith.constant 1.250000e-01 : f32
    %12 = vector.broadcast %cst_10 : f32 to vector<1x512xf32>
    %13 = arith.mulf %8, %12 : vector<1x512xf32>
    %cst_11 = arith.constant 1.250000e-01 : f32
    %14 = vector.broadcast %cst_11 : f32 to vector<1x512xf32>
    %15 = arith.mulf %11, %14 : vector<1x512xf32>
    %16 = arith.mulf %13, %13 : vector<1x512xf32>
    %17 = arith.subf %15, %16 : vector<1x512xf32>
    %18 = vector.extract_strided_slice %3 {offsets = [0, 0], sizes = [1, 512], strides = [1, 1]} : vector<4x512xf32> to vector<1x512xf32>
    %cst_12 = arith.constant 9.99999974E-6 : f32
    %19 = vector.broadcast %cst_12 : f32 to vector<1x512xf32>
    %20 = arith.addf %17, %19 : vector<1x512xf32>
    %21 = math.rsqrt %20 : vector<1x512xf32>
    %22 = arith.mulf %18, %21 : vector<1x512xf32>
    %23 = vector.broadcast %13 : vector<1x512xf32> to vector<8x512xf32>
    %24 = arith.subf %6, %23 : vector<8x512xf32>
    %25 = vector.broadcast %22 : vector<1x512xf32> to vector<8x512xf32>
    %26 = arith.mulf %24, %25 : vector<8x512xf32>
    %27 = vector.extract_strided_slice %3 {offsets = [1, 0], sizes = [1, 512], strides = [1, 1]} : vector<4x512xf32> to vector<1x512xf32>
    %28 = vector.broadcast %27 : vector<1x512xf32> to vector<8x512xf32>
    %29 = arith.addf %26, %28 : vector<8x512xf32>
    %cst_13 = arith.constant 0.000000e+00 : f32
    %30 = vector.broadcast %cst_13 : f32 to vector<8x512xf32>
    %31 = arith.maximumf %29, %30 : vector<8x512xf32>
    %32 = arith.truncf %31 : vector<8x512xf32> to vector<8x512xbf16>
    %c0_14 = arith.constant 0 : index
    %c0_15 = arith.constant 0 : index
    %c0_16 = arith.constant 0 : index
    %33 = vector.load %arg4[%c0_14, %c0_15, %c0_16] : memref<3x512x512xbf16, #tpu.memory_space<vmem>>, vector<1x512x512xbf16>
    %34 = vector.shape_cast %33 : vector<1x512x512xbf16> to vector<512x512xbf16>
    %cst_17 = arith.constant dense<0.000000e+00> : vector<8x512xf32>
    %35 = tpu.matmul %32, %34, %cst_17 {dimension_numbers = #tpu.dot_dimension_numbers<[1], [0], [0], [1], [0, 0, 1, 1], [], []>} : vector<8x512xbf16>, vector<512x512xbf16>, vector<8x512xf32> -> vector<8x512xf32>
    %36 = vector.extract_strided_slice %3 {offsets = [2, 0], sizes = [1, 512], strides = [1, 1]} : vector<4x512xf32> to vector<1x512xf32>
    %37 = vector.broadcast %36 : vector<1x512xf32> to vector<8x512xf32>
    %38 = arith.addf %35, %37 : vector<8x512xf32>
    %cst_18 = arith.constant 0.000000e+00 : f32
    %39 = vector.broadcast %cst_18 : f32 to vector<8x512xf32>
    %40 = arith.maximumf %38, %39 : vector<8x512xf32>
    %41 = arith.truncf %40 : vector<8x512xf32> to vector<8x512xbf16>
    %c0_19 = arith.constant 0 : index
    %c0_20 = arith.constant 0 : index
    %c0_21 = arith.constant 0 : index
    %42 = vector.load %arg5[%c0_19, %c0_20, %c0_21] : memref<3x512x256xbf16, #tpu.memory_space<vmem>>, vector<1x512x256xbf16>
    %43 = vector.shape_cast %42 : vector<1x512x256xbf16> to vector<512x256xbf16>
    %cst_22 = arith.constant dense<0.000000e+00> : vector<8x256xf32>
    %44 = tpu.matmul %41, %43, %cst_22 {dimension_numbers = #tpu.dot_dimension_numbers<[1], [0], [0], [1], [0, 0, 1, 1], [], []>} : vector<8x512xbf16>, vector<512x256xbf16>, vector<8x256xf32> -> vector<8x256xf32>
    %45 = vector.extract_strided_slice %3 {offsets = [3, 0], sizes = [1, 256], strides = [1, 1]} : vector<4x512xf32> to vector<1x256xf32>
    %46 = vector.broadcast %45 : vector<1x256xf32> to vector<8x256xf32>
    %47 = arith.addf %44, %46 : vector<8x256xf32>
    %48 = arith.negf %47 : vector<8x256xf32>
    %49 = math.exp %48 : vector<8x256xf32>
    %cst_23 = arith.constant 1.000000e+00 : f32
    %50 = vector.broadcast %cst_23 : f32 to vector<8x256xf32>
    %51 = arith.addf %50, %49 : vector<8x256xf32>
    %52 = arith.divf %50, %51 : vector<8x256xf32>
    %c0_24 = arith.constant 0 : index
    %c0_25 = arith.constant 0 : index
    %c0_26 = arith.constant 0 : index
    %53 = vector.load %arg6[%c0_24, %c0_25, %c0_26] : memref<3x8x256xf32, #tpu.memory_space<vmem>>, vector<1x8x256xf32>
    %54 = vector.shape_cast %53 : vector<1x8x256xf32> to vector<8x256xf32>
    %55 = vector.shape_cast %52 : vector<8x256xf32> to vector<1x8x256xf32>
    tpu.vector_store %arg6[%c0_24, %c0_25, %c0_26], %55 {strides = array<i32>} : memref<3x8x256xf32, #tpu.memory_space<vmem>>, vector<1x8x256xf32>,
    %c1 = arith.constant 1 : index
    %c0_27 = arith.constant 0 : index
    %c0_28 = arith.constant 0 : index
    %56 = vector.load %arg1[%c1, %c0_27, %c0_28] : memref<3x8x384xbf16, #tpu.memory_space<vmem>>, vector<1x8x384xbf16>
    %57 = vector.shape_cast %56 : vector<1x8x384xbf16> to vector<8x384xbf16>
    %c1_29 = arith.constant 1 : index
    %c0_30 = arith.constant 0 : index
    %c0_31 = arith.constant 0 : index
    %58 = vector.load %arg3[%c1_29, %c0_30, %c0_31] : memref<3x4x512xf32, #tpu.memory_space<vmem>>, vector<1x4x512xf32>
    %59 = vector.shape_cast %58 : vector<1x4x512xf32> to vector<4x512xf32>
    %c1_32 = arith.constant 1 : index
    %c0_33 = arith.constant 0 : index
    %c0_34 = arith.constant 0 : index
    %60 = vector.load %arg2[%c1_32, %c0_33, %c0_34] : memref<3x384x512xbf16, #tpu.memory_space<vmem>>, vector<1x384x512xbf16>
    %61 = vector.shape_cast %60 : vector<1x384x512xbf16> to vector<384x512xbf16>
    %cst_35 = arith.constant dense<0.000000e+00> : vector<8x512xf32>
    %62 = tpu.matmul %57, %61, %cst_35 {dimension_numbers = #tpu.dot_dimension_numbers<[1], [0], [0], [1], [0, 0, 1, 1], [], []>} : vector<8x384xbf16>, vector<384x512xbf16>, vector<8x512xf32> -> vector<8x512xf32>
    %cst_36 = arith.constant dense<0.000000e+00> : vector<512xf32>
    %63 = vector.multi_reduction <add>, %62, %cst_36 [0] : vector<8x512xf32> to vector<512xf32>
    %64 = vector.shape_cast %63 : vector<512xf32> to vector<1x512xf32>
    %65 = arith.mulf %62, %62 : vector<8x512xf32>
    %cst_37 = arith.constant dense<0.000000e+00> : vector<512xf32>
    %66 = vector.multi_reduction <add>, %65, %cst_37 [0] : vector<8x512xf32> to vector<512xf32>
    %67 = vector.shape_cast %66 : vector<512xf32> to vector<1x512xf32>
    %cst_38 = arith.constant 1.250000e-01 : f32
    %68 = vector.broadcast %cst_38 : f32 to vector<1x512xf32>
    %69 = arith.mulf %64, %68 : vector<1x512xf32>
    %cst_39 = arith.constant 1.250000e-01 : f32
    %70 = vector.broadcast %cst_39 : f32 to vector<1x512xf32>
    %71 = arith.mulf %67, %70 : vector<1x512xf32>
    %72 = arith.mulf %69, %69 : vector<1x512xf32>
    %73 = arith.subf %71, %72 : vector<1x512xf32>
    %74 = vector.extract_strided_slice %59 {offsets = [0, 0], sizes = [1, 512], strides = [1, 1]} : vector<4x512xf32> to vector<1x512xf32>
    %cst_40 = arith.constant 9.99999974E-6 : f32
    %75 = vector.broadcast %cst_40 : f32 to vector<1x512xf32>
    %76 = arith.addf %73, %75 : vector<1x512xf32>
    %77 = math.rsqrt %76 : vector<1x512xf32>
    %78 = arith.mulf %74, %77 : vector<1x512xf32>
    %79 = vector.broadcast %69 : vector<1x512xf32> to vector<8x512xf32>
    %80 = arith.subf %62, %79 : vector<8x512xf32>
    %81 = vector.broadcast %78 : vector<1x512xf32> to vector<8x512xf32>
    %82 = arith.mulf %80, %81 : vector<8x512xf32>
    %83 = vector.extract_strided_slice %59 {offsets = [1, 0], sizes = [1, 512], strides = [1, 1]} : vector<4x512xf32> to vector<1x512xf32>
    %84 = vector.broadcast %83 : vector<1x512xf32> to vector<8x512xf32>
    %85 = arith.addf %82, %84 : vector<8x512xf32>
    %cst_41 = arith.constant 0.000000e+00 : f32
    %86 = vector.broadcast %cst_41 : f32 to vector<8x512xf32>
    %87 = arith.maximumf %85, %86 : vector<8x512xf32>
    %88 = arith.truncf %87 : vector<8x512xf32> to vector<8x512xbf16>
    %c1_42 = arith.constant 1 : index
    %c0_43 = arith.constant 0 : index
    %c0_44 = arith.constant 0 : index
    %89 = vector.load %arg4[%c1_42, %c0_43, %c0_44] : memref<3x512x512xbf16, #tpu.memory_space<vmem>>, vector<1x512x512xbf16>
    %90 = vector.shape_cast %89 : vector<1x512x512xbf16> to vector<512x512xbf16>
    %cst_45 = arith.constant dense<0.000000e+00> : vector<8x512xf32>
    %91 = tpu.matmul %88, %90, %cst_45 {dimension_numbers = #tpu.dot_dimension_numbers<[1], [0], [0], [1], [0, 0, 1, 1], [], []>} : vector<8x512xbf16>, vector<512x512xbf16>, vector<8x512xf32> -> vector<8x512xf32>
    %92 = vector.extract_strided_slice %59 {offsets = [2, 0], sizes = [1, 512], strides = [1, 1]} : vector<4x512xf32> to vector<1x512xf32>
    %93 = vector.broadcast %92 : vector<1x512xf32> to vector<8x512xf32>
    %94 = arith.addf %91, %93 : vector<8x512xf32>
    %cst_46 = arith.constant 0.000000e+00 : f32
    %95 = vector.broadcast %cst_46 : f32 to vector<8x512xf32>
    %96 = arith.maximumf %94, %95 : vector<8x512xf32>
    %97 = arith.truncf %96 : vector<8x512xf32> to vector<8x512xbf16>
    %c1_47 = arith.constant 1 : index
    %c0_48 = arith.constant 0 : index
    %c0_49 = arith.constant 0 : index
    %98 = vector.load %arg5[%c1_47, %c0_48, %c0_49] : memref<3x512x256xbf16, #tpu.memory_space<vmem>>, vector<1x512x256xbf16>
    %99 = vector.shape_cast %98 : vector<1x512x256xbf16> to vector<512x256xbf16>
    %cst_50 = arith.constant dense<0.000000e+00> : vector<8x256xf32>
    %100 = tpu.matmul %97, %99, %cst_50 {dimension_numbers = #tpu.dot_dimension_numbers<[1], [0], [0], [1], [0, 0, 1, 1], [], []>} : vector<8x512xbf16>, vector<512x256xbf16>, vector<8x256xf32> -> vector<8x256xf32>
    %101 = vector.extract_strided_slice %59 {offsets = [3, 0], sizes = [1, 256], strides = [1, 1]} : vector<4x512xf32> to vector<1x256xf32>
    %102 = vector.broadcast %101 : vector<1x256xf32> to vector<8x256xf32>
    %103 = arith.addf %100, %102 : vector<8x256xf32>
    %104 = arith.negf %103 : vector<8x256xf32>
    %105 = math.exp %104 : vector<8x256xf32>
    %cst_51 = arith.constant 1.000000e+00 : f32
    %106 = vector.broadcast %cst_51 : f32 to vector<8x256xf32>
    %107 = arith.addf %106, %105 : vector<8x256xf32>
    %108 = arith.divf %106, %107 : vector<8x256xf32>
    %c1_52 = arith.constant 1 : index
    %c0_53 = arith.constant 0 : index
    %c0_54 = arith.constant 0 : index
    %109 = vector.load %arg6[%c1_52, %c0_53, %c0_54] : memref<3x8x256xf32, #tpu.memory_space<vmem>>, vector<1x8x256xf32>
    %110 = vector.shape_cast %109 : vector<1x8x256xf32> to vector<8x256xf32>
    %111 = vector.shape_cast %108 : vector<8x256xf32> to vector<1x8x256xf32>
    tpu.vector_store %arg6[%c1_52, %c0_53, %c0_54], %111 {strides = array<i32>} : memref<3x8x256xf32, #tpu.memory_space<vmem>>, vector<1x8x256xf32>,
    %c2 = arith.constant 2 : index
    %c0_55 = arith.constant 0 : index
    %c0_56 = arith.constant 0 : index
    %112 = vector.load %arg1[%c2, %c0_55, %c0_56] : memref<3x8x384xbf16, #tpu.memory_space<vmem>>, vector<1x8x384xbf16>
    %113 = vector.shape_cast %112 : vector<1x8x384xbf16> to vector<8x384xbf16>
    %c2_57 = arith.constant 2 : index
    %c0_58 = arith.constant 0 : index
    %c0_59 = arith.constant 0 : index
    %114 = vector.load %arg3[%c2_57, %c0_58, %c0_59] : memref<3x4x512xf32, #tpu.memory_space<vmem>>, vector<1x4x512xf32>
    %115 = vector.shape_cast %114 : vector<1x4x512xf32> to vector<4x512xf32>
    %c2_60 = arith.constant 2 : index
    %c0_61 = arith.constant 0 : index
    %c0_62 = arith.constant 0 : index
    %116 = vector.load %arg2[%c2_60, %c0_61, %c0_62] : memref<3x384x512xbf16, #tpu.memory_space<vmem>>, vector<1x384x512xbf16>
    %117 = vector.shape_cast %116 : vector<1x384x512xbf16> to vector<384x512xbf16>
    %cst_63 = arith.constant dense<0.000000e+00> : vector<8x512xf32>
    %118 = tpu.matmul %113, %117, %cst_63 {dimension_numbers = #tpu.dot_dimension_numbers<[1], [0], [0], [1], [0, 0, 1, 1], [], []>} : vector<8x384xbf16>, vector<384x512xbf16>, vector<8x512xf32> -> vector<8x512xf32>
    %cst_64 = arith.constant dense<0.000000e+00> : vector<512xf32>
    %119 = vector.multi_reduction <add>, %118, %cst_64 [0] : vector<8x512xf32> to vector<512xf32>
    %120 = vector.shape_cast %119 : vector<512xf32> to vector<1x512xf32>
    %121 = arith.mulf %118, %118 : vector<8x512xf32>
    %cst_65 = arith.constant dense<0.000000e+00> : vector<512xf32>
    %122 = vector.multi_reduction <add>, %121, %cst_65 [0] : vector<8x512xf32> to vector<512xf32>
    %123 = vector.shape_cast %122 : vector<512xf32> to vector<1x512xf32>
    %cst_66 = arith.constant 1.250000e-01 : f32
    %124 = vector.broadcast %cst_66 : f32 to vector<1x512xf32>
    %125 = arith.mulf %120, %124 : vector<1x512xf32>
    %cst_67 = arith.constant 1.250000e-01 : f32
    %126 = vector.broadcast %cst_67 : f32 to vector<1x512xf32>
    %127 = arith.mulf %123, %126 : vector<1x512xf32>
    %128 = arith.mulf %125, %125 : vector<1x512xf32>
    %129 = arith.subf %127, %128 : vector<1x512xf32>
    %130 = vector.extract_strided_slice %115 {offsets = [0, 0], sizes = [1, 512], strides = [1, 1]} : vector<4x512xf32> to vector<1x512xf32>
    %cst_68 = arith.constant 9.99999974E-6 : f32
    %131 = vector.broadcast %cst_68 : f32 to vector<1x512xf32>
    %132 = arith.addf %129, %131 : vector<1x512xf32>
    %133 = math.rsqrt %132 : vector<1x512xf32>
    %134 = arith.mulf %130, %133 : vector<1x512xf32>
    %135 = vector.broadcast %125 : vector<1x512xf32> to vector<8x512xf32>
    %136 = arith.subf %118, %135 : vector<8x512xf32>
    %137 = vector.broadcast %134 : vector<1x512xf32> to vector<8x512xf32>
    %138 = arith.mulf %136, %137 : vector<8x512xf32>
    %139 = vector.extract_strided_slice %115 {offsets = [1, 0], sizes = [1, 512], strides = [1, 1]} : vector<4x512xf32> to vector<1x512xf32>
    %140 = vector.broadcast %139 : vector<1x512xf32> to vector<8x512xf32>
    %141 = arith.addf %138, %140 : vector<8x512xf32>
    %cst_69 = arith.constant 0.000000e+00 : f32
    %142 = vector.broadcast %cst_69 : f32 to vector<8x512xf32>
    %143 = arith.maximumf %141, %142 : vector<8x512xf32>
    %144 = arith.truncf %143 : vector<8x512xf32> to vector<8x512xbf16>
    %c2_70 = arith.constant 2 : index
    %c0_71 = arith.constant 0 : index
    %c0_72 = arith.constant 0 : index
    %145 = vector.load %arg4[%c2_70, %c0_71, %c0_72] : memref<3x512x512xbf16, #tpu.memory_space<vmem>>, vector<1x512x512xbf16>
    %146 = vector.shape_cast %145 : vector<1x512x512xbf16> to vector<512x512xbf16>
    %cst_73 = arith.constant dense<0.000000e+00> : vector<8x512xf32>
    %147 = tpu.matmul %144, %146, %cst_73 {dimension_numbers = #tpu.dot_dimension_numbers<[1], [0], [0], [1], [0, 0, 1, 1], [], []>} : vector<8x512xbf16>, vector<512x512xbf16>, vector<8x512xf32> -> vector<8x512xf32>
    %148 = vector.extract_strided_slice %115 {offsets = [2, 0], sizes = [1, 512], strides = [1, 1]} : vector<4x512xf32> to vector<1x512xf32>
    %149 = vector.broadcast %148 : vector<1x512xf32> to vector<8x512xf32>
    %150 = arith.addf %147, %149 : vector<8x512xf32>
    %cst_74 = arith.constant 0.000000e+00 : f32
    %151 = vector.broadcast %cst_74 : f32 to vector<8x512xf32>
    %152 = arith.maximumf %150, %151 : vector<8x512xf32>
    %153 = arith.truncf %152 : vector<8x512xf32> to vector<8x512xbf16>
    %c2_75 = arith.constant 2 : index
    %c0_76 = arith.constant 0 : index
    %c0_77 = arith.constant 0 : index
    %154 = vector.load %arg5[%c2_75, %c0_76, %c0_77] : memref<3x512x256xbf16, #tpu.memory_space<vmem>>, vector<1x512x256xbf16>
    %155 = vector.shape_cast %154 : vector<1x512x256xbf16> to vector<512x256xbf16>
    %cst_78 = arith.constant dense<0.000000e+00> : vector<8x256xf32>
    %156 = tpu.matmul %153, %155, %cst_78 {dimension_numbers = #tpu.dot_dimension_numbers<[1], [0], [0], [1], [0, 0, 1, 1], [], []>} : vector<8x512xbf16>, vector<512x256xbf16>, vector<8x256xf32> -> vector<8x256xf32>
    %157 = vector.extract_strided_slice %115 {offsets = [3, 0], sizes = [1, 256], strides = [1, 1]} : vector<4x512xf32> to vector<1x256xf32>
    %158 = vector.broadcast %157 : vector<1x256xf32> to vector<8x256xf32>
    %159 = arith.addf %156, %158 : vector<8x256xf32>
    %160 = arith.negf %159 : vector<8x256xf32>
    %161 = math.exp %160 : vector<8x256xf32>
    %cst_79 = arith.constant 1.000000e+00 : f32
    %162 = vector.broadcast %cst_79 : f32 to vector<8x256xf32>
    %163 = arith.addf %162, %161 : vector<8x256xf32>
    %164 = arith.divf %162, %163 : vector<8x256xf32>
    %c2_80 = arith.constant 2 : index
    %c0_81 = arith.constant 0 : index
    %c0_82 = arith.constant 0 : index
    %165 = vector.load %arg6[%c2_80, %c0_81, %c0_82] : memref<3x8x256xf32, #tpu.memory_space<vmem>>, vector<1x8x256xf32>
    %166 = vector.shape_cast %165 : vector<1x8x256xf32> to vector<8x256xf32>
    %167 = vector.shape_cast %164 : vector<8x256xf32> to vector<1x8x256xf32>
    tpu.vector_store %arg6[%c2_80, %c0_81, %c0_82], %167 {strides = array<i32>} : memref<3x8x256xf32, #tpu.memory_space<vmem>>, vector<1x8x256xf32>,
    return
  }
  func.func @transform_0(%arg0: i32) -> (i32, i32, i32) {
    %c0_i32 = arith.constant 0 : i32
    %c0_i32_0 = arith.constant 0 : i32
    %c0_i32_1 = arith.constant 0 : i32
    %c0_i32_2 = arith.constant 0 : i32
    return %c0_i32, %c0_i32_0, %c0_i32_1 : i32, i32, i32
  }
  func.func @transform_1(%arg0: i32) -> (i32, i32, i32) {
    %c0_i32 = arith.constant 0 : i32
    %c0_i32_0 = arith.constant 0 : i32
    %c0_i32_1 = arith.constant 0 : i32
    %c0_i32_2 = arith.constant 0 : i32
    return %c0_i32, %c0_i32_0, %c0_i32_1 : i32, i32, i32
  }
  func.func @transform_2(%arg0: i32) -> (i32, i32, i32) {
    %c0_i32 = arith.constant 0 : i32
    %c0_i32_0 = arith.constant 0 : i32
    %c0_i32_1 = arith.constant 0 : i32
    %c0_i32_2 = arith.constant 0 : i32
    return %c0_i32, %c0_i32_0, %c0_i32_1 : i32, i32, i32
  }
  func.func @transform_3(%arg0: i32) -> (i32, i32, i32) {
    %c0_i32 = arith.constant 0 : i32
    %c0_i32_0 = arith.constant 0 : i32
    %c0_i32_1 = arith.constant 0 : i32
    %c0_i32_2 = arith.constant 0 : i32
    return %c0_i32, %c0_i32_0, %c0_i32_1 : i32, i32, i32
  }
  func.func @transform_4(%arg0: i32) -> (i32, i32, i32) {
    %c0_i32 = arith.constant 0 : i32
    %c0_i32_0 = arith.constant 0 : i32
    %c0_i32_1 = arith.constant 0 : i32
    %c0_i32_2 = arith.constant 0 : i32
    return %c0_i32, %c0_i32_0, %c0_i32_1 : i32, i32, i32
  }
  func.func @transform_5(%arg0: i32) -> (i32, i32, i32) {
    %c0_i32 = arith.constant 0 : i32
    %c0_i32_0 = arith.constant 0 : i32
    %c0_i32_1 = arith.constant 0 : i32
    %c0_i32_2 = arith.constant 0 : i32
    return %c0_i32, %c0_i32_0, %c0_i32_1 : i32, i32, i32
  }
}

</mosaic_0001>

<bundles_post_ra>
// kernel: squeeze.5
= control target key start
LH: loop header
LB: loop body
LE: loop exit
PB: predicated region body
PF: predicated region fallthrough
CT: control target
= control target key end

     0   :  { %vm3_vm0 = vcmask 64512   ;;  %s472_s0 = inlined_call_operand.vmem [shape: f32[1,8,100], index: 0, kind: input, shape index: {}]   ;;  %s473_s1 = inlined_call_operand.vmem [shape: f32[8,25,4], index: 1, kind: output, shape index: {}]  }
   0x1   :  { %v2_v0 = vld [vmem:[%s472_s0] sm:$0xff]   ;;  %v287_v1 = vld [vmem:[%s472_s0 + $0x8] sm:$0xff]   ;;  %v288_v2 = vld [vmem:[%s472_s0 + $0x10] sm:$0xff]  }
   0x2   :  { %4 = vst.msk [vmem:[#allocation0] sm:$0xf] %vm3_vm0, %v2_v0   ;;  %6 = vst.msk [vmem:[#allocation0 + $0x4] sm:$0xf0] %vm3_vm0, %v2_v0   ;;  %v289_v3 = vld [vmem:[%s472_s0 + $0x18] sm:$0xff]   ;;  %v290_v4 = vld [vmem:[%s472_s0 + $0x20] sm:$0xff]  }
   0x3   :  { %11 = vst.msk [vmem:[#allocation0 + $0x10] sm:$0xf] %vm3_vm0, %v287_v1   ;;  %13 = vst.msk [vmem:[#allocation0 + $0x14] sm:$0xf0] %vm3_vm0, %v287_v1   ;;  %v291_v5 = vld [vmem:[%s472_s0 + $0x28] sm:$0xff]   ;;  %v292_v6 = vld [vmem:[%s472_s0 + $0x30] sm:$0xff]  }
   0x4   :  { %18 = vst.msk [vmem:[#allocation0 + $0x20] sm:$0xf] %vm3_vm0, %v288_v2   ;;  %20 = vst.msk [vmem:[#allocation0 + $0x24] sm:$0xf0] %vm3_vm0, %v288_v2   ;;  %v293_v7 = vld [vmem:[%s472_s0 + $0x38] sm:$0xff]   ;;  %v294_v8 = vld [vmem:[%s472_s0 + $0x40] sm:$0xff]  }
   0x5   :  { %25 = vst.msk [vmem:[#allocation0 + $0x30] sm:$0xf] %vm3_vm0, %v289_v3   ;;  %27 = vst.msk [vmem:[#allocation0 + $0x34] sm:$0xf0] %vm3_vm0, %v289_v3   ;;  %v295_v9 = vld [vmem:[%s472_s0 + $0x48] sm:$0xff]   ;;  %v296_v10 = vld [vmem:[%s472_s0 + $0x50] sm:$0xff]  }
   0x6   :  { %32 = vst.msk [vmem:[#allocation0 + $0x40] sm:$0xf] %vm3_vm0, %v290_v4   ;;  %34 = vst.msk [vmem:[#allocation0 + $0x44] sm:$0xf0] %vm3_vm0, %v290_v4   ;;  %v297_v11 = vld [vmem:[%s472_s0 + $0x58] sm:$0xff]  }
   0x7   :  { %39 = vst.msk [vmem:[#allocation0 + $0x50] sm:$0xf] %vm3_vm0, %v291_v5   ;;  %41 = vst.msk [vmem:[#allocation0 + $0x54] sm:$0xf0] %vm3_vm0, %v291_v5   ;;  %v298_v12 = vld [vmem:[%s472_s0 + $0x60] sm:$0xf]  }
   0x8   :  { %46 = vst.msk [vmem:[#allocation0 + $0x60] sm:$0xf] %vm3_vm0, %v292_v6   ;;  %48 = vst.msk [vmem:[#allocation0 + $0x64] sm:$0xf0] %vm3_vm0, %v292_v6  }
   0x9   :  { %53 = vst.msk [vmem:[#allocation0 + $0x70] sm:$0xf] %vm3_vm0, %v293_v7   ;;  %55 = vst.msk [vmem:[#allocation0 + $0x74] sm:$0xf0] %vm3_vm0, %v293_v7   ;;  %v93_v13 = vld [vmem:[#allocation0] sm:$0xf] }
   0xa   :  { %60 = vst.msk [vmem:[#allocation0 + $0x80] sm:$0xf] %vm3_vm0, %v294_v8   ;;  %62 = vst.msk [vmem:[#allocation0 + $0x84] sm:$0xf0] %vm3_vm0, %v294_v8   ;;  %v98_v14 = vld [vmem:[#allocation0 + $0x8] sm:$0xf] }
   0xb   :  { %67 = vst.msk [vmem:[#allocation0 + $0x90] sm:$0xf] %vm3_vm0, %v295_v9   ;;  %69 = vst.msk [vmem:[#allocation0 + $0x94] sm:$0xf0] %vm3_vm0, %v295_v9   ;;  %v104_v15 = vld [vmem:[#allocation0 + $0x10] sm:$0xf] }
   0xc   :  { %74 = vst.msk [vmem:[#allocation0 + $0xa0] sm:$0xf] %vm3_vm0, %v296_v10   ;;  %76 = vst.msk [vmem:[#allocation0 + $0xa4] sm:$0xf0] %vm3_vm0, %v296_v10   ;;  %v111_v16 = vld [vmem:[#allocation0 + $0x18] sm:$0xf] }
   0xd   :  { %81 = vst.msk [vmem:[#allocation0 + $0xb0] sm:$0xf] %vm3_vm0, %v297_v11   ;;  %83 = vst.msk [vmem:[#allocation0 + $0xb4] sm:$0xf0] %vm3_vm0, %v297_v11   ;;  %v118_v17 = vld [vmem:[#allocation0 + $0x20] sm:$0xf] }
   0xe   :  { %88 = vst.msk [vmem:[#allocation0 + $0xc0] sm:$0xf] %vm3_vm0, %v298_v12   ;;  %96 = vst [vmem:[%s473_s1] sm:$0xf] %v93_v13  ;;  %v125_v18 = vld [vmem:[#allocation0 + $0x28] sm:$0xf] }
   0xf   :  { %299 = vst [vmem:[%s473_s1 + $0x4] sm:$0xf] %v98_v14  ;;  %300 = vst [vmem:[%s473_s1 + $0x8] sm:$0xf] %v104_v15  ;;  %v132_v19 = vld [vmem:[#allocation0 + $0x30] sm:$0xf] }
  0x10   :  { %301 = vst [vmem:[%s473_s1 + $0xc] sm:$0xf] %v111_v16  ;;  %302 = vst [vmem:[%s473_s1 + $0x10] sm:$0xf] %v118_v17  ;;  %v139_v20 = vld [vmem:[#allocation0 + $0x38] sm:$0xf] }
  0x11   :  { %303 = vst [vmem:[%s473_s1 + $0x14] sm:$0xf] %v125_v18  ;;  %v146_v21 = vld [vmem:[#allocation0 + $0x40] sm:$0xf]  ;;  %304 = vst [vmem:[%s473_s1 + $0x18] sm:$0xf] %v132_v19 }
  0x12   :  { %305 = vst [vmem:[%s473_s1 + $0x1c] sm:$0xf] %v139_v20  ;;  %306 = vst [vmem:[%s473_s1 + $0x20] sm:$0xf] %v146_v21  ;;  %v153_v22 = vld [vmem:[#allocation0 + $0x48] sm:$0xf] }
  0x13   :  { %v160_v23 = vld [vmem:[#allocation0 + $0x50] sm:$0xf]  ;;  %v167_v24 = vld [vmem:[#allocation0 + $0x58] sm:$0xf]  ;;  %307 = vst [vmem:[%s473_s1 + $0x24] sm:$0xf] %v153_v22 }
  0x14   :  { %308 = vst [vmem:[%s473_s1 + $0x28] sm:$0xf] %v160_v23  ;;  %309 = vst [vmem:[%s473_s1 + $0x2c] sm:$0xf] %v167_v24  ;;  %v174_v25 = vld [vmem:[#allocation0 + $0x60] sm:$0xf] }
  0x15   :  { %v181_v26 = vld [vmem:[#allocation0 + $0x68] sm:$0xf]  ;;  %v188_v27 = vld [vmem:[#allocation0 + $0x70] sm:$0xf]  ;;  %310 = vst [vmem:[%s473_s1 + $0x30] sm:$0xf] %v174_v25 }
  0x16   :  { %311 = vst [vmem:[%s473_s1 + $0x34] sm:$0xf] %v181_v26  ;;  %312 = vst [vmem:[%s473_s1 + $0x38] sm:$0xf] %v188_v27  ;;  %v195_v28 = vld [vmem:[#allocation0 + $0x78] sm:$0xf] }
  0x17   :  { %v202_v29 = vld [vmem:[#allocation0 + $0x80] sm:$0xf]  ;;  %v209_v30 = vld [vmem:[#allocation0 + $0x88] sm:$0xf]  ;;  %313 = vst [vmem:[%s473_s1 + $0x3c] sm:$0xf] %v195_v28 }
  0x18   :  { %314 = vst [vmem:[%s473_s1 + $0x40] sm:$0xf] %v202_v29  ;;  %315 = vst [vmem:[%s473_s1 + $0x44] sm:$0xf] %v209_v30  ;;  %v216_v31 = vld [vmem:[#allocation0 + $0x90] sm:$0xf] }
  0x19   :  { %v223_v32 = vld [vmem:[#allocation0 + $0x98] sm:$0xf]  ;;  %v230_v33 = vld [vmem:[#allocation0 + $0xa0] sm:$0xf]  ;;  %316 = vst [vmem:[%s473_s1 + $0x48] sm:$0xf] %v216_v31 }
  0x1a   :  { %317 = vst [vmem:[%s473_s1 + $0x4c] sm:$0xf] %v223_v32  ;;  %318 = vst [vmem:[%s473_s1 + $0x50] sm:$0xf] %v230_v33  ;;  %v237_v34 = vld [vmem:[#allocation0 + $0xa8] sm:$0xf] }
  0x1b   :  { %v244_v35 = vld [vmem:[#allocation0 + $0xb0] sm:$0xf]  ;;  %v251_v36 = vld [vmem:[#allocation0 + $0xb8] sm:$0xf]  ;;  %319 = vst [vmem:[%s473_s1 + $0x54] sm:$0xf] %v237_v34 }
  0x1c   :  { %320 = vst [vmem:[%s473_s1 + $0x58] sm:$0xf] %v244_v35  ;;  %321 = vst [vmem:[%s473_s1 + $0x5c] sm:$0xf] %v251_v36  ;;  %v258_v37 = vld [vmem:[#allocation0 + $0xc0] sm:$0xf] }
  0x1d   :  { %322 = vst [vmem:[%s473_s1 + $0x60] sm:$0xf] %v258_v37 }

// kernel: factor_diffusion_forward.1
= control target key start
LH: loop header
LB: loop body
LE: loop exit
PB: predicated region body
PF: predicated region fallthrough
CT: control target
= control target key end

     0   :  { %10 = vsyncpa [#allocation3], 0  ;;  %s10096_s0 = inlined_call_operand.vmem [shape: bf16[3,8,384], index: 0, kind: input, shape index: {}]   ;;  %s10097_s1 = inlined_call_operand.hbm [shape: bf16[3,384,512], index: 1, kind: input, shape index: {}]   ;;  %s10098_s2 = inlined_call_operand.hbm [shape: f32[3,4,512], index: 2, kind: input, shape index: {}]   ;;  %s10099_s3 = inlined_call_operand.hbm [shape: bf16[3,512,512], index: 3, kind: input, shape index: {}]   ;;  %s10100_s4 = inlined_call_operand.hbm [shape: bf16[3,512,256], index: 4, kind: input, shape index: {}]   ;;  %s10101_s5 = inlined_call_operand.vmem [shape: f32[3,8,256], index: 5, kind: output, shape index: {}]  }
   0x1   :  { %11 = vsyncpa [#allocation5], 0 }
   0x2   :  { %12 = vsyncpa [#allocation8], 0  ;;  %s9665_s18 = smov [#allocation4]   ;;  %s9666_s20 = smov [#allocation2]  }
   0x3   :  { %s32_s19 = sshll.u32 %s9665_s18, 4  ;;  %s20_s21 = sshll.u32 %s9666_s20, 4  ;;  %s33_s19 = int_to_ptr.vmem [resolvable:$true] %s32_s19  ;;  %s21_s21 = int_to_ptr.vmem [resolvable:$true] %s20_s21 }
   0x4   :  { %s9587_s22 = scalar_lea.vmem %s33_s19, 768  ;;  %p9592_p1 = scmp.lt.s32.totalorder %s33_s19, %s33_s19 }
   0x5   :  { %p9588_p0 = scmp.ne.s32.totalorder %s33_s19, %s9587_s22  ;;  %p9593_p2 = scmp.lt.s32.totalorder %s9587_s22, %s9587_s22 }
   0x7   :  { %p9594_p3 = por %p9593_p2, %p9592_p1 }
   0x9   :  { %p9595_p4 = pnand %p9594_p3, %p9588_p0 }
   0xb   :  { %9598 = shalt.err (!%p9595_p4)
}
   0xc   :  { %s9667_s23 = smov 256   ;;  %s9668_s24 = smov 16  }
   0xd   :  { %38 = dma.hbm_to_vmem [thread:$0]  %s10098_s2, 768, %s33_s19, [#allocation5], %s9667_s23, %s9667_s23, %s9668_s24  }
   0xe   :  { %s9607_s27 = scalar_lea.vmem %s21_s21, 36864  ;;  %p9612_p6 = scmp.lt.s32.totalorder %s21_s21, %s21_s21 }
   0xf   :  { %p9608_p5 = scmp.ne.s32.totalorder %s21_s21, %s9607_s27  ;;  %p9613_p7 = scmp.lt.s32.totalorder %s9607_s27, %s9607_s27 }
  0x11   :  { %p9614_p8 = por %p9613_p7, %p9612_p6 }
  0x13   :  { %p9615_p9 = pnand %p9614_p8, %p9608_p5 }
  0x15   :  { %9618 = shalt.err (!%p9615_p9)
}
  0x16   :  { %26 = dma.hbm_to_vmem [thread:$0]  %s10097_s1, 36864, %s21_s21, [#allocation3], %s9667_s23, %s9667_s23, %s9668_s24  }
  0x17   :  { %s9669_s30 = smov [#allocation6]   ;;  %s9670_s7 = smov [#allocation7]  }
  0x18   :  { %s44_s6 = sshll.u32 %s9669_s30, 4  ;;  %s56_s8 = sshll.u32 %s9670_s7, 4  ;;  %s45_s6 = int_to_ptr.vmem [resolvable:$true] %s44_s6  ;;  %s57_s8 = int_to_ptr.vmem [resolvable:$true] %s56_s8 }
  0x19   :  { %s9627_s9 = scalar_lea.vmem %s45_s6, 49152  ;;  %p9632_p11 = scmp.lt.s32.totalorder %s45_s6, %s45_s6 }
  0x1a   :  { %p9628_p10 = scmp.ne.s32.totalorder %s45_s6, %s9627_s9  ;;  %p9633_p12 = scmp.lt.s32.totalorder %s9627_s9, %s9627_s9 }
  0x1c   :  { %p9634_p13 = por %p9633_p12, %p9632_p11 }
  0x1e   :  { %p9635_p0 = pnand %p9634_p13, %p9628_p10 }
  0x20   :  { %9638 = shalt.err (!%p9635_p0)
}
  0x21   :  { %50 = dma.hbm_to_vmem [thread:$0]  %s10099_s3, 49152, %s45_s6, [#allocation5], %s9667_s23, %s9667_s23, %s9668_s24  }
  0x22   :  { %s9647_s11 = scalar_lea.vmem %s57_s8, 24576  ;;  %p9652_p2 = scmp.lt.s32.totalorder %s57_s8, %s57_s8 }
  0x23   :  { %p9648_p1 = scmp.ne.s32.totalorder %s57_s8, %s9647_s11  ;;  %p9653_p3 = scmp.lt.s32.totalorder %s9647_s11, %s9647_s11 }
  0x25   :  { %p9654_p4 = por %p9653_p3, %p9652_p2 }
  0x27   :  { %p9655_p5 = pnand %p9654_p4, %p9648_p1 }
  0x29   :  { %9658 = shalt.err (!%p9655_p5)
}
  0x2a   :  { %s9671_s1 = smov 128   ;;  %s9672_s12 = smov 8  }
  0x2b   :  { %62 = dma.hbm_to_vmem [thread:$0]  %s10100_s4, 24576, %s57_s8, [#allocation8], %s9671_s1, %s9671_s1, %s9672_s12  }
  0x2c   :  { %9659 = dma.done.wait [#allocation3], 36864  }
  0x2d   :  { %9660 = vsyncadd [#allocation3], 4294930432 }
  0x2e   :  { %9661 = dma.done.wait [#allocation5], 49920  }
  0x2f   :  { %9662 = vsyncadd [#allocation5], 4294917376 }
  0x30   :  { %9663 = dma.done.wait [#allocation8], 24576  }
  0x31   :  { %9664 = vsyncadd [#allocation8], 4294942720  ;;  %v9673_v0 = vmov 0   ;;  %v8224_v1 = vld [vmem:[#allocation2 + $0xe4] ss:$16 sps:$4 sm:$0xff]  }
  0x32   :  { %740 = vmatprep.mubr.bf16.mxu1 %v9673_v0  ;;  %v8226_v2 = vld [vmem:[#allocation2 + $0x2e4] ss:$16 sps:$4 sm:$0xff]   ;;  %667 = vmatprep.subr.bf16.mxu0 %v8224_v1  ;;  %v8228_v3 = vld [vmem:[#allocation2 + $0xe0] ss:$16 sps:$4 sm:$0xff]   ;;  %v8277_v34 = vld [vmem:[#allocation2 + $0xec] ss:$16 sps:$4 sm:$0xff]  }
  0x33   :  { %v8229_v4 = vld [vmem:[#allocation2 + $0x2e0] ss:$16 sps:$4 sm:$0xff]   ;;  %708 = vmatprep.subr.bf16.mxu1 %v8226_v2  ;;  %v8230_v5 = vld [vmem:[#allocation2 + $0xc4] ss:$16 sps:$4 sm:$0xff]   ;;  %668 = vmatpush1.bf16.msra.mxu0 %v8228_v3  ;;  %v9720_v35 = vld [vmem:[%s10096_s0 + $0x8] ss:$0 sps:$4 sm:$0xff]  }
  0x34   :  { %709 = vmatpush1.bf16.msra.mxu1 %v8229_v4  ;;  %v8232_v6 = vld [vmem:[#allocation2 + $0x2c4] ss:$16 sps:$4 sm:$0xff]   ;;  %v8234_v7 = vld [vmem:[#allocation2 + $0xc0] ss:$16 sps:$4 sm:$0xff]   ;;  %669 = vmatprep.subr.bf16.mxu0 %v8230_v5  ;;  %v8275_v36 = vld [vmem:[#allocation2 + $0xe8] ss:$16 sps:$4 sm:$0xff]  }
  0x35   :  { %v8235_v8 = vld [vmem:[#allocation2 + $0x2c0] ss:$16 sps:$4 sm:$0xff]   ;;  %710 = vmatprep.subr.bf16.mxu1 %v8232_v6  ;;  %v8236_v9 = vld [vmem:[#allocation2 + $0xa4] ss:$16 sps:$4 sm:$0xff]   ;;  %v8283_v39 = vld [vmem:[#allocation2 + $0xcc] ss:$16 sps:$4 sm:$0xff]  }
  0x36   :  { %v8238_v10 = vld [vmem:[#allocation2 + $0x2a4] ss:$16 sps:$4 sm:$0xff]   ;;  %v8240_v11 = vld [vmem:[#allocation2 + $0xa0] ss:$16 sps:$4 sm:$0xff]   ;;  %v8281_v40 = vld [vmem:[#allocation2 + $0xc8] ss:$16 sps:$4 sm:$0xff]  }
  0x37   :  { %v8241_v12 = vld [vmem:[#allocation2 + $0x2a0] ss:$16 sps:$4 sm:$0xff]   ;;  %670 = vmatpush1.bf16.msra.mxu0 %v8234_v7  ;;  %v8242_v13 = vld [vmem:[#allocation2 + $0x84] ss:$16 sps:$4 sm:$0xff]   ;;  %v8289_v43 = vld [vmem:[#allocation2 + $0xac] ss:$16 sps:$4 sm:$0xff]  }
  0x38   :  { %711 = vmatpush1.bf16.msra.mxu1 %v8235_v8  ;;  %671 = vmatprep.subr.bf16.mxu0 %v8236_v9  ;;  %v8244_v14 = vld [vmem:[#allocation2 + $0x284] ss:$16 sps:$4 sm:$0xff]   ;;  %v8246_v15 = vld [vmem:[#allocation2 + $0x80] ss:$16 sps:$4 sm:$0xff]   ;;  %v8287_v44 = vld [vmem:[#allocation2 + $0xa8] ss:$16 sps:$4 sm:$0xff]  }
  0x39   :  { %712 = vmatprep.subr.bf16.mxu1 %v8238_v10  ;;  %v8247_v16 = vld [vmem:[#allocation2 + $0x280] ss:$16 sps:$4 sm:$0xff]   ;;  %v8248_v17 = vld [vmem:[#allocation2 + $0x64] ss:$16 sps:$4 sm:$0xff]   ;;  %v8295_v47 = vld [vmem:[#allocation2 + $0x8c] ss:$16 sps:$4 sm:$0xff]  }
  0x3a   :  { %v8250_v18 = vld [vmem:[#allocation2 + $0x264] ss:$16 sps:$4 sm:$0xff]   ;;  %v8252_v19 = vld [vmem:[#allocation2 + $0x60] ss:$16 sps:$4 sm:$0xff]   ;;  %v8293_v48 = vld [vmem:[#allocation2 + $0x88] ss:$16 sps:$4 sm:$0xff]  }
  0x3b   :  { %672 = vmatpush1.bf16.msra.mxu0 %v8240_v11  ;;  %v8253_v20 = vld [vmem:[#allocation2 + $0x260] ss:$16 sps:$4 sm:$0xff]   ;;  %v8254_v21 = vld [vmem:[#allocation2 + $0x44] ss:$16 sps:$4 sm:$0xff]   ;;  %v8301_v53 = vld [vmem:[#allocation2 + $0x6c] ss:$16 sps:$4 sm:$0xff]  }
  0x3c   :  { %713 = vmatpush1.bf16.msra.mxu1 %v8241_v12  ;;  %673 = vmatprep.subr.bf16.mxu0 %v8242_v13  ;;  %v8256_v22 = vld [vmem:[#allocation2 + $0x244] ss:$16 sps:$4 sm:$0xff]   ;;  %v8258_v23 = vld [vmem:[#allocation2 + $0x40] ss:$16 sps:$4 sm:$0xff]   ;;  %v8299_v54 = vld [vmem:[#allocation2 + $0x68] ss:$16 sps:$4 sm:$0xff]  }
  0x3d   :  { %714 = vmatprep.subr.bf16.mxu1 %v8244_v14  ;;  %v8259_v24 = vld [vmem:[#allocation2 + $0x240] ss:$16 sps:$4 sm:$0xff]   ;;  %v8260_v25 = vld [vmem:[#allocation2 + $0x24] ss:$16 sps:$4 sm:$0xff]   ;;  %v8307_v57 = vld [vmem:[#allocation2 + $0x4c] ss:$16 sps:$4 sm:$0xff]  }
  0x3e   :  { %v8262_v26 = vld [vmem:[#allocation2 + $0x224] ss:$16 sps:$4 sm:$0xff]   ;;  %v8264_v27 = vld [vmem:[#allocation2 + $0x20] ss:$16 sps:$4 sm:$0xff]   ;;  %v8305_v58 = vld [vmem:[#allocation2 + $0x48] ss:$16 sps:$4 sm:$0xff]  }
  0x3f   :  { %674 = vmatpush1.bf16.msra.mxu0 %v8246_v15  ;;  %v8265_v28 = vld [vmem:[#allocation2 + $0x220] ss:$16 sps:$4 sm:$0xff]   ;;  %v8266_v29 = vld [vmem:[#allocation2 + $0x4] ss:$16 sps:$4 sm:$0xff]   ;;  %v8313_v61 = vld [vmem:[#allocation2 + $0x2c] ss:$16 sps:$4 sm:$0xff]  }
  0x40   :  { %715 = vmatpush1.bf16.msra.mxu1 %v8247_v16  ;;  %675 = vmatprep.subr.bf16.mxu0 %v8248_v17  ;;  %v8268_v30 = vld [vmem:[#allocation2 + $0x204] ss:$16 sps:$4 sm:$0xff]   ;;  %v8270_v31 = vld [vmem:[#allocation2] ss:$16 sps:$4 sm:$0xff]   ;;  %v8311_v62 = vld [vmem:[#allocation2 + $0x28] ss:$16 sps:$4 sm:$0xff]  }
  0x41   :  { %716 = vmatprep.subr.bf16.mxu1 %v8250_v18  ;;  %v8271_v32 = vld [vmem:[#allocation2 + $0x200] ss:$16 sps:$4 sm:$0xff]   ;;  %v8272_v33 = vld [vmem:[#allocation2 + $0x1e4] ss:$16 sps:$4 sm:$0xff]   ;;  %v8319_v2 = vld [vmem:[#allocation2 + $0xc] ss:$16 sps:$4 sm:$0xff]  }
  0x42   :  { %v8278_v37 = vld [vmem:[#allocation2 + $0x1e0] ss:$16 sps:$4 sm:$0xff]   ;;  %v8279_v38 = vld [vmem:[#allocation2 + $0x1c4] ss:$16 sps:$4 sm:$0xff]   ;;  %v8317_v3 = vld [vmem:[#allocation2 + $0x8] ss:$16 sps:$4 sm:$0xff]  }
  0x43   :  { %676 = vmatpush1.bf16.msra.mxu0 %v8252_v19  ;;  %v8284_v41 = vld [vmem:[#allocation2 + $0x1c0] ss:$16 sps:$4 sm:$0xff]   ;;  %v8285_v42 = vld [vmem:[#allocation2 + $0x1a4] ss:$16 sps:$4 sm:$0xff]   ;;  %v8325_v5 = vld [vmem:[#allocation2 + $0x1ec] ss:$16 sps:$4 sm:$0xff]  }
  0x44   :  { %717 = vmatpush1.bf16.msra.mxu1 %v8253_v20  ;;  %677 = vmatprep.subr.bf16.mxu0 %v8254_v21  ;;  %v8290_v45 = vld [vmem:[#allocation2 + $0x1a0] ss:$16 sps:$4 sm:$0xff]   ;;  %v8291_v46 = vld [vmem:[#allocation2 + $0x184] ss:$16 sps:$4 sm:$0xff]   ;;  %v8328_v6 = vld [vmem:[#allocation2 + $0x2ec] ss:$16 sps:$4 sm:$0xff]  }
  0x45   :  { %718 = vmatprep.subr.bf16.mxu1 %v8256_v22  ;;  %v76_v49 = vld [vmem:[%s10096_s0] sm:$0xff]  ;;  %v8323_v8 = vld [vmem:[#allocation2 + $0x1e8] ss:$16 sps:$4 sm:$0xff]   ;;  %v8331_v10 = vld [vmem:[#allocation2 + $0x1cc] ss:$16 sps:$4 sm:$0xff]  }
  0x46   :  { %v8296_v50 = vld [vmem:[#allocation2 + $0x180] ss:$16 sps:$4 sm:$0xff]   ;;  %v8297_v51 = vld [vmem:[#allocation2 + $0x164] ss:$16 sps:$4 sm:$0xff]   ;;  %v7329_v52 = vcombine.high %v76_v49, %v76_v49  ;;  %v9726_v7 = vcombine.low %v76_v49, %v76_v49  ;;  %v8326_v9 = vld [vmem:[#allocation2 + $0x2e8] ss:$16 sps:$4 sm:$0xff]  }
  0x47   :  { %678 = vmatpush1.bf16.msra.mxu0 %v8258_v23  ;;  %v8302_v55 = vld [vmem:[#allocation2 + $0x160] ss:$16 sps:$4 sm:$0xff]   ;;  %v8303_v56 = vld [vmem:[#allocation2 + $0x144] ss:$16 sps:$4 sm:$0xff]   ;;  %v8334_v11 = vld [vmem:[#allocation2 + $0x2cc] ss:$16 sps:$4 sm:$0xff]  }
  0x48   :  { %719 = vmatpush1.bf16.msra.mxu1 %v8259_v24  ;;  %679 = vmatprep.subr.bf16.mxu0 %v8260_v25  ;;  %v8308_v59 = vld [vmem:[#allocation2 + $0x140] ss:$16 sps:$4 sm:$0xff]   ;;  %v8309_v60 = vld [vmem:[#allocation2 + $0x124] ss:$16 sps:$4 sm:$0xff]   ;;  %v8329_v12 = vld [vmem:[#allocation2 + $0x1c8] ss:$16 sps:$4 sm:$0xff]  }
  0x49   :  { %720 = vmatprep.subr.bf16.mxu1 %v8262_v26  ;;  %699 = vmatprep.mubr.bf16.mxu0 %v7329_v52  ;;  %v8314_v63 = vld [vmem:[#allocation2 + $0x120] ss:$16 sps:$4 sm:$0xff]   ;;  %v8315_v1 = vld [vmem:[#allocation2 + $0x104] ss:$16 sps:$4 sm:$0xff]   ;;  %v8332_v13 = vld [vmem:[#allocation2 + $0x2c8] ss:$16 sps:$4 sm:$0xff]  }
  0x4a   :  { %v8320_v4 = vld [vmem:[#allocation2 + $0x100] ss:$16 sps:$4 sm:$0xff]   ;;  %v8337_v14 = vld [vmem:[#allocation2 + $0x1ac] ss:$16 sps:$4 sm:$0xff]   ;;  %v8335_v16 = vld [vmem:[#allocation2 + $0x1a8] ss:$16 sps:$4 sm:$0xff]  }
  0x4b   :  { %680 = vmatpush1.bf16.msra.mxu0 %v8264_v27  ;;  %v8340_v15 = vld [vmem:[#allocation2 + $0x2ac] ss:$16 sps:$4 sm:$0xff]   ;;  %v8338_v17 = vld [vmem:[#allocation2 + $0x2a8] ss:$16 sps:$4 sm:$0xff]   ;;  %v8386_v49 = vld [vmem:[#allocation6 + $0x40] ss:$16 sps:$4 sm:$0xff]  }
  0x4c   :  { %721 = vmatpush1.bf16.msra.mxu1 %v8265_v28  ;;  %681 = vmatprep.subr.bf16.mxu0 %v8266_v29  ;;  %v8343_v18 = vld [vmem:[#allocation2 + $0x18c] ss:$16 sps:$4 sm:$0xff]   ;;  %v8341_v20 = vld [vmem:[#allocation2 + $0x188] ss:$16 sps:$4 sm:$0xff]  }
  0x4d   :  { %722 = vmatprep.subr.bf16.mxu1 %v8268_v30  ;;  %v8346_v19 = vld [vmem:[#allocation2 + $0x28c] ss:$16 sps:$4 sm:$0xff]   ;;  %v8344_v21 = vld [vmem:[#allocation2 + $0x288] ss:$16 sps:$4 sm:$0xff]  }
  0x4e   :  { %v8349_v22 = vld [vmem:[#allocation2 + $0x16c] ss:$16 sps:$4 sm:$0xff]   ;;  %v8347_v24 = vld [vmem:[#allocation2 + $0x168] ss:$16 sps:$4 sm:$0xff]  }
  0x4f   :  { %682 = vmatpush1.bf16.msra.mxu0 %v8270_v31  ;;  %v8352_v23 = vld [vmem:[#allocation2 + $0x26c] ss:$16 sps:$4 sm:$0xff]   ;;  %v8350_v25 = vld [vmem:[#allocation2 + $0x268] ss:$16 sps:$4 sm:$0xff]  }
  0x50   :  { %723 = vmatpush1.bf16.msra.mxu1 %v8271_v32  ;;  %683 = vmatprep.subr.bf16.mxu0 %v8272_v33  ;;  %v8355_v26 = vld [vmem:[#allocation2 + $0x14c] ss:$16 sps:$4 sm:$0xff]   ;;  %v8353_v28 = vld [vmem:[#allocation2 + $0x148] ss:$16 sps:$4 sm:$0xff]  }
  0x51   :  { %749 = vmatprep.subr.bf16.mxu1 %v8277_v34  ;;  %v8358_v27 = vld [vmem:[#allocation2 + $0x24c] ss:$16 sps:$4 sm:$0xff]   ;;  %v8356_v29 = vld [vmem:[#allocation2 + $0x248] ss:$16 sps:$4 sm:$0xff]  }
  0x52   :  { %v8361_v30 = vld [vmem:[#allocation2 + $0x12c] ss:$16 sps:$4 sm:$0xff]   ;;  %v8359_v32 = vld [vmem:[#allocation2 + $0x128] ss:$16 sps:$4 sm:$0xff]  }
  0x53   :  { %741 = vmatmul.mubr.bf16.vlgmr.msra.gmra.mxu1 %v9720_v35  ;;  %684 = vmatpush2.bf16.msra.mxu0 %v8278_v37  ;;  %v8364_v31 = vld [vmem:[#allocation2 + $0x22c] ss:$16 sps:$4 sm:$0xff]   ;;  %v8362_v33 = vld [vmem:[#allocation2 + $0x228] ss:$16 sps:$4 sm:$0xff]  }
  0x54   :  { %750 = vmatpush1.bf16.msra.mxu1 %v8275_v36  ;;  %685 = vmatprep.subr.bf16.mxu0 %v8279_v38  ;;  %v8367_v34 = vld [vmem:[#allocation2 + $0x10c] ss:$16 sps:$4 sm:$0xff]   ;;  %v8365_v37 = vld [vmem:[#allocation2 + $0x108] ss:$16 sps:$4 sm:$0xff]  }
  0x55   :  { %751 = vmatprep.subr.bf16.mxu1 %v8283_v39  ;;  %781 = vmatprep.mubr.bf16.mxu1 %v7329_v52  ;;  %v8370_v36 = vld [vmem:[#allocation2 + $0x20c] ss:$16 sps:$4 sm:$0xff]   ;;  %v8368_v38 = vld [vmem:[#allocation2 + $0x208] ss:$16 sps:$4 sm:$0xff]   ;;  %v8371_v39 = vld [vmem:[#allocation6 + $0xe0] ss:$16 sps:$4 sm:$0xff]  }
  0x56   :  { %v8394_v52 = vld [vmem:[#allocation6 + $0x4] ss:$16 sps:$4 sm:$0xff]  }
  0x57   :  { %686 = vmatpush2.bf16.msra.mxu0 %v8284_v41  ;;  %v8374_v41 = vld [vmem:[#allocation6 + $0xc0] ss:$16 sps:$4 sm:$0xff]  }
  0x58   :  { %752 = vmatpush1.bf16.msra.mxu1 %v8281_v40  ;;  %687 = vmatprep.subr.bf16.mxu0 %v8285_v42  ;;  %v8373_v40 = vld [vmem:[#allocation6 + $0xe4] ss:$16 sps:$4 sm:$0xff]  }
  0x59   :  { %753 = vmatprep.subr.bf16.mxu1 %v8289_v43  ;;  %v8376_v42 = vld [vmem:[#allocation6 + $0xc4] ss:$16 sps:$4 sm:$0xff]  }
  0x5a   :  { %v8379_v43 = vld [vmem:[#allocation6 + $0xa4] ss:$16 sps:$4 sm:$0xff]  }
  0x5b   :  { %688 = vmatpush2.bf16.msra.mxu0 %v8290_v45  ;;  %v8382_v45 = vld [vmem:[#allocation6 + $0x84] ss:$16 sps:$4 sm:$0xff]  }
  0x5c   :  { %754 = vmatpush1.bf16.msra.mxu1 %v8287_v44  ;;  %689 = vmatprep.subr.bf16.mxu0 %v8291_v46  ;;  %v8377_v44 = vld [vmem:[#allocation6 + $0xa0] ss:$16 sps:$4 sm:$0xff]  }
  0x5d   :  { %755 = vmatprep.subr.bf16.mxu1 %v8295_v47  ;;  %v8380_v46 = vld [vmem:[#allocation6 + $0x80] ss:$16 sps:$4 sm:$0xff]   ;;  %v8385_v47 = vld [vmem:[#allocation6 + $0x64] ss:$16 sps:$4 sm:$0xff]  }
  0x5f   :  { %690 = vmatpush2.bf16.msra.mxu0 %v8296_v50  ;;  %v8391_v50 = vld [vmem:[#allocation6 + $0x24] ss:$16 sps:$4 sm:$0xff]  }
  0x60   :  { %756 = vmatpush1.bf16.msra.mxu1 %v8293_v48  ;;  %691 = vmatprep.subr.bf16.mxu0 %v8297_v51  ;;  %v8383_v48 = vld [vmem:[#allocation6 + $0x60] ss:$16 sps:$4 sm:$0xff]  }
  0x61   :  { %757 = vmatprep.subr.bf16.mxu1 %v8301_v53  ;;  %v8389_v51 = vld [vmem:[#allocation6 + $0x20] ss:$16 sps:$4 sm:$0xff]  }
  0x62   :  { %v8392_v53 = vld [vmem:[#allocation6] ss:$16 sps:$4 sm:$0xff]  }
  0x63   :  { %692 = vmatpush2.bf16.msra.mxu0 %v8302_v55  ;;  %v8400_v55 = vld [vmem:[#allocation6 + $0x2e4] ss:$16 sps:$4 sm:$0xff]  }
  0x64   :  { %758 = vmatpush1.bf16.msra.mxu1 %v8299_v54  ;;  %693 = vmatprep.subr.bf16.mxu0 %v8303_v56  ;;  %v8397_v54 = vld [vmem:[#allocation6 + $0x1e4] ss:$16 sps:$4 sm:$0xff]   ;;  %v8395_v56 = vld [vmem:[#allocation6 + $0x1e0] ss:$16 sps:$4 sm:$0xff]  }
  0x65   :  { %759 = vmatprep.subr.bf16.mxu1 %v8307_v57  ;;  %v8398_v57 = vld [vmem:[#allocation6 + $0x2e0] ss:$16 sps:$4 sm:$0xff]  }
  0x67   :  { %694 = vmatpush2.bf16.msra.mxu0 %v8308_v59  ;;  %v8403_v59 = vld [vmem:[#allocation6 + $0x1c4] ss:$16 sps:$4 sm:$0xff]  }
  0x68   :  { %760 = vmatpush1.bf16.msra.mxu1 %v8305_v58  ;;  %695 = vmatprep.subr.bf16.mxu0 %v8309_v60  ;;  %v8401_v58 = vld [vmem:[#allocation6 + $0x1c0] ss:$16 sps:$4 sm:$0xff]  }
  0x69   :  { %761 = vmatprep.subr.bf16.mxu1 %v8313_v61  ;;  %v8404_v60 = vld [vmem:[#allocation6 + $0x2c0] ss:$16 sps:$4 sm:$0xff]   ;;  %v8406_v61 = vld [vmem:[#allocation6 + $0x2c4] ss:$16 sps:$4 sm:$0xff]  }
  0x6b   :  { %696 = vmatpush2.bf16.msra.mxu0 %v8314_v63  ;;  %v8409_v63 = vld [vmem:[#allocation6 + $0x1a4] ss:$16 sps:$4 sm:$0xff]  }
  0x6c   :  { %762 = vmatpush1.bf16.msra.mxu1 %v8311_v62  ;;  %697 = vmatprep.subr.bf16.mxu0 %v8315_v1  ;;  %v8407_v62 = vld [vmem:[#allocation6 + $0x1a0] ss:$16 sps:$4 sm:$0xff]  }
  0x6d   :  { %763 = vmatprep.subr.bf16.mxu1 %v8319_v2  ;;  %v8410_v1 = vld [vmem:[#allocation6 + $0x2a0] ss:$16 sps:$4 sm:$0xff]   ;;  %v8412_v2 = vld [vmem:[#allocation6 + $0x2a4] ss:$16 sps:$4 sm:$0xff]  }
  0x6f   :  { %698 = vmatpush2.bf16.msra.mxu0 %v8320_v4  ;;  %v8418_v4 = vld [vmem:[#allocation6 + $0x284] ss:$16 sps:$4 sm:$0xff]  }
  0x70   :  { %764 = vmatpush1.bf16.msra.mxu1 %v8317_v3  ;;  %790 = vmatprep.subr.bf16.mxu0 %v8328_v6  ;;  %v8415_v3 = vld [vmem:[#allocation6 + $0x184] ss:$16 sps:$4 sm:$0xff]   ;;  %v8416_v6 = vld [vmem:[#allocation6 + $0x280] ss:$16 sps:$4 sm:$0xff]  }
  0x71   :  { %765 = vmatprep.subr.bf16.mxu1 %v8325_v5  ;;  %v8413_v5 = vld [vmem:[#allocation6 + $0x180] ss:$16 sps:$4 sm:$0xff]  }
  0x72   :  { %700 = vmatmul.mubr.bf16.vlgmr.msra.gmra.mxu0 %v9726_v7 }
  0x73   :  { %791 = vmatpush1.bf16.msra.mxu0 %v8326_v9  ;;  %822 = vmatprep.mubr.bf16.mxu0 %v9673_v0  ;;  %v8419_v9 = vld [vmem:[#allocation6 + $0x160] ss:$16 sps:$4 sm:$0xff]  }
  0x74   :  { %766 = vmatpush2.bf16.msra.mxu1 %v8323_v8  ;;  %792 = vmatprep.subr.bf16.mxu0 %v8334_v11  ;;  %v8424_v8 = vld [vmem:[#allocation6 + $0x264] ss:$16 sps:$4 sm:$0xff]  }
  0x75   :  { %767 = vmatprep.subr.bf16.mxu1 %v8331_v10  ;;  %v8422_v10 = vld [vmem:[#allocation6 + $0x260] ss:$16 sps:$4 sm:$0xff]   ;;  %v8427_v11 = vld [vmem:[#allocation6 + $0x144] ss:$16 sps:$4 sm:$0xff]  }
  0x77   :  { %793 = vmatpush1.bf16.msra.mxu0 %v8332_v13  ;;  %v8425_v13 = vld [vmem:[#allocation6 + $0x140] ss:$16 sps:$4 sm:$0xff]  }
  0x78   :  { %768 = vmatpush2.bf16.msra.mxu1 %v8329_v12  ;;  %794 = vmatprep.subr.bf16.mxu0 %v8340_v15  ;;  %v8430_v12 = vld [vmem:[#allocation6 + $0x244] ss:$16 sps:$4 sm:$0xff]  }
  0x79   :  { %769 = vmatprep.subr.bf16.mxu1 %v8337_v14  ;;  %v8428_v14 = vld [vmem:[#allocation6 + $0x240] ss:$16 sps:$4 sm:$0xff]   ;;  %v8433_v15 = vld [vmem:[#allocation6 + $0x124] ss:$16 sps:$4 sm:$0xff]  }
  0x7b   :  { %795 = vmatpush1.bf16.msra.mxu0 %v8338_v17  ;;  %v8431_v17 = vld [vmem:[#allocation6 + $0x120] ss:$16 sps:$4 sm:$0xff]  }
  0x7c   :  { %770 = vmatpush2.bf16.msra.mxu1 %v8335_v16  ;;  %796 = vmatprep.subr.bf16.mxu0 %v8346_v19  ;;  %v8436_v16 = vld [vmem:[#allocation6 + $0x224] ss:$16 sps:$4 sm:$0xff]  }
  0x7d   :  { %771 = vmatprep.subr.bf16.mxu1 %v8343_v18  ;;  %v8434_v18 = vld [vmem:[#allocation6 + $0x220] ss:$16 sps:$4 sm:$0xff]   ;;  %v8439_v19 = vld [vmem:[#allocation6 + $0x104] ss:$16 sps:$4 sm:$0xff]  }
  0x7f   :  { %797 = vmatpush1.bf16.msra.mxu0 %v8344_v21  ;;  %v8437_v21 = vld [vmem:[#allocation6 + $0x100] ss:$16 sps:$4 sm:$0xff]  }
  0x80   :  { %772 = vmatpush2.bf16.msra.mxu1 %v8341_v20  ;;  %798 = vmatprep.subr.bf16.mxu0 %v8352_v23  ;;  %v8442_v20 = vld [vmem:[#allocation6 + $0x204] ss:$16 sps:$4 sm:$0xff]  }
  0x81   :  { %773 = vmatprep.subr.bf16.mxu1 %v8349_v22  ;;  %v8440_v22 = vld [vmem:[#allocation6 + $0x200] ss:$16 sps:$4 sm:$0xff]   ;;  %v8445_v23 = vld [vmem:[#allocation6 + $0x3e4] ss:$16 sps:$4 sm:$0xff]  }
  0x83   :  { %799 = vmatpush1.bf16.msra.mxu0 %v8350_v25  ;;  %v8443_v25 = vld [vmem:[#allocation6 + $0x3e0] ss:$16 sps:$4 sm:$0xff]  }
  0x84   :  { %774 = vmatpush2.bf16.msra.mxu1 %v8347_v24  ;;  %800 = vmatprep.subr.bf16.mxu0 %v8358_v27  ;;  %v8448_v24 = vld [vmem:[#allocation6 + $0xec] ss:$16 sps:$4 sm:$0xff]   ;;  %v8451_v27 = vld [vmem:[#allocation6 + $0x3c4] ss:$16 sps:$4 sm:$0xff]  }
  0x85   :  { %775 = vmatprep.subr.bf16.mxu1 %v8355_v26  ;;  %v8449_v26 = vld [vmem:[#allocation6 + $0x3c0] ss:$16 sps:$4 sm:$0xff]  }
  0x87   :  { %801 = vmatpush1.bf16.msra.mxu0 %v8356_v29  ;;  %v8457_v29 = vld [vmem:[#allocation6 + $0x3a4] ss:$16 sps:$4 sm:$0xff]  }
  0x88   :  { %776 = vmatpush2.bf16.msra.mxu1 %v8353_v28  ;;  %802 = vmatprep.subr.bf16.mxu0 %v8364_v31  ;;  %v8455_v28 = vld [vmem:[#allocation6 + $0x3a0] ss:$16 sps:$4 sm:$0xff]   ;;  %v8463_v31 = vld [vmem:[#allocation6 + $0x384] ss:$16 sps:$4 sm:$0xff]  }
  0x89   :  { %777 = vmatprep.subr.bf16.mxu1 %v8361_v30  ;;  %v8461_v30 = vld [vmem:[#allocation6 + $0x380] ss:$16 sps:$4 sm:$0xff]  }
  0x8b   :  { %803 = vmatpush1.bf16.msra.mxu0 %v8362_v33  ;;  %v8469_v33 = vld [vmem:[#allocation6 + $0x364] ss:$16 sps:$4 sm:$0xff]  }
  0x8c   :  { %778 = vmatpush2.bf16.msra.mxu1 %v8359_v32  ;;  %804 = vmatprep.subr.bf16.mxu0 %v8370_v36  ;;  %v8467_v32 = vld [vmem:[#allocation6 + $0x360] ss:$16 sps:$4 sm:$0xff]   ;;  %v8475_v36 = vld [vmem:[#allocation6 + $0x344] ss:$16 sps:$4 sm:$0xff]  }
  0x8d   :  { %779 = vmatprep.subr.bf16.mxu1 %v8367_v34  ;;  %v8473_v34 = vld [vmem:[#allocation6 + $0x340] ss:$16 sps:$4 sm:$0xff]  }
  0x8f   :  { %805 = vmatpush1.bf16.msra.mxu0 %v8368_v38  ;;  %v8481_v38 = vld [vmem:[#allocation6 + $0x324] ss:$16 sps:$4 sm:$0xff]  }
  0x90   :  { %780 = vmatpush2.bf16.msra.mxu1 %v8365_v37  ;;  %1817 = vmatprep.subr.bf16.mxu0 %v8373_v40  ;;  %v8479_v37 = vld [vmem:[#allocation6 + $0x320] ss:$16 sps:$4 sm:$0xff]   ;;  %v8487_v40 = vld [vmem:[#allocation6 + $0x304] ss:$16 sps:$4 sm:$0xff]  }
  0x91   :  { %1858 = vmatprep.subr.bf16.mxu1 %v8400_v55 }
  0x92   :  { %823 = vmatmul.mubr.bf16.vlgmr.msra.gmra.mxu0 %v9720_v35  ;;  %v8388_v35 = vld [vmem:[#allocation6 + $0x44] ss:$16 sps:$4 sm:$0xff]  }
  0x93   :  { %782 = vmatmul.mubr.bf16.vlgmr.msra.gmra.mxu1 %v9726_v7  ;;  %1818 = vmatpush1.bf16.msra.mxu0 %v8371_v39  ;;  %v8421_v7 = vld [vmem:[#allocation6 + $0x164] ss:$16 sps:$4 sm:$0xff]   ;;  %v8485_v39 = vld [vmem:[#allocation6 + $0x300] ss:$16 sps:$4 sm:$0xff]  }
  0x94   :  { %1819 = vmatprep.subr.bf16.mxu0 %v8376_v42  ;;  %1859 = vmatpush1.bf16.msra.mxu1 %v8398_v57 }
  0x95   :  { %1860 = vmatprep.subr.bf16.mxu1 %v8406_v61 }
  0x97   :  { %1820 = vmatpush1.bf16.msra.mxu0 %v8374_v41  ;;  %v8496_v41 = vld [vmem:[#allocation6 + $0x2ec] ss:$16 sps:$4 sm:$0xff]  }
  0x98   :  { %1821 = vmatprep.subr.bf16.mxu0 %v8379_v43  ;;  %1861 = vmatpush1.bf16.msra.mxu1 %v8404_v60 }
  0x99   :  { %1862 = vmatprep.subr.bf16.mxu1 %v8412_v2 }
  0x9b   :  { %1822 = vmatpush1.bf16.msra.mxu0 %v8377_v44 }
  0x9c   :  { %1823 = vmatprep.subr.bf16.mxu0 %v8382_v45  ;;  %1863 = vmatpush1.bf16.msra.mxu1 %v8410_v1 }
  0x9d   :  { %1864 = vmatprep.subr.bf16.mxu1 %v8418_v4 }
  0x9f   :  { %1824 = vmatpush1.bf16.msra.mxu0 %v8380_v46 }
  0xa0   :  { %1825 = vmatprep.subr.bf16.mxu0 %v8385_v47  ;;  %1865 = vmatpush1.bf16.msra.mxu1 %v8416_v6 }
  0xa1   :  { %1866 = vmatprep.subr.bf16.mxu1 %v8424_v8 }
  0xa3   :  { %1826 = vmatpush1.bf16.msra.mxu0 %v8383_v48 }
  0xa4   :  { %1827 = vmatprep.subr.bf16.mxu0 %v8388_v35  ;;  %1867 = vmatpush1.bf16.msra.mxu1 %v8422_v10 }
  0xa5   :  { %1868 = vmatprep.subr.bf16.mxu1 %v8430_v12 }
  0xa7   :  { %1828 = vmatpush1.bf16.msra.mxu0 %v8386_v49 }
  0xa8   :  { %1829 = vmatprep.subr.bf16.mxu0 %v8391_v50  ;;  %1869 = vmatpush1.bf16.msra.mxu1 %v8428_v14 }
  0xa9   :  { %1870 = vmatprep.subr.bf16.mxu1 %v8436_v16 }
  0xab   :  { %1830 = vmatpush1.bf16.msra.mxu0 %v8389_v51 }
  0xac   :  { %1831 = vmatprep.subr.bf16.mxu0 %v8394_v52  ;;  %1871 = vmatpush1.bf16.msra.mxu1 %v8434_v18 }
  0xad   :  { %1872 = vmatprep.subr.bf16.mxu1 %v8442_v20 }
  0xaf   :  { %1832 = vmatpush1.bf16.msra.mxu0 %v8392_v53 }
  0xb0   :  { %1833 = vmatprep.subr.bf16.mxu0 %v8397_v54  ;;  %1873 = vmatpush1.bf16.msra.mxu1 %v8440_v22 }
  0xb1   :  { %1874 = vmatprep.subr.bf16.mxu1 %v8445_v23 }
  0xb3   :  { %1834 = vmatpush2.bf16.msra.mxu0 %v8395_v56 }
  0xb4   :  { %1835 = vmatprep.subr.bf16.mxu0 %v8403_v59  ;;  %1875 = vmatpush2.bf16.msra.mxu1 %v8443_v25 }
  0xb5   :  { %1876 = vmatprep.subr.bf16.mxu1 %v8451_v27 }
  0xb7   :  { %1836 = vmatpush2.bf16.msra.mxu0 %v8401_v58 }
  0xb8   :  { %1837 = vmatprep.subr.bf16.mxu0 %v8409_v63  ;;  %1877 = vmatpush2.bf16.msra.mxu1 %v8449_v26 }
  0xb9   :  { %1878 = vmatprep.subr.bf16.mxu1 %v8457_v29 }
  0xbb   :  { %1838 = vmatpush2.bf16.msra.mxu0 %v8407_v62 }
  0xbc   :  { %1839 = vmatprep.subr.bf16.mxu0 %v8415_v3  ;;  %1879 = vmatpush2.bf16.msra.mxu1 %v8455_v28 }
  0xbd   :  { %1880 = vmatprep.subr.bf16.mxu1 %v8463_v31 }
  0xbf   :  { %1840 = vmatpush2.bf16.msra.mxu0 %v8413_v5 }
  0xc0   :  { %1841 = vmatprep.subr.bf16.mxu0 %v8421_v7  ;;  %1881 = vmatpush2.bf16.msra.mxu1 %v8461_v30 }
  0xc1   :  { %1882 = vmatprep.subr.bf16.mxu1 %v8469_v33 }
  0xc3   :  { %1842 = vmatpush2.bf16.msra.mxu0 %v8419_v9 }
  0xc4   :  { %1843 = vmatprep.subr.bf16.mxu0 %v8427_v11  ;;  %1883 = vmatpush2.bf16.msra.mxu1 %v8467_v32 }
  0xc5   :  { %1884 = vmatprep.subr.bf16.mxu1 %v8475_v36 }
  0xc7   :  { %1844 = vmatpush2.bf16.msra.mxu0 %v8425_v13 }
  0xc8   :  { %1845 = vmatprep.subr.bf16.mxu0 %v8433_v15  ;;  %1885 = vmatpush2.bf16.msra.mxu1 %v8473_v34 }
  0xc9   :  { %1886 = vmatprep.subr.bf16.mxu1 %v8481_v38 }
  0xcb   :  { %1846 = vmatpush2.bf16.msra.mxu0 %v8431_v17 }
  0xcc   :  { %1847 = vmatprep.subr.bf16.mxu0 %v8439_v19  ;;  %1887 = vmatpush2.bf16.msra.mxu1 %v8479_v37 }
  0xcd   :  { %1888 = vmatprep.subr.bf16.mxu1 %v8487_v40 }
  0xcf   :  { %1848 = vmatpush2.bf16.msra.mxu0 %v8437_v21 }
  0xd0   :  { %1899 = vmatprep.subr.bf16.mxu0 %v8448_v24  ;;  %1889 = vmatpush2.bf16.msra.mxu1 %v8485_v39  ;;  %v923_v24 = vlaneseq }
  0xd1   :  { %1940 = vmatprep.subr.bf16.mxu1 %v8496_v41 }
  0xd2   :  { %v9754_v30 = vshrl.u32 %v923_v24, 7 }
  0xd4   :  { %v9762_v37 = vsub.s32 1, %v9754_v30  ;;  %v9765_v38 = vsub.s32 5, %v9754_v30 }
 0x113   :  { %v742_v42 = vpop.f32.mrf.mxu1 }
 0x115   :  { %v744_v43 = vpop.f32.mrf.mxu1 }
 0x117   :  { %v746_v44 = vpop.f32.mrf.mxu1 }
 0x119   :  { %v747_v45 = vpop.f32.mrf.mxu1 }
 0x132   :  { %v701_v46 = vpop.f32.mrf.mxu0 }
 0x133   :  { %v9732_v47 = vadd.f32 %v742_v42, %v701_v46 }
 0x134   :  { %v703_v48 = vpop.f32.mrf.mxu0 }
 0x135   :  { %v831_v35 = vrot.slane %v9732_v47, 4  ;;  %v855_v49 = vmul.f32 %v9732_v47, %v9732_v47  ;;  %v9737_v50 = vadd.f32 %v744_v43, %v703_v48  ;;  %v78_v43 = vld [vmem:[#allocation4] sm:$0xff]  ;;  %v9772_v48 = vsub.s32 0, %v9754_v30 }
 0x136   :  { %v705_v51 = vpop.f32.mrf.mxu0 }
 0x137   :  { %v832_v52 = vadd.f32 %v831_v35, %v9732_v47  ;;  %v859_v53 = vrot.slane %v855_v49, 4  ;;  %v837_v54 = vrot.slane %v9737_v50, 4  ;;  %v856_v55 = vmul.f32 %v9737_v50, %v9737_v50 }
 0x138   :  { %v706_v56 = vpop.f32.mrf.mxu0 }
 0x139   :  { %v833_v57 = vrot.slane %v832_v52, 2  ;;  %v860_v58 = vadd.f32 %v859_v53, %v855_v49  ;;  %v838_v59 = vadd.f32 %v837_v54, %v9737_v50  ;;  %v865_v60 = vrot.slane %v856_v55, 4 }
 0x13a   :  { %v972_v56 = vrot.slane %v78_v43, %v9765_v38 }
 0x13b   :  { %v834_v61 = vadd.f32 %v833_v57, %v832_v52  ;;  %v861_v62 = vrot.slane %v860_v58, 2  ;;  %v839_v63 = vrot.slane %v838_v59, 2  ;;  %v866_v1 = vadd.f32 %v865_v60, %v856_v55 }
 0x13c   :  { %v9776_v55 = vsub.s32 4, %v9754_v30  ;;  %v968_v57 = vrot.slane %v78_v43, %v9762_v37 }
 0x13d   :  { %v835_v2 = vrot.slane %v834_v61, 1  ;;  %v862_v3 = vadd.f32 %v861_v62, %v860_v58  ;;  %v840_v4 = vadd.f32 %v839_v63, %v838_v59  ;;  %v867_v5 = vrot.slane %v866_v1, 2 }
 0x13f   :  { %v836_v6 = vadd.f32 %v835_v2, %v834_v61  ;;  %v863_v7 = vrot.slane %v862_v3, 1  ;;  %v841_v8 = vrot.slane %v840_v4, 1  ;;  %v868_v9 = vadd.f32 %v867_v5, %v866_v1 }
 0x140   :  { %v992_v5 = vrot.slane %v972_v56, %v9762_v37 }
 0x141   :  { %v864_v10 = vadd.f32 %v863_v7, %v862_v3  ;;  %v9744_v11 = vmul.f32 0.125, %v836_v6  ;;  %v842_v12 = vadd.f32 %v841_v8, %v840_v4  ;;  %v869_v13 = vrot.slane %v868_v9, 1 }
 0x142   :  { %v988_v7 = vrot.slane %v968_v57, %v9762_v37 }
 0x143   :  { %v887_v14 = vmul.f32 0.125, %v864_v10  ;;  %v891_v15 = vmul.f32 %v9744_v11, %v9744_v11  ;;  %v870_v16 = vadd.f32 %v869_v13, %v868_v9  ;;  %v9748_v17 = vmul.f32 0.125, %v842_v12 }
 0x144   :  { %v917_v13 = vsub.f32 %v9732_v47, %v9744_v11 }
 0x145   :  { %v895_v18 = vsub.f32 %v887_v14, %v891_v15  ;;  %v888_v19 = vmul.f32 0.125, %v870_v16  ;;  %v892_v20 = vmul.f32 %v9748_v17, %v9748_v17  ;;  %v918_v14 = vsub.f32 %v9737_v50, %v9748_v17 }
 0x147   :  { %v899_v21 = vadd.f32 1e-05, %v895_v18  ;;  %v896_v22 = vsub.f32 %v888_v19, %v892_v20 }
 0x149   :  { %v900_v23 = vadd.f32 1e-05, %v896_v22  ;;  %9529 = vrsqrt.f32 %v899_v21 }
 0x14b   :  { %9531 = vrsqrt.f32 %v900_v23 }
 0x152   :  { %v824_v26 = vpop.f32.mrf.mxu0 }
 0x153   :  { %v783_v25 = vpop.f32.mrf.mxu1 }
 0x154   :  { %v9752_v27 = vadd.f32 %v824_v26, %v783_v25  ;;  %v826_v29 = vpop.f32.mrf.mxu0 }
 0x155   :  { %v785_v28 = vpop.f32.mrf.mxu1 }
 0x156   :  { %v843_v31 = vrot.slane %v9752_v27, 4  ;;  %v857_v32 = vmul.f32 %v9752_v27, %v9752_v27  ;;  %v9759_v33 = vadd.f32 %v826_v29, %v785_v28  ;;  %v828_v36 = vpop.f32.mrf.mxu0  ;;  %v9530_v44 = vpop.eup %9529 }
 0x157   :  { %v787_v34 = vpop.f32.mrf.mxu1 }
 0x158   :  { %v844_v39 = vadd.f32 %v843_v31, %v9752_v27  ;;  %v871_v40 = vrot.slane %v857_v32, 4  ;;  %v849_v41 = vrot.slane %v9759_v33, 4  ;;  %v858_v42 = vmul.f32 %v9759_v33, %v9759_v33  ;;  %v829_v46 = vpop.f32.mrf.mxu0  ;;  %v9532_v35 = vpop.eup %9531 }
 0x159   :  { %v788_v45 = vpop.f32.mrf.mxu1  ;;  %v911_v54 = vcombine.low %v9530_v44, %v9532_v35  ;;  %v8452_v44 = vld [vmem:[#allocation6 + $0xc8] ss:$16 sps:$4 sm:$0xff]   ;;  %v8466_v35 = vld [vmem:[#allocation6 + $0x8c] ss:$16 sps:$4 sm:$0xff]  }
 0x15a   :  { %v845_v49 = vrot.slane %v844_v39, 2  ;;  %v872_v51 = vadd.f32 %v871_v40, %v857_v32  ;;  %v850_v52 = vadd.f32 %v849_v41, %v9759_v33  ;;  %v877_v53 = vrot.slane %v858_v42, 4  ;;  %v8446_v32 = vld [vmem:[#allocation6 + $0xe8] ss:$16 sps:$4 sm:$0xff]   ;;  %v8460_v45 = vld [vmem:[#allocation6 + $0xac] ss:$16 sps:$4 sm:$0xff]  }
 0x15b   :  { %v915_v62 = vmul.f32 %v911_v54, %v78_v43  ;;  %v8458_v46 = vld [vmem:[#allocation6 + $0xa8] ss:$16 sps:$4 sm:$0xff]  }
 0x15c   :  { %v846_v58 = vadd.f32 %v845_v49, %v844_v39  ;;  %v873_v59 = vrot.slane %v872_v51, 2  ;;  %v851_v60 = vrot.slane %v850_v52, 2  ;;  %v878_v61 = vadd.f32 %v877_v53, %v858_v42  ;;  %v8454_v39 = vld [vmem:[#allocation6 + $0xcc] ss:$16 sps:$4 sm:$0xff]   ;;  %v8464_v49 = vld [vmem:[#allocation6 + $0x88] ss:$16 sps:$4 sm:$0xff]  }
 0x15d   :  { %v930_v4 = vrot.slane %v915_v62, %v9776_v55  ;;  %v926_v6 = vrot.slane %v915_v62, %v9772_v48  ;;  %v8478_v53 = vld [vmem:[#allocation6 + $0x4c] ss:$16 sps:$4 sm:$0xff]  }
 0x15e   :  { %v847_v63 = vrot.slane %v846_v58, 1  ;;  %v874_v1 = vadd.f32 %v873_v59, %v872_v51  ;;  %v852_v2 = vadd.f32 %v851_v60, %v850_v52  ;;  %v879_v3 = vrot.slane %v878_v61, 2  ;;  %v8472_v51 = vld [vmem:[#allocation6 + $0x6c] ss:$16 sps:$4 sm:$0xff]   ;;  %v8470_v52 = vld [vmem:[#allocation6 + $0x68] ss:$16 sps:$4 sm:$0xff]  }
 0x15f   :  { %v950_v15 = vrot.slane %v930_v4, %v9772_v48  ;;  %v946_v16 = vrot.slane %v926_v6, %v9772_v48  ;;  %v9797_v54 = vld [vmem:[#allocation4 + $0x8] sm:$0xff] }
 0x160   :  { %v848_v8 = vadd.f32 %v847_v63, %v846_v58  ;;  %v875_v9 = vrot.slane %v874_v1, 1  ;;  %v853_v10 = vrot.slane %v852_v2, 1  ;;  %v880_v12 = vadd.f32 %v879_v3, %v878_v61  ;;  %v8476_v58 = vld [vmem:[#allocation6 + $0x48] ss:$16 sps:$4 sm:$0xff]   ;;  %v8484_v60 = vld [vmem:[#allocation6 + $0x2c] ss:$16 sps:$4 sm:$0xff]  }
 0x161   :  { %v960_v22 = vmul.f32 %v950_v15, %v918_v14  ;;  %v959_v23 = vmul.f32 %v946_v16, %v917_v13  ;;  %v980_v61 = vrot.slane %v9797_v54, %v9765_v38  ;;  %v976_v62 = vrot.slane %v9797_v54, %v9762_v37  ;;  %v8490_v4 = vld [vmem:[#allocation6 + $0xc] ss:$16 sps:$4 sm:$0xff]  }
 0x162   :  { %v876_v18 = vadd.f32 %v875_v9, %v874_v1  ;;  %v9790_v19 = vmul.f32 0.125, %v848_v8  ;;  %v854_v20 = vadd.f32 %v853_v10, %v852_v2  ;;  %v881_v21 = vrot.slane %v880_v12, 1  ;;  %v8482_v1 = vld [vmem:[#allocation6 + $0x28] ss:$16 sps:$4 sm:$0xff]   ;;  %v8493_v15 = vld [vmem:[#allocation6 + $0x1ec] ss:$16 sps:$4 sm:$0xff]  }
 0x163   :  { %v1002_v11 = vadd.f32 %v992_v5, %v960_v22  ;;  %v1001_v28 = vadd.f32 %v988_v7, %v959_v23  ;;  %v1000_v5 = vrot.slane %v980_v61, %v9762_v37  ;;  %v996_v6 = vrot.slane %v976_v62, %v9762_v37  ;;  %v8494_v22 = vld [vmem:[#allocation6 + $0x2e8] ss:$16 sps:$4 sm:$0xff]   ;;  %v8544_v62 = vld [vmem:[#allocation6 + $0x3cc] ss:$16 sps:$4 sm:$0xff]  }
 0x164   :  { %v889_v24 = vmul.f32 0.125, %v876_v18  ;;  %v893_v25 = vmul.f32 %v9790_v19, %v9790_v19  ;;  %v882_v26 = vadd.f32 %v881_v21, %v880_v12  ;;  %v886_v47 = vmul.f32 0.125, %v854_v20  ;;  %v8488_v12 = vld [vmem:[#allocation6 + $0x8] ss:$16 sps:$4 sm:$0xff]  }
 0x165   :  { %v1006_v31 = vmax.f32 %v1002_v11, 0.0  ;;  %v1005_v34 = vmax.f32 %v1001_v28, 0.0  ;;  %v919_v7 = vsub.f32 %v9752_v27, %v9790_v19  ;;  %v8491_v21 = vld [vmem:[#allocation6 + $0x1e8] ss:$16 sps:$4 sm:$0xff]   ;;  %v8499_v19 = vld [vmem:[#allocation6 + $0x1cc] ss:$16 sps:$4 sm:$0xff]  }
 0x166   :  { %v897_v50 = vsub.f32 %v889_v24, %v893_v25  ;;  %v890_v17 = vmul.f32 0.125, %v882_v26  ;;  %v894_v29 = vmul.f32 %v886_v47, %v886_v47  ;;  %v920_v8 = vsub.f32 %v9759_v33, %v886_v47  ;;  %v8502_v24 = vld [vmem:[#allocation6 + $0x2cc] ss:$16 sps:$4 sm:$0xff]   ;;  %v8497_v25 = vld [vmem:[#allocation6 + $0x1c8] ss:$16 sps:$4 sm:$0xff]  }
 0x167   :  { %v1010_v41 = vpack.c.bf16 %v1006_v31, %v1006_v31  ;;  %v9794_v42 = vpack.c.bf16 %v1005_v34, %v1005_v34  ;;  %v8500_v26 = vld [vmem:[#allocation6 + $0x2c8] ss:$16 sps:$4 sm:$0xff]   ;;  %v8505_v47 = vld [vmem:[#allocation6 + $0x1ac] ss:$16 sps:$4 sm:$0xff]  }
 0x168   :  { %v901_v36 = vadd.f32 1e-05, %v897_v50  ;;  %v898_v40 = vsub.f32 %v890_v17, %v894_v29  ;;  %v8508_v11 = vld [vmem:[#allocation6 + $0x2ac] ss:$16 sps:$4 sm:$0xff]   ;;  %v8503_v28 = vld [vmem:[#allocation6 + $0x1a8] ss:$16 sps:$4 sm:$0xff]  }
 0x169   :  { %1849 = vmatprep.mubr.bf16.mxu0 %v1010_v41  ;;  %v8506_v50 = vld [vmem:[#allocation6 + $0x2a8] ss:$16 sps:$4 sm:$0xff]   ;;  %v8511_v17 = vld [vmem:[#allocation6 + $0x18c] ss:$16 sps:$4 sm:$0xff]  }
 0x16a   :  { %v902_v43 = vadd.f32 1e-05, %v898_v40  ;;  %9533 = vrsqrt.f32 %v901_v36  ;;  %1850 = vmatmul.mubr.bf16.vlgmr.msra.gmra.mxu0 %v9794_v42  ;;  %v8514_v29 = vld [vmem:[#allocation6 + $0x28c] ss:$16 sps:$4 sm:$0xff]   ;;  %v8509_v31 = vld [vmem:[#allocation6 + $0x188] ss:$16 sps:$4 sm:$0xff]  }
 0x16b   :  { %1900 = vmatpush1.bf16.msra.mxu0 %v8446_v32  ;;  %1931 = vmatprep.mubr.bf16.mxu0 %v1010_v41  ;;  %v8512_v32 = vld [vmem:[#allocation6 + $0x288] ss:$16 sps:$4 sm:$0xff]   ;;  %v8517_v34 = vld [vmem:[#allocation6 + $0x16c] ss:$16 sps:$4 sm:$0xff]  }
 0x16c   :  { %9535 = vrsqrt.f32 %v902_v43  ;;  %1901 = vmatprep.subr.bf16.mxu0 %v8454_v39  ;;  %v8520_v36 = vld [vmem:[#allocation6 + $0x26c] ss:$16 sps:$4 sm:$0xff]   ;;  %v8515_v39 = vld [vmem:[#allocation6 + $0x168] ss:$16 sps:$4 sm:$0xff]  }
 0x16d   :  { %v8518_v40 = vld [vmem:[#allocation6 + $0x268] ss:$16 sps:$4 sm:$0xff]   ;;  %v8523_v41 = vld [vmem:[#allocation6 + $0x14c] ss:$16 sps:$4 sm:$0xff]  }
 0x16e   :  { %v8526_v43 = vld [vmem:[#allocation6 + $0x24c] ss:$16 sps:$4 sm:$0xff]   ;;  %v8563_v61 = vld [vmem:[#allocation7 + $0x70] ss:$8 sps:$4 sm:$0xff]  }
 0x16f   :  { %1902 = vmatpush1.bf16.msra.mxu0 %v8452_v44  ;;  %v8521_v44 = vld [vmem:[#allocation6 + $0x148] ss:$16 sps:$4 sm:$0xff]  }
 0x170   :  { %1903 = vmatprep.subr.bf16.mxu0 %v8460_v45  ;;  %v8524_v45 = vld [vmem:[#allocation6 + $0x248] ss:$16 sps:$4 sm:$0xff]  }
 0x173   :  { %1904 = vmatpush1.bf16.msra.mxu0 %v8458_v46  ;;  %v8529_v46 = vld [vmem:[#allocation6 + $0x12c] ss:$16 sps:$4 sm:$0xff]  }
 0x174   :  { %1905 = vmatprep.subr.bf16.mxu0 %v8466_v35  ;;  %v8532_v35 = vld [vmem:[#allocation6 + $0x22c] ss:$16 sps:$4 sm:$0xff]  }
 0x177   :  { %v9534_v56 = vpop.eup %9533  ;;  %1906 = vmatpush1.bf16.msra.mxu0 %v8464_v49  ;;  %v8527_v49 = vld [vmem:[#allocation6 + $0x128] ss:$16 sps:$4 sm:$0xff]  }
 0x178   :  { %1907 = vmatprep.subr.bf16.mxu0 %v8472_v51  ;;  %v8530_v51 = vld [vmem:[#allocation6 + $0x228] ss:$16 sps:$4 sm:$0xff]  }
 0x179   :  { %v9536_v57 = vpop.eup %9535 }
 0x17a   :  { %v912_v59 = vcombine.low %v9534_v56, %v9536_v57  ;;  %v8533_v56 = vld [vmem:[#allocation6 + $0x108] ss:$16 sps:$4 sm:$0xff]  }
 0x17b   :  { %1908 = vmatpush1.bf16.msra.mxu0 %v8470_v52  ;;  %v8535_v52 = vld [vmem:[#allocation6 + $0x10c] ss:$16 sps:$4 sm:$0xff]   ;;  %v8536_v57 = vld [vmem:[#allocation6 + $0x208] ss:$16 sps:$4 sm:$0xff]  }
 0x17c   :  { %v916_v63 = vmul.f32 %v912_v59, %v9797_v54  ;;  %1909 = vmatprep.subr.bf16.mxu0 %v8478_v53  ;;  %v8538_v53 = vld [vmem:[#allocation6 + $0x20c] ss:$16 sps:$4 sm:$0xff]  }
 0x17d   :  { %v8565_v59 = vld [vmem:[#allocation7 + $0x74] ss:$8 sps:$4 sm:$0xff]  }
 0x17e   :  { %v938_v2 = vrot.slane %v916_v63, %v9776_v55  ;;  %v934_v3 = vrot.slane %v916_v63, %v9772_v48  ;;  %v8568_v63 = vld [vmem:[#allocation7 + $0x64] ss:$8 sps:$4 sm:$0xff]  }
 0x17f   :  { %1910 = vmatpush1.bf16.msra.mxu0 %v8476_v58  ;;  %v8541_v58 = vld [vmem:[#allocation6 + $0x3ec] ss:$16 sps:$4 sm:$0xff]  }
 0x180   :  { %v958_v9 = vrot.slane %v938_v2, %v9772_v48  ;;  %v954_v10 = vrot.slane %v934_v3, %v9772_v48  ;;  %1911 = vmatprep.subr.bf16.mxu0 %v8484_v60  ;;  %v8539_v60 = vld [vmem:[#allocation6 + $0x3e8] ss:$16 sps:$4 sm:$0xff]   ;;  %v8547_v3 = vld [vmem:[#allocation6 + $0x3ac] ss:$16 sps:$4 sm:$0xff]  }
 0x181   :  { %v8566_v2 = vld [vmem:[#allocation7 + $0x60] ss:$8 sps:$4 sm:$0xff]  }
 0x182   :  { %v962_v13 = vmul.f32 %v958_v9, %v920_v8  ;;  %v961_v14 = vmul.f32 %v954_v10, %v919_v7  ;;  %v8550_v7 = vld [vmem:[#allocation6 + $0x38c] ss:$16 sps:$4 sm:$0xff]   ;;  %v8548_v9 = vld [vmem:[#allocation6 + $0x388] ss:$16 sps:$4 sm:$0xff]  }
 0x183   :  { %1912 = vmatpush1.bf16.msra.mxu0 %v8482_v1  ;;  %v8542_v1 = vld [vmem:[#allocation6 + $0x3c8] ss:$16 sps:$4 sm:$0xff]   ;;  %v8574_v8 = vld [vmem:[#allocation7 + $0x44] ss:$8 sps:$4 sm:$0xff]  }
 0x184   :  { %v1004_v16 = vadd.f32 %v1000_v5, %v962_v13  ;;  %v1003_v18 = vadd.f32 %v996_v6, %v961_v14  ;;  %1913 = vmatprep.subr.bf16.mxu0 %v8490_v4  ;;  %v8571_v4 = vld [vmem:[#allocation7 + $0x54] ss:$8 sps:$4 sm:$0xff]   ;;  %v8545_v5 = vld [vmem:[#allocation6 + $0x3a8] ss:$16 sps:$4 sm:$0xff]  }
 0x185   :  { %v8569_v6 = vld [vmem:[#allocation7 + $0x50] ss:$8 sps:$4 sm:$0xff]   ;;  %v8553_v10 = vld [vmem:[#allocation6 + $0x36c] ss:$16 sps:$4 sm:$0xff]  }
 0x186   :  { %v1008_v20 = vmax.f32 %v1004_v16, 0.0  ;;  %v1007_v27 = vmax.f32 %v1003_v18, 0.0  ;;  %v8551_v13 = vld [vmem:[#allocation6 + $0x368] ss:$16 sps:$4 sm:$0xff]   ;;  %v8580_v16 = vld [vmem:[#allocation7 + $0x24] ss:$8 sps:$4 sm:$0xff]  }
 0x187   :  { %1914 = vmatpush1.bf16.msra.mxu0 %v8488_v12  ;;  %v8577_v12 = vld [vmem:[#allocation7 + $0x34] ss:$8 sps:$4 sm:$0xff]   ;;  %v8575_v14 = vld [vmem:[#allocation7 + $0x30] ss:$8 sps:$4 sm:$0xff]  }
 0x188   :  { %v1012_v33 = vpack.c.bf16 %v1008_v20, %v1008_v20  ;;  %v9813_v23 = vpack.c.bf16 %v1007_v27, %v1007_v27  ;;  %1915 = vmatprep.subr.bf16.mxu0 %v8493_v15  ;;  %v8556_v15 = vld [vmem:[#allocation6 + $0x34c] ss:$16 sps:$4 sm:$0xff]   ;;  %v8554_v18 = vld [vmem:[#allocation6 + $0x348] ss:$16 sps:$4 sm:$0xff]  }
 0x189   :  { %v8578_v20 = vld [vmem:[#allocation7 + $0x20] ss:$8 sps:$4 sm:$0xff]  }
 0x18a   :  { %1890 = vmatprep.mubr.bf16.mxu1 %v1012_v33  ;;  %v8557_v27 = vld [vmem:[#allocation6 + $0x328] ss:$16 sps:$4 sm:$0xff]  }
 0x18b   :  { %1891 = vmatmul.mubr.bf16.vlgmr.msra.gmra.mxu1 %v9813_v23  ;;  %1916 = vmatpush2.bf16.msra.mxu0 %v8491_v21  ;;  %v8559_v21 = vld [vmem:[#allocation6 + $0x32c] ss:$16 sps:$4 sm:$0xff]  }
 0x18c   :  { %1941 = vmatpush1.bf16.msra.mxu1 %v8494_v22  ;;  %1972 = vmatprep.mubr.bf16.mxu1 %v1012_v33  ;;  %v8583_v22 = vld [vmem:[#allocation7 + $0x14] ss:$8 sps:$4 sm:$0xff]  }
 0x18d   :  { %1917 = vmatprep.subr.bf16.mxu0 %v8499_v19  ;;  %1942 = vmatprep.subr.bf16.mxu1 %v8502_v24  ;;  %v8581_v19 = vld [vmem:[#allocation7 + $0x10] ss:$8 sps:$4 sm:$0xff]   ;;  %v8562_v33 = vld [vmem:[#allocation6 + $0x30c] ss:$16 sps:$4 sm:$0xff]  }
 0x18e   :  { %v8586_v24 = vld [vmem:[#allocation7 + $0x4] ss:$8 sps:$4 sm:$0xff]  }
 0x18f   :  { %1918 = vmatpush2.bf16.msra.mxu0 %v8497_v25  ;;  %v8560_v25 = vld [vmem:[#allocation6 + $0x308] ss:$16 sps:$4 sm:$0xff]  }
 0x190   :  { %1943 = vmatpush1.bf16.msra.mxu1 %v8500_v26  ;;  %1919 = vmatprep.subr.bf16.mxu0 %v8505_v47  ;;  %v8584_v26 = vld [vmem:[#allocation7] ss:$8 sps:$4 sm:$0xff]   ;;  %v8589_v47 = vld [vmem:[#allocation7 + $0xf4] ss:$8 sps:$4 sm:$0xff]  }
 0x191   :  { %1944 = vmatprep.subr.bf16.mxu1 %v8508_v11  ;;  %v8587_v11 = vld [vmem:[#allocation7 + $0xf0] ss:$8 sps:$4 sm:$0xff]  }
 0x193   :  { %1920 = vmatpush2.bf16.msra.mxu0 %v8503_v28  ;;  %v8592_v28 = vld [vmem:[#allocation7 + $0xe4] ss:$8 sps:$4 sm:$0xff]  }
 0x194   :  { %1945 = vmatpush1.bf16.msra.mxu1 %v8506_v50  ;;  %1921 = vmatprep.subr.bf16.mxu0 %v8511_v17  ;;  %v8590_v50 = vld [vmem:[#allocation7 + $0xe0] ss:$8 sps:$4 sm:$0xff]   ;;  %v8595_v17 = vld [vmem:[#allocation7 + $0xd4] ss:$8 sps:$4 sm:$0xff]  }
 0x195   :  { %1946 = vmatprep.subr.bf16.mxu1 %v8514_v29  ;;  %v8593_v29 = vld [vmem:[#allocation7 + $0xd0] ss:$8 sps:$4 sm:$0xff]  }
 0x197   :  { %1922 = vmatpush2.bf16.msra.mxu0 %v8509_v31  ;;  %v8598_v31 = vld [vmem:[#allocation7 + $0xc4] ss:$8 sps:$4 sm:$0xff]  }
 0x198   :  { %1947 = vmatpush1.bf16.msra.mxu1 %v8512_v32  ;;  %1923 = vmatprep.subr.bf16.mxu0 %v8517_v34  ;;  %v8611_v32 = vld [vmem:[#allocation7 + $0x170] ss:$8 sps:$4 sm:$0xff]   ;;  %v8613_v34 = vld [vmem:[#allocation7 + $0x174] ss:$8 sps:$4 sm:$0xff]  }
 0x199   :  { %1948 = vmatprep.subr.bf16.mxu1 %v8520_v36  ;;  %v8596_v36 = vld [vmem:[#allocation7 + $0xc0] ss:$8 sps:$4 sm:$0xff]  }
 0x19b   :  { %1924 = vmatpush2.bf16.msra.mxu0 %v8515_v39  ;;  %v8601_v39 = vld [vmem:[#allocation7 + $0xb4] ss:$8 sps:$4 sm:$0xff]  }
 0x19c   :  { %1949 = vmatpush1.bf16.msra.mxu1 %v8518_v40  ;;  %1925 = vmatprep.subr.bf16.mxu0 %v8523_v41  ;;  %v8614_v40 = vld [vmem:[#allocation7 + $0x160] ss:$8 sps:$4 sm:$0xff]   ;;  %v8616_v41 = vld [vmem:[#allocation7 + $0x164] ss:$8 sps:$4 sm:$0xff]  }
 0x19d   :  { %1950 = vmatprep.subr.bf16.mxu1 %v8526_v43  ;;  %v8619_v43 = vld [vmem:[#allocation7 + $0x154] ss:$8 sps:$4 sm:$0xff]  }
 0x19f   :  { %1926 = vmatpush2.bf16.msra.mxu0 %v8521_v44  ;;  %v8604_v44 = vld [vmem:[#allocation7 + $0xa4] ss:$8 sps:$4 sm:$0xff]  }
 0x1a0   :  { %1951 = vmatpush1.bf16.msra.mxu1 %v8524_v45  ;;  %1927 = vmatprep.subr.bf16.mxu0 %v8529_v46  ;;  %v8617_v45 = vld [vmem:[#allocation7 + $0x150] ss:$8 sps:$4 sm:$0xff]   ;;  %v8622_v46 = vld [vmem:[#allocation7 + $0x144] ss:$8 sps:$4 sm:$0xff]  }
 0x1a1   :  { %1952 = vmatprep.subr.bf16.mxu1 %v8532_v35  ;;  %v8602_v35 = vld [vmem:[#allocation7 + $0xa0] ss:$8 sps:$4 sm:$0xff]  }
 0x1a3   :  { %1928 = vmatpush2.bf16.msra.mxu0 %v8527_v49  ;;  %v8607_v49 = vld [vmem:[#allocation7 + $0x94] ss:$8 sps:$4 sm:$0xff]  }
 0x1a4   :  { %1953 = vmatpush1.bf16.msra.mxu1 %v8530_v51  ;;  %1929 = vmatprep.subr.bf16.mxu0 %v8535_v52  ;;  %v8620_v51 = vld [vmem:[#allocation7 + $0x140] ss:$8 sps:$4 sm:$0xff]   ;;  %v8625_v52 = vld [vmem:[#allocation7 + $0x134] ss:$8 sps:$4 sm:$0xff]  }
 0x1a5   :  { %1954 = vmatprep.subr.bf16.mxu1 %v8538_v53  ;;  %v8605_v53 = vld [vmem:[#allocation7 + $0x90] ss:$8 sps:$4 sm:$0xff]  }
 0x1a7   :  { %1930 = vmatpush2.bf16.msra.mxu0 %v8533_v56  ;;  %v8610_v56 = vld [vmem:[#allocation7 + $0x84] ss:$8 sps:$4 sm:$0xff]  }
 0x1a8   :  { %1955 = vmatpush1.bf16.msra.mxu1 %v8536_v57  ;;  %2391 = vmatprep.subr.bf16.mxu0 %v8565_v59  ;;  %v8623_v57 = vld [vmem:[#allocation7 + $0x130] ss:$8 sps:$4 sm:$0xff]   ;;  %v8608_v59 = vld [vmem:[#allocation7 + $0x80] ss:$8 sps:$4 sm:$0xff]  }
 0x1a9   :  { %1956 = vmatprep.subr.bf16.mxu1 %v8541_v58  ;;  %v8628_v58 = vld [vmem:[#allocation7 + $0x124] ss:$8 sps:$4 sm:$0xff]  }
 0x1aa   :  { %1932 = vmatmul.mubr.bf16.vlgmr.msra.gmra.mxu0 %v9794_v42  ;;  %v8572_v42 = vld [vmem:[#allocation7 + $0x40] ss:$8 sps:$4 sm:$0xff]  }
 0x1ab   :  { %2392 = vmatpush1.bf16.msra.mxu0 %v8563_v61  ;;  %v8631_v61 = vld [vmem:[#allocation7 + $0x114] ss:$8 sps:$4 sm:$0xff]  }
 0x1ac   :  { %1957 = vmatpush2.bf16.msra.mxu1 %v8539_v60  ;;  %2393 = vmatprep.subr.bf16.mxu0 %v8568_v63  ;;  %v8626_v60 = vld [vmem:[#allocation7 + $0x120] ss:$8 sps:$4 sm:$0xff]   ;;  %v8634_v63 = vld [vmem:[#allocation7 + $0x104] ss:$8 sps:$4 sm:$0xff]  }
 0x1ad   :  { %1958 = vmatprep.subr.bf16.mxu1 %v8544_v62  ;;  %v8629_v62 = vld [vmem:[#allocation7 + $0x110] ss:$8 sps:$4 sm:$0xff]  }
 0x1af   :  { %2394 = vmatpush1.bf16.msra.mxu0 %v8566_v2  ;;  %v8635_v2 = vld [vmem:[#allocation7 + $0x1f0] ss:$8 sps:$4 sm:$0xff]  }
 0x1b0   :  { %1959 = vmatpush2.bf16.msra.mxu1 %v8542_v1  ;;  %2395 = vmatprep.subr.bf16.mxu0 %v8571_v4  ;;  %v8632_v1 = vld [vmem:[#allocation7 + $0x100] ss:$8 sps:$4 sm:$0xff]   ;;  %v8640_v4 = vld [vmem:[#allocation2 + $0x3e4] ss:$16 sps:$4 sm:$0xff]  }
 0x1b1   :  { %1960 = vmatprep.subr.bf16.mxu1 %v8547_v3  ;;  %v8637_v3 = vld [vmem:[#allocation7 + $0x1f4] ss:$8 sps:$4 sm:$0xff]  }
 0x1b3   :  { %2396 = vmatpush1.bf16.msra.mxu0 %v8569_v6  ;;  %v8641_v6 = vld [vmem:[#allocation7 + $0x1e0] ss:$8 sps:$4 sm:$0xff]  }
 0x1b4   :  { %1961 = vmatpush2.bf16.msra.mxu1 %v8545_v5  ;;  %2397 = vmatprep.subr.bf16.mxu0 %v8574_v8  ;;  %v8643_v5 = vld [vmem:[#allocation7 + $0x1e4] ss:$8 sps:$4 sm:$0xff]   ;;  %v8647_v8 = vld [vmem:[#allocation7 + $0x1d0] ss:$8 sps:$4 sm:$0xff]  }
 0x1b5   :  { %1962 = vmatprep.subr.bf16.mxu1 %v8550_v7  ;;  %v8649_v7 = vld [vmem:[#allocation7 + $0x1d4] ss:$8 sps:$4 sm:$0xff]  }
 0x1b7   :  { %2398 = vmatpush1.bf16.msra.mxu0 %v8572_v42  ;;  %v8653_v42 = vld [vmem:[#allocation7 + $0x1c0] ss:$8 sps:$4 sm:$0xff]  }
 0x1b8   :  { %1963 = vmatpush2.bf16.msra.mxu1 %v8548_v9  ;;  %2399 = vmatprep.subr.bf16.mxu0 %v8577_v12  ;;  %v8655_v9 = vld [vmem:[#allocation7 + $0x1c4] ss:$8 sps:$4 sm:$0xff]   ;;  %v8659_v12 = vld [vmem:[#allocation7 + $0x1b0] ss:$8 sps:$4 sm:$0xff]  }
 0x1b9   :  { %1964 = vmatprep.subr.bf16.mxu1 %v8553_v10  ;;  %v8661_v10 = vld [vmem:[#allocation7 + $0x1b4] ss:$8 sps:$4 sm:$0xff]  }
 0x1bb   :  { %2400 = vmatpush1.bf16.msra.mxu0 %v8575_v14  ;;  %v8665_v14 = vld [vmem:[#allocation7 + $0x1a0] ss:$8 sps:$4 sm:$0xff]  }
 0x1bc   :  { %1965 = vmatpush2.bf16.msra.mxu1 %v8551_v13  ;;  %2401 = vmatprep.subr.bf16.mxu0 %v8580_v16  ;;  %v8667_v13 = vld [vmem:[#allocation7 + $0x1a4] ss:$8 sps:$4 sm:$0xff]   ;;  %v8671_v16 = vld [vmem:[#allocation7 + $0x190] ss:$8 sps:$4 sm:$0xff]  }
 0x1bd   :  { %1966 = vmatprep.subr.bf16.mxu1 %v8556_v15  ;;  %v8673_v15 = vld [vmem:[#allocation7 + $0x194] ss:$8 sps:$4 sm:$0xff]  }
 0x1bf   :  { %2402 = vmatpush1.bf16.msra.mxu0 %v8578_v20  ;;  %v8677_v20 = vld [vmem:[#allocation7 + $0x180] ss:$8 sps:$4 sm:$0xff]  }
 0x1c0   :  { %1967 = vmatpush2.bf16.msra.mxu1 %v8554_v18  ;;  %2403 = vmatprep.subr.bf16.mxu0 %v8583_v22  ;;  %v8679_v18 = vld [vmem:[#allocation7 + $0x184] ss:$8 sps:$4 sm:$0xff]  }
 0x1c1   :  { %1968 = vmatprep.subr.bf16.mxu1 %v8559_v21  ;;  %v8688_v21 = vld [vmem:[#allocation2 + $0x5e4] ss:$16 sps:$4 sm:$0xff]  }
 0x1c3   :  { %2404 = vmatpush1.bf16.msra.mxu0 %v8581_v19 }
 0x1c4   :  { %1969 = vmatpush2.bf16.msra.mxu1 %v8557_v27  ;;  %2405 = vmatprep.subr.bf16.mxu0 %v8586_v24  ;;  %v9819_v24 = vsub.s32 2, %v9754_v30 }
 0x1c5   :  { %1970 = vmatprep.subr.bf16.mxu1 %v8562_v33 }
 0x1c7   :  { %2406 = vmatpush1.bf16.msra.mxu0 %v8584_v26  ;;  %v9824_v26 = vld [vmem:[#allocation4] sm:$0xff] }
 0x1c8   :  { %1971 = vmatpush2.bf16.msra.mxu1 %v8560_v25  ;;  %2407 = vmatprep.subr.bf16.mxu0 %v8589_v47  ;;  %v9822_v25 = vsub.s32 6, %v9754_v30  ;;  %v1144_v47 = vrot.slane %v9824_v26, %v9819_v24 }
 0x1c9   :  { %2432 = vmatprep.subr.bf16.mxu1 %v8613_v34 }
 0x1cb   :  { %1973 = vmatmul.mubr.bf16.vlgmr.msra.gmra.mxu1 %v9813_v23  ;;  %2408 = vmatpush2.bf16.msra.mxu0 %v8587_v11  ;;  %v8599_v23 = vld [vmem:[#allocation7 + $0xb0] ss:$8 sps:$4 sm:$0xff]   ;;  %v1148_v11 = vrot.slane %v9824_v26, %v9822_v25 }
 0x1cc   :  { %2409 = vmatprep.subr.bf16.mxu0 %v8592_v28  ;;  %2433 = vmatpush1.bf16.msra.mxu1 %v8611_v32  ;;  %v1164_v28 = vrot.slane %v1144_v47, %v9819_v24 }
 0x1cd   :  { %2434 = vmatprep.subr.bf16.mxu1 %v8616_v41  ;;  %v9835_v41 = vld [vmem:[%s10096_s0 + $0xc] sm:$0xff] }
 0x1cf   :  { %2410 = vmatpush2.bf16.msra.mxu0 %v8590_v50  ;;  %v1168_v50 = vrot.slane %v1148_v11, %v9819_v24  ;;  %v8719_v11 = vld [vmem:[#allocation2 + $0x420] ss:$16 sps:$4 sm:$0xff]  }
 0x1d0   :  { %2411 = vmatprep.subr.bf16.mxu0 %v8595_v17  ;;  %2435 = vmatpush1.bf16.msra.mxu1 %v8614_v40 }
 0x1d1   :  { %2436 = vmatprep.subr.bf16.mxu1 %v8619_v43 }
 0x1d3   :  { %2412 = vmatpush2.bf16.msra.mxu0 %v8593_v29 }
 0x1d4   :  { %2413 = vmatprep.subr.bf16.mxu0 %v8598_v31  ;;  %2437 = vmatpush1.bf16.msra.mxu1 %v8617_v45  ;;  %v8638_v45 = vld [vmem:[#allocation2 + $0x3e0] ss:$16 sps:$4 sm:$0xff]  }
 0x1d5   :  { %2438 = vmatprep.subr.bf16.mxu1 %v8622_v46  ;;  %v9839_v46 = vcombine.high %v9835_v41, %v9835_v41 }
 0x1d7   :  { %2414 = vmatpush2.bf16.msra.mxu0 %v8596_v36 }
 0x1d8   :  { %2415 = vmatprep.subr.bf16.mxu0 %v8601_v39  ;;  %2439 = vmatpush1.bf16.msra.mxu1 %v8620_v51  ;;  %v8644_v51 = vld [vmem:[#allocation2 + $0x3c0] ss:$16 sps:$4 sm:$0xff]  }
 0x1d9   :  { %2440 = vmatprep.subr.bf16.mxu1 %v8625_v52  ;;  %v8652_v52 = vld [vmem:[#allocation2 + $0x3a4] ss:$16 sps:$4 sm:$0xff]  }
 0x1db   :  { %2416 = vmatpush2.bf16.msra.mxu0 %v8599_v23 }
 0x1dc   :  { %2417 = vmatprep.subr.bf16.mxu0 %v8604_v44  ;;  %2441 = vmatpush1.bf16.msra.mxu1 %v8623_v57  ;;  %v8656_v57 = vld [vmem:[#allocation2 + $0x380] ss:$16 sps:$4 sm:$0xff]  }
 0x1dd   :  { %2442 = vmatprep.subr.bf16.mxu1 %v8628_v58  ;;  %v8664_v58 = vld [vmem:[#allocation2 + $0x364] ss:$16 sps:$4 sm:$0xff]  }
 0x1df   :  { %2418 = vmatpush2.bf16.msra.mxu0 %v8602_v35 }
 0x1e0   :  { %2419 = vmatprep.subr.bf16.mxu0 %v8607_v49  ;;  %2443 = vmatpush1.bf16.msra.mxu1 %v8626_v60  ;;  %v8646_v49 = vld [vmem:[#allocation2 + $0x3c4] ss:$16 sps:$4 sm:$0xff]  }
 0x1e1   :  { %2444 = vmatprep.subr.bf16.mxu1 %v8631_v61  ;;  %v8670_v60 = vld [vmem:[#allocation2 + $0x344] ss:$16 sps:$4 sm:$0xff]   ;;  %v8668_v61 = vld [vmem:[#allocation2 + $0x340] ss:$16 sps:$4 sm:$0xff]  }
 0x1e3   :  { %2420 = vmatpush2.bf16.msra.mxu0 %v8605_v53  ;;  %v8650_v53 = vld [vmem:[#allocation2 + $0x3a0] ss:$16 sps:$4 sm:$0xff]  }
 0x1e4   :  { %2421 = vmatprep.subr.bf16.mxu0 %v8610_v56  ;;  %2445 = vmatpush1.bf16.msra.mxu1 %v8629_v62  ;;  %v8658_v56 = vld [vmem:[#allocation2 + $0x384] ss:$16 sps:$4 sm:$0xff]  }
 0x1e5   :  { %2446 = vmatprep.subr.bf16.mxu1 %v8634_v63  ;;  %v8676_v62 = vld [vmem:[#allocation2 + $0x324] ss:$16 sps:$4 sm:$0xff]   ;;  %v8674_v63 = vld [vmem:[#allocation2 + $0x320] ss:$16 sps:$4 sm:$0xff]  }
 0x1e7   :  { %2422 = vmatpush2.bf16.msra.mxu0 %v8608_v59  ;;  %v8662_v59 = vld [vmem:[#allocation2 + $0x360] ss:$16 sps:$4 sm:$0xff]  }
 0x1e8   :  { %2447 = vmatpush1.bf16.msra.mxu1 %v8632_v1  ;;  %3081 = vmatprep.subr.bf16.mxu0 %v8640_v4  ;;  %v8680_v4 = vld [vmem:[#allocation2 + $0x300] ss:$16 sps:$4 sm:$0xff]  }
 0x1e9   :  { %2448 = vmatprep.subr.bf16.mxu1 %v8637_v3 }
 0x1ec   :  { %2449 = vmatpush2.bf16.msra.mxu1 %v8635_v2  ;;  %v8682_v2 = vld [vmem:[#allocation2 + $0x304] ss:$16 sps:$4 sm:$0xff]  }
 0x1ed   :  { %2450 = vmatprep.subr.bf16.mxu1 %v8643_v5 }
 0x1f0   :  { %2451 = vmatpush2.bf16.msra.mxu1 %v8641_v6  ;;  %v8685_v6 = vld [vmem:[#allocation2 + $0x4e4] ss:$16 sps:$4 sm:$0xff]  }
 0x1f1   :  { %2452 = vmatprep.subr.bf16.mxu1 %v8649_v7 }
 0x1f4   :  { %2453 = vmatpush2.bf16.msra.mxu1 %v8647_v8  ;;  %v8683_v8 = vld [vmem:[#allocation2 + $0x4e0] ss:$16 sps:$4 sm:$0xff]  }
 0x1f5   :  { %2454 = vmatprep.subr.bf16.mxu1 %v8655_v9  ;;  %v8691_v9 = vld [vmem:[#allocation2 + $0x4c4] ss:$16 sps:$4 sm:$0xff]  }
 0x1f8   :  { %2455 = vmatpush2.bf16.msra.mxu1 %v8653_v42  ;;  %v8689_v42 = vld [vmem:[#allocation2 + $0x4c0] ss:$16 sps:$4 sm:$0xff]  }
 0x1f9   :  { %2456 = vmatprep.subr.bf16.mxu1 %v8661_v10  ;;  %v8697_v10 = vld [vmem:[#allocation2 + $0x4a4] ss:$16 sps:$4 sm:$0xff]  }
 0x1fc   :  { %2457 = vmatpush2.bf16.msra.mxu1 %v8659_v12  ;;  %v8695_v12 = vld [vmem:[#allocation2 + $0x4a0] ss:$16 sps:$4 sm:$0xff]  }
 0x1fd   :  { %2458 = vmatprep.subr.bf16.mxu1 %v8667_v13  ;;  %v8703_v13 = vld [vmem:[#allocation2 + $0x484] ss:$16 sps:$4 sm:$0xff]  }
 0x200   :  { %2459 = vmatpush2.bf16.msra.mxu1 %v8665_v14  ;;  %v8701_v14 = vld [vmem:[#allocation2 + $0x480] ss:$16 sps:$4 sm:$0xff]  }
 0x201   :  { %2460 = vmatprep.subr.bf16.mxu1 %v8673_v15  ;;  %v8709_v15 = vld [vmem:[#allocation2 + $0x464] ss:$16 sps:$4 sm:$0xff]  }
 0x204   :  { %2461 = vmatpush2.bf16.msra.mxu1 %v8671_v16  ;;  %v1152_v16 = vrot.slane %v9797_v54, %v9819_v24 }
 0x205   :  { %2462 = vmatprep.subr.bf16.mxu1 %v8679_v18  ;;  %v8707_v18 = vld [vmem:[#allocation2 + $0x460] ss:$16 sps:$4 sm:$0xff]  }
 0x208   :  { %2463 = vmatpush2.bf16.msra.mxu1 %v8677_v20  ;;  %v8715_v20 = vld [vmem:[#allocation2 + $0x444] ss:$16 sps:$4 sm:$0xff]  }
 0x209   :  { %3122 = vmatprep.subr.bf16.mxu1 %v8688_v21  ;;  %v1156_v21 = vrot.slane %v9797_v54, %v9822_v25  ;;  %v8725_v54 = vld [vmem:[#allocation2 + $0x400] ss:$16 sps:$4 sm:$0xff]  }
 0x22a   :  { %v1851_v22 = vpop.f32.mrf.mxu0 }
 0x22b   :  { %v1852_v17 = vadd.f32 %v1851_v22, %v1164_v28  ;;  %v1172_v22 = vrot.slane %v1152_v16, %v9819_v24  ;;  %v8736_v16 = vld [vmem:[#allocation2 + $0x3ec] ss:$16 sps:$4 sm:$0xff]  }
 0x22c   :  { %v1853_v27 = vpop.f32.mrf.mxu0 }
 0x22d   :  { %v1854_v31 = vadd.f32 %v1853_v27, %v1168_v50  ;;  %v8713_v27 = vld [vmem:[#allocation2 + $0x440] ss:$16 sps:$4 sm:$0xff]   ;;  %v8727_v50 = vld [vmem:[#allocation2 + $0x404] ss:$16 sps:$4 sm:$0xff]  }
 0x22e   :  { %v1855_v19 = vpop.f32.mrf.mxu0 }
 0x22f   :  { %v8721_v19 = vld [vmem:[#allocation2 + $0x424] ss:$16 sps:$4 sm:$0xff]  }
 0x230   :  { %v1856_v33 = vpop.f32.mrf.mxu0 }
 0x231   :  { %v1176_v33 = vrot.slane %v1156_v21, %v9819_v24  ;;  %v8734_v21 = vld [vmem:[#allocation2 + $0x3e8] ss:$16 sps:$4 sm:$0xff]  }
 0x24b   :  { %v1892_v29 = vpop.f32.mrf.mxu1 }
 0x24c   :  { %v1893_v32 = vadd.f32 %v1892_v29, %v1852_v17 }
 0x24d   :  { %v1894_v34 = vpop.f32.mrf.mxu1 }
 0x24e   :  { %v1895_v36 = vadd.f32 %v1894_v34, %v1854_v31  ;;  %v1981_v39 = vmax.f32 %v1893_v32, 0.0 }
 0x24f   :  { %v1896_v40 = vpop.f32.mrf.mxu1 }
 0x250   :  { %v1982_v43 = vmax.f32 %v1895_v36, 0.0  ;;  %v1985_v35 = vpack.c.bf16 %v1981_v39, %v1981_v39  ;;  %v8757_v39 = vld [vmem:[#allocation2 + $0x5ec] ss:$16 sps:$4 sm:$0xff]  }
 0x251   :  { %v1897_v23 = vpop.f32.mrf.mxu1 }
 0x252   :  { %v1986_v44 = vpack.c.bf16 %v1982_v43, %v1982_v43  ;;  %v9850_v23 = vcombine.low %v9835_v41, %v9835_v41  ;;  %v8761_v41 = vld [vmem:[#allocation2 + $0x5c8] ss:$16 sps:$4 sm:$0xff]  }
 0x254   :  { %2423 = vmatprep.mubr.bf16.mxu0 %v1986_v44 }
 0x255   :  { %2424 = vmatmul.mubr.bf16.vlgmr.msra.gmra.mxu0 %v1985_v35 }
 0x256   :  { %3082 = vmatpush1.bf16.msra.mxu0 %v8638_v45  ;;  %3113 = vmatprep.mubr.bf16.mxu0 %v9839_v46  ;;  %v8686_v45 = vld [vmem:[#allocation2 + $0x5e0] ss:$16 sps:$4 sm:$0xff]  }
 0x257   :  { %3083 = vmatprep.subr.bf16.mxu0 %v8646_v49  ;;  %v8694_v49 = vld [vmem:[#allocation2 + $0x5c4] ss:$16 sps:$4 sm:$0xff]  }
 0x25a   :  { %3084 = vmatpush1.bf16.msra.mxu0 %v8644_v51  ;;  %v8755_v51 = vld [vmem:[#allocation2 + $0x5e8] ss:$16 sps:$4 sm:$0xff]  }
 0x25b   :  { %3085 = vmatprep.subr.bf16.mxu0 %v8652_v52  ;;  %v8763_v52 = vld [vmem:[#allocation2 + $0x5cc] ss:$16 sps:$4 sm:$0xff]  }
 0x25e   :  { %3086 = vmatpush1.bf16.msra.mxu0 %v8650_v53  ;;  %v8692_v53 = vld [vmem:[#allocation2 + $0x5c0] ss:$16 sps:$4 sm:$0xff]  }
 0x25f   :  { %3087 = vmatprep.subr.bf16.mxu0 %v8658_v56  ;;  %v8700_v56 = vld [vmem:[#allocation2 + $0x5a4] ss:$16 sps:$4 sm:$0xff]  }
 0x262   :  { %3088 = vmatpush1.bf16.msra.mxu0 %v8656_v57  ;;  %v8769_v57 = vld [vmem:[#allocation2 + $0x5ac] ss:$16 sps:$4 sm:$0xff]  }
 0x263   :  { %3089 = vmatprep.subr.bf16.mxu0 %v8664_v58  ;;  %v8698_v58 = vld [vmem:[#allocation2 + $0x5a0] ss:$16 sps:$4 sm:$0xff]  }
 0x266   :  { %3090 = vmatpush1.bf16.msra.mxu0 %v8662_v59  ;;  %v8706_v59 = vld [vmem:[#allocation2 + $0x584] ss:$16 sps:$4 sm:$0xff]  }
 0x267   :  { %3091 = vmatprep.subr.bf16.mxu0 %v8670_v60  ;;  %v8767_v60 = vld [vmem:[#allocation2 + $0x5a8] ss:$16 sps:$4 sm:$0xff]  }
 0x26a   :  { %3092 = vmatpush1.bf16.msra.mxu0 %v8668_v61  ;;  %v1933_v1 = vpop.f32.mrf.mxu0  ;;  %v8775_v61 = vld [vmem:[#allocation2 + $0x58c] ss:$16 sps:$4 sm:$0xff]  }
 0x26b   :  { %3093 = vmatprep.subr.bf16.mxu0 %v8676_v62  ;;  %v1934_v47 = vadd.f32 %v1933_v1, %v1172_v22  ;;  %v8704_v62 = vld [vmem:[#allocation2 + $0x580] ss:$16 sps:$4 sm:$0xff]   ;;  %v8773_v1 = vld [vmem:[#allocation2 + $0x588] ss:$16 sps:$4 sm:$0xff]   ;;  %v8739_v22 = vld [vmem:[#allocation2 + $0x3cc] ss:$16 sps:$4 sm:$0xff]  }
 0x26c   :  { %v1935_v3 = vpop.f32.mrf.mxu0 }
 0x26d   :  { %v1936_v17 = vadd.f32 %v1935_v3, %v1176_v33  ;;  %v8710_v3 = vld [vmem:[#allocation2 + $0x560] ss:$16 sps:$4 sm:$0xff]   ;;  %v8740_v33 = vld [vmem:[#allocation2 + $0x3a8] ss:$16 sps:$4 sm:$0xff]  }
 0x26e   :  { %3094 = vmatpush1.bf16.msra.mxu0 %v8674_v63  ;;  %v1937_v5 = vpop.f32.mrf.mxu0  ;;  %v8712_v63 = vld [vmem:[#allocation2 + $0x564] ss:$16 sps:$4 sm:$0xff]  }
 0x26f   :  { %3095 = vmatprep.subr.bf16.mxu0 %v8682_v2  ;;  %v8781_v2 = vld [vmem:[#allocation2 + $0x56c] ss:$16 sps:$4 sm:$0xff]   ;;  %v8779_v5 = vld [vmem:[#allocation2 + $0x568] ss:$16 sps:$4 sm:$0xff]  }
 0x270   :  { %v1938_v7 = vpop.f32.mrf.mxu0 }
 0x271   :  { %v8716_v7 = vld [vmem:[#allocation2 + $0x540] ss:$16 sps:$4 sm:$0xff]  }
 0x272   :  { %3096 = vmatpush1.bf16.msra.mxu0 %v8680_v4  ;;  %v8718_v4 = vld [vmem:[#allocation2 + $0x544] ss:$16 sps:$4 sm:$0xff]  }
 0x273   :  { %3097 = vmatprep.subr.bf16.mxu0 %v8685_v6  ;;  %v8787_v6 = vld [vmem:[#allocation2 + $0x54c] ss:$16 sps:$4 sm:$0xff]  }
 0x276   :  { %3098 = vmatpush2.bf16.msra.mxu0 %v8683_v8  ;;  %v8724_v8 = vld [vmem:[#allocation2 + $0x524] ss:$16 sps:$4 sm:$0xff]  }
 0x277   :  { %3099 = vmatprep.subr.bf16.mxu0 %v8691_v9  ;;  %v8785_v9 = vld [vmem:[#allocation2 + $0x548] ss:$16 sps:$4 sm:$0xff]  }
 0x27a   :  { %3100 = vmatpush2.bf16.msra.mxu0 %v8689_v42  ;;  %v8793_v42 = vld [vmem:[#allocation2 + $0x52c] ss:$16 sps:$4 sm:$0xff]  }
 0x27b   :  { %3101 = vmatprep.subr.bf16.mxu0 %v8697_v10  ;;  %v8722_v10 = vld [vmem:[#allocation2 + $0x520] ss:$16 sps:$4 sm:$0xff]  }
 0x27e   :  { %3102 = vmatpush2.bf16.msra.mxu0 %v8695_v12  ;;  %v8730_v12 = vld [vmem:[#allocation2 + $0x504] ss:$16 sps:$4 sm:$0xff]  }
 0x27f   :  { %3103 = vmatprep.subr.bf16.mxu0 %v8703_v13  ;;  %v8791_v13 = vld [vmem:[#allocation2 + $0x528] ss:$16 sps:$4 sm:$0xff]  }
 0x282   :  { %3104 = vmatpush2.bf16.msra.mxu0 %v8701_v14  ;;  %v8799_v14 = vld [vmem:[#allocation2 + $0x50c] ss:$16 sps:$4 sm:$0xff]  }
 0x283   :  { %3105 = vmatprep.subr.bf16.mxu0 %v8709_v15  ;;  %v8728_v15 = vld [vmem:[#allocation2 + $0x500] ss:$16 sps:$4 sm:$0xff]  }
 0x286   :  { %3106 = vmatpush2.bf16.msra.mxu0 %v8707_v18  ;;  %v8797_v18 = vld [vmem:[#allocation2 + $0x508] ss:$16 sps:$4 sm:$0xff]  }
 0x287   :  { %3107 = vmatprep.subr.bf16.mxu0 %v8715_v20  ;;  %v8733_v20 = vld [vmem:[%s10096_s0 + $0x14] ss:$0 sps:$4 sm:$0xff]  }
 0x28a   :  { %3108 = vmatpush2.bf16.msra.mxu0 %v8713_v27  ;;  %v8737_v27 = vld [vmem:[#allocation2 + $0x3c8] ss:$16 sps:$4 sm:$0xff]  }
 0x28b   :  { %v1974_v28 = vpop.f32.mrf.mxu1  ;;  %3109 = vmatprep.subr.bf16.mxu0 %v8721_v19  ;;  %v8742_v19 = vld [vmem:[#allocation2 + $0x3ac] ss:$16 sps:$4 sm:$0xff]  }
 0x28c   :  { %v1975_v29 = vadd.f32 %v1974_v28, %v1934_v47  ;;  %v8745_v47 = vld [vmem:[#allocation2 + $0x38c] ss:$16 sps:$4 sm:$0xff]  }
 0x28d   :  { %v1976_v31 = vpop.f32.mrf.mxu1  ;;  %v8748_v28 = vld [vmem:[#allocation2 + $0x36c] ss:$16 sps:$4 sm:$0xff]  }
 0x28e   :  { %v1977_v32 = vadd.f32 %v1976_v31, %v1936_v17  ;;  %3110 = vmatpush2.bf16.msra.mxu0 %v8719_v11  ;;  %v1983_v34 = vmax.f32 %v1975_v29, 0.0  ;;  %v8743_v11 = vld [vmem:[#allocation2 + $0x388] ss:$16 sps:$4 sm:$0xff]   ;;  %v8751_v17 = vld [vmem:[#allocation2 + $0x34c] ss:$16 sps:$4 sm:$0xff]  }
 0x28f   :  { %v1978_v36 = vpop.f32.mrf.mxu1  ;;  %3111 = vmatprep.subr.bf16.mxu0 %v8727_v50  ;;  %v8746_v50 = vld [vmem:[#allocation2 + $0x368] ss:$16 sps:$4 sm:$0xff]   ;;  %v8754_v31 = vld [vmem:[#allocation2 + $0x32c] ss:$16 sps:$4 sm:$0xff]  }
 0x290   :  { %v1984_v40 = vmax.f32 %v1977_v32, 0.0  ;;  %v1987_v35 = vpack.c.bf16 %v1983_v34, %v1983_v34  ;;  %v8749_v29 = vld [vmem:[#allocation2 + $0x348] ss:$16 sps:$4 sm:$0xff]   ;;  %v8766_v34 = vld [vmem:[#allocation2 + $0x4ec] ss:$16 sps:$4 sm:$0xff]  }
 0x291   :  { %v1979_v43 = vpop.f32.mrf.mxu1  ;;  %v8752_v32 = vld [vmem:[#allocation2 + $0x328] ss:$16 sps:$4 sm:$0xff]  }
 0x292   :  { %v1988_v44 = vpack.c.bf16 %v1984_v40, %v1984_v40  ;;  %3112 = vmatpush2.bf16.msra.mxu0 %v8725_v54  ;;  %v8758_v54 = vld [vmem:[#allocation2 + $0x308] ss:$16 sps:$4 sm:$0xff]   ;;  %v8778_v43 = vld [vmem:[#allocation2 + $0x4ac] ss:$16 sps:$4 sm:$0xff]  }
 0x293   :  { %3204 = vmatprep.subr.bf16.mxu0 %v8757_v39  ;;  %v8764_v36 = vld [vmem:[#allocation2 + $0x4e8] ss:$16 sps:$4 sm:$0xff]   ;;  %v8772_v39 = vld [vmem:[#allocation2 + $0x4cc] ss:$16 sps:$4 sm:$0xff]  }
 0x294   :  { %2464 = vmatprep.mubr.bf16.mxu1 %v1988_v44  ;;  %v8770_v40 = vld [vmem:[#allocation2 + $0x4c8] ss:$16 sps:$4 sm:$0xff]  }
 0x295   :  { %2465 = vmatmul.mubr.bf16.vlgmr.msra.gmra.mxu1 %v1987_v35  ;;  %3114 = vmatmul.mubr.bf16.vlgmr.msra.gmra.mxu0 %v9850_v23  ;;  %v8776_v44 = vld [vmem:[#allocation2 + $0x4a8] ss:$16 sps:$4 sm:$0xff]  }
 0x296   :  { %3123 = vmatpush1.bf16.msra.mxu1 %v8686_v45  ;;  %3154 = vmatprep.mubr.bf16.mxu1 %v9673_v0  ;;  %v8784_v45 = vld [vmem:[#allocation2 + $0x48c] ss:$16 sps:$4 sm:$0xff]   ;;  %v8782_v35 = vld [vmem:[#allocation2 + $0x488] ss:$16 sps:$4 sm:$0xff]  }
 0x297   :  { %3124 = vmatprep.subr.bf16.mxu1 %v8694_v49  ;;  %3205 = vmatpush1.bf16.msra.mxu0 %v8755_v51  ;;  %v8790_v49 = vld [vmem:[#allocation2 + $0x46c] ss:$16 sps:$4 sm:$0xff]   ;;  %v8788_v51 = vld [vmem:[#allocation2 + $0x468] ss:$16 sps:$4 sm:$0xff]  }
 0x298   :  { %3206 = vmatprep.subr.bf16.mxu0 %v8763_v52  ;;  %3236 = vmatprep.mubr.bf16.mxu0 %v9673_v0  ;;  %v8796_v52 = vld [vmem:[#allocation2 + $0x44c] ss:$16 sps:$4 sm:$0xff]  }
 0x29a   :  { %3125 = vmatpush1.bf16.msra.mxu1 %v8692_v53  ;;  %v8794_v53 = vld [vmem:[#allocation2 + $0x448] ss:$16 sps:$4 sm:$0xff]  }
 0x29b   :  { %3126 = vmatprep.subr.bf16.mxu1 %v8700_v56  ;;  %3207 = vmatpush1.bf16.msra.mxu0 %v8761_v41  ;;  %v8802_v56 = vld [vmem:[#allocation2 + $0x42c] ss:$16 sps:$4 sm:$0xff]   ;;  %v8800_v41 = vld [vmem:[#allocation2 + $0x428] ss:$16 sps:$4 sm:$0xff]  }
 0x29c   :  { %3208 = vmatprep.subr.bf16.mxu0 %v8769_v57  ;;  %v8808_v57 = vld [vmem:[#allocation6 + $0x4e4] ss:$16 sps:$4 sm:$0xff]  }
 0x29e   :  { %3127 = vmatpush1.bf16.msra.mxu1 %v8698_v58  ;;  %v8805_v58 = vld [vmem:[#allocation2 + $0x40c] ss:$16 sps:$4 sm:$0xff]  }
 0x29f   :  { %3128 = vmatprep.subr.bf16.mxu1 %v8706_v59  ;;  %3209 = vmatpush1.bf16.msra.mxu0 %v8767_v60  ;;  %v8806_v59 = vld [vmem:[#allocation6 + $0x4e0] ss:$16 sps:$4 sm:$0xff]   ;;  %v8803_v60 = vld [vmem:[#allocation2 + $0x408] ss:$16 sps:$4 sm:$0xff]  }
 0x2a0   :  { %3210 = vmatprep.subr.bf16.mxu0 %v8775_v61  ;;  %v8811_v61 = vld [vmem:[#allocation6 + $0x4c4] ss:$16 sps:$4 sm:$0xff]  }
 0x2a2   :  { %3129 = vmatpush1.bf16.msra.mxu1 %v8704_v62  ;;  %v8809_v62 = vld [vmem:[#allocation6 + $0x4c0] ss:$16 sps:$4 sm:$0xff]  }
 0x2a3   :  { %3130 = vmatprep.subr.bf16.mxu1 %v8712_v63  ;;  %3211 = vmatpush1.bf16.msra.mxu0 %v8773_v1  ;;  %v8814_v63 = vld [vmem:[#allocation6 + $0x4a4] ss:$16 sps:$4 sm:$0xff]   ;;  %v8812_v1 = vld [vmem:[#allocation6 + $0x4a0] ss:$16 sps:$4 sm:$0xff]  }
 0x2a4   :  { %3212 = vmatprep.subr.bf16.mxu0 %v8781_v2  ;;  %v8817_v2 = vld [vmem:[#allocation6 + $0x484] ss:$16 sps:$4 sm:$0xff]  }
 0x2a6   :  { %3131 = vmatpush1.bf16.msra.mxu1 %v8710_v3  ;;  %v8815_v3 = vld [vmem:[#allocation6 + $0x480] ss:$16 sps:$4 sm:$0xff]  }
 0x2a7   :  { %3132 = vmatprep.subr.bf16.mxu1 %v8718_v4  ;;  %3213 = vmatpush1.bf16.msra.mxu0 %v8779_v5  ;;  %v8820_v4 = vld [vmem:[#allocation6 + $0x464] ss:$16 sps:$4 sm:$0xff]   ;;  %v8818_v5 = vld [vmem:[#allocation6 + $0x460] ss:$16 sps:$4 sm:$0xff]  }
 0x2a8   :  { %3214 = vmatprep.subr.bf16.mxu0 %v8787_v6  ;;  %v8823_v6 = vld [vmem:[#allocation6 + $0x444] ss:$16 sps:$4 sm:$0xff]  }
 0x2aa   :  { %3133 = vmatpush1.bf16.msra.mxu1 %v8716_v7  ;;  %v8821_v7 = vld [vmem:[#allocation6 + $0x440] ss:$16 sps:$4 sm:$0xff]  }
 0x2ab   :  { %3134 = vmatprep.subr.bf16.mxu1 %v8724_v8  ;;  %3215 = vmatpush1.bf16.msra.mxu0 %v8785_v9  ;;  %v8826_v8 = vld [vmem:[#allocation6 + $0x424] ss:$16 sps:$4 sm:$0xff]   ;;  %v8824_v9 = vld [vmem:[#allocation6 + $0x420] ss:$16 sps:$4 sm:$0xff]  }
 0x2ac   :  { %3216 = vmatprep.subr.bf16.mxu0 %v8793_v42  ;;  %v8829_v42 = vld [vmem:[#allocation6 + $0x404] ss:$16 sps:$4 sm:$0xff]  }
 0x2ae   :  { %3135 = vmatpush1.bf16.msra.mxu1 %v8722_v10  ;;  %v8827_v10 = vld [vmem:[#allocation6 + $0x400] ss:$16 sps:$4 sm:$0xff]  }
 0x2af   :  { %3136 = vmatprep.subr.bf16.mxu1 %v8730_v12  ;;  %3217 = vmatpush1.bf16.msra.mxu0 %v8791_v13  ;;  %v8830_v12 = vld [vmem:[#allocation6 + $0x5e0] ss:$16 sps:$4 sm:$0xff]  }
 0x2b0   :  { %3218 = vmatprep.subr.bf16.mxu0 %v8799_v14  ;;  %v8833_v13 = vld [vmem:[#allocation6 + $0x5c0] ss:$16 sps:$4 sm:$0xff]   ;;  %v8835_v14 = vld [vmem:[#allocation6 + $0x5c4] ss:$16 sps:$4 sm:$0xff]  }
 0x2b2   :  { %3137 = vmatpush1.bf16.msra.mxu1 %v8728_v15  ;;  %v8838_v15 = vld [vmem:[#allocation6 + $0x5a4] ss:$16 sps:$4 sm:$0xff]  }
 0x2b3   :  { %3163 = vmatprep.subr.bf16.mxu1 %v8736_v16  ;;  %3219 = vmatpush1.bf16.msra.mxu0 %v8797_v18  ;;  %v8836_v16 = vld [vmem:[#allocation6 + $0x5a0] ss:$16 sps:$4 sm:$0xff]   ;;  %v8841_v18 = vld [vmem:[#allocation6 + $0x584] ss:$16 sps:$4 sm:$0xff]  }
 0x2b4   :  { %4232 = vmatprep.subr.bf16.mxu0 %v8808_v57  ;;  %v8896_v57 = vld [vmem:[#allocation6 + $0x600] ss:$16 sps:$4 sm:$0xff]  }
 0x2b5   :  { %3155 = vmatmul.mubr.bf16.vlgmr.msra.gmra.mxu1 %v8733_v20 }
 0x2b6   :  { %3164 = vmatpush1.bf16.msra.mxu1 %v8734_v21  ;;  %3237 = vmatmul.mubr.bf16.vlgmr.msra.gmra.mxu0 %v8733_v20  ;;  %v8839_v21 = vld [vmem:[#allocation6 + $0x580] ss:$16 sps:$4 sm:$0xff]  }
 0x2b7   :  { %3165 = vmatprep.subr.bf16.mxu1 %v8739_v22  ;;  %3195 = vmatprep.mubr.bf16.mxu1 %v9839_v46  ;;  %v8760_v46 = vld [vmem:[#allocation2 + $0x30c] ss:$16 sps:$4 sm:$0xff]  }
 0x2b8   :  { %4233 = vmatpush1.bf16.msra.mxu0 %v8806_v59 }
 0x2b9   :  { %4234 = vmatprep.subr.bf16.mxu0 %v8811_v61  ;;  %v8902_v61 = vld [vmem:[#allocation6 + $0x7e0] ss:$16 sps:$4 sm:$0xff]  }
 0x2ba   :  { %3166 = vmatpush1.bf16.msra.mxu1 %v8737_v27  ;;  %v8844_v27 = vld [vmem:[#allocation6 + $0x564] ss:$16 sps:$4 sm:$0xff]  }
 0x2bb   :  { %3167 = vmatprep.subr.bf16.mxu1 %v8742_v19 }
 0x2bc   :  { %4235 = vmatpush1.bf16.msra.mxu0 %v8809_v62 }
 0x2bd   :  { %4236 = vmatprep.subr.bf16.mxu0 %v8814_v63  ;;  %v8908_v63 = vld [vmem:[#allocation6 + $0x7c0] ss:$16 sps:$4 sm:$0xff]  }
 0x2be   :  { %3168 = vmatpush1.bf16.msra.mxu1 %v8740_v33  ;;  %v8842_v33 = vld [vmem:[#allocation6 + $0x560] ss:$16 sps:$4 sm:$0xff]  }
 0x2bf   :  { %3169 = vmatprep.subr.bf16.mxu1 %v8745_v47 }
 0x2c0   :  { %4237 = vmatpush1.bf16.msra.mxu0 %v8812_v1  ;;  %v8910_v1 = vld [vmem:[#allocation6 + $0x7c4] ss:$16 sps:$4 sm:$0xff]  }
 0x2c1   :  { %4238 = vmatprep.subr.bf16.mxu0 %v8817_v2 }
 0x2c2   :  { %3170 = vmatpush1.bf16.msra.mxu1 %v8743_v11  ;;  %v8847_v11 = vld [vmem:[#allocation6 + $0x544] ss:$16 sps:$4 sm:$0xff]  }
 0x2c3   :  { %3171 = vmatprep.subr.bf16.mxu1 %v8748_v28  ;;  %v8845_v28 = vld [vmem:[#allocation6 + $0x540] ss:$16 sps:$4 sm:$0xff]  }
 0x2c4   :  { %4239 = vmatpush1.bf16.msra.mxu0 %v8815_v3  ;;  %v8914_v3 = vld [vmem:[#allocation6 + $0x7a0] ss:$16 sps:$4 sm:$0xff]  }
 0x2c5   :  { %4240 = vmatprep.subr.bf16.mxu0 %v8820_v4  ;;  %v8916_v4 = vld [vmem:[#allocation6 + $0x7a4] ss:$16 sps:$4 sm:$0xff]  }
 0x2c6   :  { %3172 = vmatpush1.bf16.msra.mxu1 %v8746_v50  ;;  %v8850_v50 = vld [vmem:[#allocation6 + $0x524] ss:$16 sps:$4 sm:$0xff]  }
 0x2c7   :  { %3173 = vmatprep.subr.bf16.mxu1 %v8751_v17  ;;  %v8848_v17 = vld [vmem:[#allocation6 + $0x520] ss:$16 sps:$4 sm:$0xff]  }
 0x2c8   :  { %4241 = vmatpush1.bf16.msra.mxu0 %v8818_v5 }
 0x2c9   :  { %4242 = vmatprep.subr.bf16.mxu0 %v8823_v6 }
 0x2ca   :  { %3174 = vmatpush1.bf16.msra.mxu1 %v8749_v29  ;;  %v8853_v29 = vld [vmem:[#allocation6 + $0x504] ss:$16 sps:$4 sm:$0xff]  }
 0x2cb   :  { %3175 = vmatprep.subr.bf16.mxu1 %v8754_v31  ;;  %v8851_v31 = vld [vmem:[#allocation6 + $0x500] ss:$16 sps:$4 sm:$0xff]  }
 0x2cc   :  { %4243 = vmatpush1.bf16.msra.mxu0 %v8821_v7 }
 0x2cd   :  { %4244 = vmatprep.subr.bf16.mxu0 %v8826_v8 }
 0x2ce   :  { %3176 = vmatpush1.bf16.msra.mxu1 %v8752_v32  ;;  %v8856_v32 = vld [vmem:[#allocation6 + $0x6e4] ss:$16 sps:$4 sm:$0xff]  }
 0x2cf   :  { %3177 = vmatprep.subr.bf16.mxu1 %v8760_v46  ;;  %v8859_v46 = vld [vmem:[#allocation6 + $0x4ec] ss:$16 sps:$4 sm:$0xff]  }
 0x2d0   :  { %4245 = vmatpush1.bf16.msra.mxu0 %v8824_v9 }
 0x2d1   :  { %4246 = vmatprep.subr.bf16.mxu0 %v8829_v42 }
 0x2d2   :  { %3178 = vmatpush1.bf16.msra.mxu1 %v8758_v54  ;;  %v8854_v54 = vld [vmem:[#allocation6 + $0x6e0] ss:$16 sps:$4 sm:$0xff]  }
 0x2d3   :  { %3179 = vmatprep.subr.bf16.mxu1 %v8766_v34  ;;  %v8860_v34 = vld [vmem:[#allocation6 + $0x6c0] ss:$16 sps:$4 sm:$0xff]  }
 0x2d4   :  { %4247 = vmatpush1.bf16.msra.mxu0 %v8827_v10  ;;  %v8920_v10 = vld [vmem:[#allocation6 + $0x780] ss:$16 sps:$4 sm:$0xff]  }
 0x2d6   :  { %3180 = vmatpush2.bf16.msra.mxu1 %v8764_v36  ;;  %v8862_v36 = vld [vmem:[#allocation6 + $0x6c4] ss:$16 sps:$4 sm:$0xff]  }
 0x2d7   :  { %3181 = vmatprep.subr.bf16.mxu1 %v8772_v39  ;;  %v8866_v39 = vld [vmem:[#allocation6 + $0x6a0] ss:$16 sps:$4 sm:$0xff]  }
 0x2da   :  { %3182 = vmatpush2.bf16.msra.mxu1 %v8770_v40  ;;  %v8868_v40 = vld [vmem:[#allocation6 + $0x6a4] ss:$16 sps:$4 sm:$0xff]  }
 0x2db   :  { %3183 = vmatprep.subr.bf16.mxu1 %v8778_v43  ;;  %v8874_v43 = vld [vmem:[#allocation6 + $0x684] ss:$16 sps:$4 sm:$0xff]  }
 0x2de   :  { %3184 = vmatpush2.bf16.msra.mxu1 %v8776_v44  ;;  %v8872_v44 = vld [vmem:[#allocation6 + $0x680] ss:$16 sps:$4 sm:$0xff]  }
 0x2df   :  { %3185 = vmatprep.subr.bf16.mxu1 %v8784_v45  ;;  %v8880_v45 = vld [vmem:[#allocation6 + $0x664] ss:$16 sps:$4 sm:$0xff]  }
 0x2e2   :  { %3186 = vmatpush2.bf16.msra.mxu1 %v8782_v35  ;;  %v8878_v35 = vld [vmem:[#allocation6 + $0x660] ss:$16 sps:$4 sm:$0xff]  }
 0x2e3   :  { %3187 = vmatprep.subr.bf16.mxu1 %v8790_v49  ;;  %v8886_v49 = vld [vmem:[#allocation6 + $0x644] ss:$16 sps:$4 sm:$0xff]  }
 0x2e6   :  { %3188 = vmatpush2.bf16.msra.mxu1 %v8788_v51  ;;  %v8884_v51 = vld [vmem:[#allocation6 + $0x640] ss:$16 sps:$4 sm:$0xff]  }
 0x2e7   :  { %3189 = vmatprep.subr.bf16.mxu1 %v8796_v52  ;;  %v8892_v52 = vld [vmem:[#allocation6 + $0x624] ss:$16 sps:$4 sm:$0xff]  }
 0x2ea   :  { %3190 = vmatpush2.bf16.msra.mxu1 %v8794_v53  ;;  %v8890_v53 = vld [vmem:[#allocation6 + $0x620] ss:$16 sps:$4 sm:$0xff]  }
 0x2eb   :  { %3191 = vmatprep.subr.bf16.mxu1 %v8802_v56  ;;  %v9865_v56 = vsub.s32 3, %v9754_v30 }
 0x2ed   :  { %v2056_v59 = vrot.slane %v9824_v26, %v9865_v56 }
 0x2ee   :  { %3192 = vmatpush2.bf16.msra.mxu1 %v8800_v41  ;;  %v8898_v41 = vld [vmem:[#allocation6 + $0x604] ss:$16 sps:$4 sm:$0xff]  }
 0x2ef   :  { %3193 = vmatprep.subr.bf16.mxu1 %v8805_v58  ;;  %v9868_v58 = vsub.s32 7, %v9754_v30  ;;  %v2066_v2 = vrot.slane %v2056_v59, %v9865_v56 }
 0x2f1   :  { %v2060_v62 = vrot.slane %v9824_v26, %v9868_v58 }
 0x2f2   :  { %3194 = vmatpush2.bf16.msra.mxu1 %v8803_v60  ;;  %v8904_v60 = vld [vmem:[#allocation6 + $0x7e4] ss:$16 sps:$4 sm:$0xff]  }
 0x2f3   :  { %4273 = vmatprep.subr.bf16.mxu1 %v8856_v32  ;;  %v2070_v30 = vrot.slane %v2060_v62, %v9865_v56  ;;  %v8952_v32 = vld [vmem:[#allocation6 + $0x6ec] ss:$16 sps:$4 sm:$0xff]  }
 0x2f5   :  { %3196 = vmatmul.mubr.bf16.vlgmr.msra.gmra.mxu1 %v9850_v23  ;;  %v8832_v23 = vld [vmem:[#allocation6 + $0x5e4] ss:$16 sps:$4 sm:$0xff]  }
 0x2f6   :  { %4248 = vmatprep.subr.bf16.mxu0 %v8832_v23  ;;  %4274 = vmatpush1.bf16.msra.mxu1 %v8854_v54  ;;  %v8922_v23 = vld [vmem:[#allocation6 + $0x784] ss:$16 sps:$4 sm:$0xff]  }
 0x2f7   :  { %4249 = vmatpush2.bf16.msra.mxu0 %v8830_v12  ;;  %4275 = vmatprep.subr.bf16.mxu1 %v8862_v36 }
 0x2f8   :  { %4250 = vmatprep.subr.bf16.mxu0 %v8835_v14 }
 0x2fa   :  { %4276 = vmatpush1.bf16.msra.mxu1 %v8860_v34 }
 0x2fb   :  { %4251 = vmatpush2.bf16.msra.mxu0 %v8833_v13  ;;  %4277 = vmatprep.subr.bf16.mxu1 %v8868_v40 }
 0x2fc   :  { %4252 = vmatprep.subr.bf16.mxu0 %v8838_v15 }
 0x2fe   :  { %4278 = vmatpush1.bf16.msra.mxu1 %v8866_v39 }
 0x2ff   :  { %4253 = vmatpush2.bf16.msra.mxu0 %v8836_v16  ;;  %4279 = vmatprep.subr.bf16.mxu1 %v8874_v43 }
 0x300   :  { %4254 = vmatprep.subr.bf16.mxu0 %v8841_v18 }
 0x302   :  { %4280 = vmatpush1.bf16.msra.mxu1 %v8872_v44 }
 0x303   :  { %4255 = vmatpush2.bf16.msra.mxu0 %v8839_v21  ;;  %4281 = vmatprep.subr.bf16.mxu1 %v8880_v45  ;;  %v8926_v21 = vld [vmem:[#allocation6 + $0x760] ss:$16 sps:$4 sm:$0xff]  }
 0x304   :  { %4256 = vmatprep.subr.bf16.mxu0 %v8844_v27  ;;  %v8928_v27 = vld [vmem:[#allocation6 + $0x764] ss:$16 sps:$4 sm:$0xff]  }
 0x306   :  { %4282 = vmatpush1.bf16.msra.mxu1 %v8878_v35 }
 0x307   :  { %4257 = vmatpush2.bf16.msra.mxu0 %v8842_v33  ;;  %4283 = vmatprep.subr.bf16.mxu1 %v8886_v49  ;;  %v8938_v33 = vld [vmem:[#allocation6 + $0x720] ss:$16 sps:$4 sm:$0xff]  }
 0x308   :  { %4258 = vmatprep.subr.bf16.mxu0 %v8847_v11 }
 0x30a   :  { %4284 = vmatpush1.bf16.msra.mxu1 %v8884_v51 }
 0x30b   :  { %4259 = vmatpush2.bf16.msra.mxu0 %v8845_v28  ;;  %4285 = vmatprep.subr.bf16.mxu1 %v8892_v52  ;;  %v8944_v28 = vld [vmem:[#allocation6 + $0x700] ss:$16 sps:$4 sm:$0xff]  }
 0x30c   :  { %4260 = vmatprep.subr.bf16.mxu0 %v8850_v50  ;;  %v8946_v50 = vld [vmem:[#allocation6 + $0x704] ss:$16 sps:$4 sm:$0xff]  }
 0x30e   :  { %4286 = vmatpush1.bf16.msra.mxu1 %v8890_v53 }
 0x30f   :  { %4261 = vmatpush2.bf16.msra.mxu0 %v8848_v17  ;;  %4287 = vmatprep.subr.bf16.mxu1 %v8898_v41 }
 0x310   :  { %4262 = vmatprep.subr.bf16.mxu0 %v8853_v29 }
 0x312   :  { %4288 = vmatpush1.bf16.msra.mxu1 %v8896_v57 }
 0x313   :  { %4263 = vmatpush2.bf16.msra.mxu0 %v8851_v31  ;;  %4289 = vmatprep.subr.bf16.mxu1 %v8904_v60 }
 0x314   :  { %4314 = vmatprep.subr.bf16.mxu0 %v8859_v46 }
 0x315   :  { %v9860_v20 = vpop.f32.mrf.mxu0 }
 0x316   :  { %4290 = vmatpush2.bf16.msra.mxu1 %v8902_v61  ;;  %v2426_v5 = vadd.f32 %v9860_v20, %v2066_v2 }
 0x317   :  { %v9862_v22 = vpop.f32.mrf.mxu0  ;;  %4291 = vmatprep.subr.bf16.mxu1 %v8910_v1 }
 0x318   :  { %v2428_v8 = vadd.f32 %v9862_v22, %v2070_v30  ;;  %v8932_v22 = vld [vmem:[#allocation6 + $0x740] ss:$16 sps:$4 sm:$0xff]  }
 0x319   :  { %v2429_v19 = vpop.f32.mrf.mxu0 }
 0x31a   :  { %4292 = vmatpush2.bf16.msra.mxu1 %v8908_v63  ;;  %v8934_v19 = vld [vmem:[#allocation6 + $0x744] ss:$16 sps:$4 sm:$0xff]  }
 0x31b   :  { %v2430_v47 = vpop.f32.mrf.mxu0  ;;  %4293 = vmatprep.subr.bf16.mxu1 %v8916_v4 }
 0x31c   :  { %v8940_v47 = vld [vmem:[#allocation6 + $0x724] ss:$16 sps:$4 sm:$0xff]  }
 0x31e   :  { %4294 = vmatpush2.bf16.msra.mxu1 %v8914_v3 }
 0x31f   :  { %4295 = vmatprep.subr.bf16.mxu1 %v8922_v23 }
 0x322   :  { %4296 = vmatpush2.bf16.msra.mxu1 %v8920_v10 }
 0x323   :  { %4297 = vmatprep.subr.bf16.mxu1 %v8928_v27 }
 0x326   :  { %4298 = vmatpush2.bf16.msra.mxu1 %v8926_v21 }
 0x327   :  { %4299 = vmatprep.subr.bf16.mxu1 %v8934_v19 }
 0x32a   :  { %4300 = vmatpush2.bf16.msra.mxu1 %v8932_v22 }
 0x32b   :  { %4301 = vmatprep.subr.bf16.mxu1 %v8940_v47 }
 0x32e   :  { %4302 = vmatpush2.bf16.msra.mxu1 %v8938_v33 }
 0x32f   :  { %4303 = vmatprep.subr.bf16.mxu1 %v8946_v50  ;;  %v9894_v50 = vld [vmem:[#allocation4 + $0x10] sm:$0xff] }
 0x332   :  { %4304 = vmatpush2.bf16.msra.mxu1 %v8944_v28 }
 0x333   :  { %4355 = vmatprep.subr.bf16.mxu1 %v8952_v32 }
 0x355   :  { %v2466_v6 = vpop.f32.mrf.mxu1  ;;  %v3115_v7 = vpop.f32.mrf.mxu0 }
 0x356   :  { %v2467_v26 = vadd.f32 %v2466_v6, %v2426_v5 }
 0x357   :  { %v2468_v9 = vpop.f32.mrf.mxu1  ;;  %v3117_v42 = vpop.f32.mrf.mxu0 }
 0x358   :  { %v7619_v12 = vmul.f32 -1.442695, %v2467_v26  ;;  %v2469_v13 = vadd.f32 %v2468_v9, %v2428_v8 }
 0x359   :  { %v2470_v14 = vpop.f32.mrf.mxu1  ;;  %v3119_v15 = vpop.f32.mrf.mxu0 }
 0x35a   :  { %9537 = vpow2.f32 %v7619_v12  ;;  %v7620_v16 = vmul.f32 -1.442695, %v2469_v13 }
 0x35b   :  { %v2471_v18 = vpop.f32.mrf.mxu1  ;;  %v3120_v20 = vpop.f32.mrf.mxu0 }
 0x35c   :  { %9539 = vpow2.f32 %v7620_v16 }
 0x367   :  { %v9538_v11 = vpop.eup %9537 }
 0x368   :  { %v2479_v17 = vadd.f32 1.0, %v9538_v11 }
 0x369   :  { %v9540_v29 = vpop.eup %9539 }
 0x36a   :  { %9541 = vrcp.f32 %v2479_v17  ;;  %v2480_v31 = vadd.f32 1.0, %v9540_v29  ;;  %v3386_v29 = vrot.slane %v9894_v50, %v9765_v38 }
 0x36c   :  { %9543 = vrcp.f32 %v2480_v31  ;;  %v3382_v31 = vrot.slane %v9894_v50, %v9762_v37 }
 0x375   :  { %v3156_v46 = vpop.f32.mrf.mxu1 }
 0x376   :  { %v9878_v54 = vadd.f32 %v3156_v46, %v3115_v7  ;;  %v9880_v34 = vpop.f32.mrf.mxu0 }
 0x377   :  { %v9542_v36 = vpop.eup %9541  ;;  %v3158_v39 = vpop.f32.mrf.mxu1 }
 0x378   :  { %2485 = vst [vmem:[%s10101_s5] sm:$0xff] %v9542_v36  ;;  %v3245_v40 = vrot.slane %v9878_v54, 4  ;;  %v3269_v43 = vmul.f32 %v9878_v54, %v9878_v54  ;;  %v3159_v44 = vadd.f32 %v3158_v39, %v3117_v42  ;;  %v9888_v45 = vpop.f32.mrf.mxu0  ;;  %v3406_v39 = vrot.slane %v3386_v29, %v9762_v37  ;;  %v8895_v29 = vld [vmem:[#allocation6 + $0x42c] ss:$16 sps:$4 sm:$0xff]  }
 0x379   :  { %v9544_v35 = vpop.eup %9543  ;;  %v3160_v49 = vpop.f32.mrf.mxu1 }
 0x37a   :  { %2486 = vst [vmem:[%s10101_s5 + $0x8] sm:$0xff] %v9544_v35  ;;  %v3246_v51 = vadd.f32 %v3245_v40, %v9878_v54  ;;  %v3273_v52 = vrot.slane %v3269_v43, 4  ;;  %v3251_v53 = vrot.slane %v3159_v44, 4  ;;  %v3270_v41 = vmul.f32 %v3159_v44, %v3159_v44  ;;  %v3242_v57 = vpop.f32.mrf.mxu0 }
 0x37b   :  { %v3161_v59 = vpop.f32.mrf.mxu1  ;;  %v3402_v40 = vrot.slane %v3382_v31, %v9762_v37 }
 0x37c   :  { %v3247_v60 = vrot.slane %v3246_v51, 2  ;;  %v3274_v61 = vadd.f32 %v3273_v52, %v3269_v43  ;;  %v3252_v62 = vadd.f32 %v3251_v53, %v3159_v44  ;;  %v3279_v63 = vrot.slane %v3270_v41, 4  ;;  %v3243_v1 = vpop.f32.mrf.mxu0 }
 0x37d   :  { %v8865_v1 = vld [vmem:[#allocation6 + $0x4cc] ss:$16 sps:$4 sm:$0xff]  }
 0x37e   :  { %v3248_v2 = vadd.f32 %v3247_v60, %v3246_v51  ;;  %v3275_v30 = vrot.slane %v3274_v61, 2  ;;  %v3253_v3 = vrot.slane %v3252_v62, 2  ;;  %v3280_v4 = vadd.f32 %v3279_v63, %v3270_v41 }
 0x380   :  { %v3249_v5 = vrot.slane %v3248_v2, 1  ;;  %v3276_v6 = vadd.f32 %v3275_v30, %v3274_v61  ;;  %v3254_v7 = vadd.f32 %v3253_v3, %v3252_v62  ;;  %v3281_v8 = vrot.slane %v3280_v4, 2  ;;  %v8857_v62 = vld [vmem:[#allocation6 + $0x4e8] ss:$16 sps:$4 sm:$0xff]   ;;  %v8877_v30 = vld [vmem:[#allocation6 + $0x48c] ss:$16 sps:$4 sm:$0xff]  }
 0x382   :  { %v3250_v26 = vadd.f32 %v3249_v5, %v3248_v2  ;;  %v3277_v9 = vrot.slane %v3276_v6, 1  ;;  %v3255_v42 = vrot.slane %v3254_v7, 1  ;;  %v3282_v10 = vadd.f32 %v3281_v8, %v3280_v4  ;;  %v8869_v2 = vld [vmem:[#allocation6 + $0x4a8] ss:$16 sps:$4 sm:$0xff]  }
 0x384   :  { %v3278_v23 = vadd.f32 %v3277_v9, %v3276_v6  ;;  %v3297_v12 = vmul.f32 0.125, %v3250_v26  ;;  %v3256_v13 = vadd.f32 %v3255_v42, %v3254_v7  ;;  %v3283_v14 = vrot.slane %v3282_v10, 1  ;;  %v8875_v6 = vld [vmem:[#allocation6 + $0x488] ss:$16 sps:$4 sm:$0xff]   ;;  %v8883_v9 = vld [vmem:[#allocation6 + $0x46c] ss:$16 sps:$4 sm:$0xff]  }
 0x386   :  { %v3301_v15 = vmul.f32 0.125, %v3278_v23  ;;  %v3305_v16 = vmul.f32 %v3297_v12, %v3297_v12  ;;  %v3284_v18 = vadd.f32 %v3283_v14, %v3282_v10  ;;  %v3298_v20 = vmul.f32 0.125, %v3256_v13  ;;  %v8881_v14 = vld [vmem:[#allocation6 + $0x468] ss:$16 sps:$4 sm:$0xff]  }
 0x387   :  { %v3331_v43 = vsub.f32 %v9878_v54, %v3297_v12  ;;  %v8863_v54 = vld [vmem:[#allocation6 + $0x4c8] ss:$16 sps:$4 sm:$0xff]  }
 0x388   :  { %v3309_v21 = vsub.f32 %v3301_v15, %v3305_v16  ;;  %v3302_v27 = vmul.f32 0.125, %v3284_v18  ;;  %v3306_v22 = vmul.f32 %v3298_v20, %v3298_v20  ;;  %v3332_v35 = vsub.f32 %v3159_v44, %v3298_v20  ;;  %v8871_v44 = vld [vmem:[#allocation6 + $0x4ac] ss:$16 sps:$4 sm:$0xff]  }
 0x389   :  { %v8889_v20 = vld [vmem:[#allocation6 + $0x44c] ss:$16 sps:$4 sm:$0xff]  }
 0x38a   :  { %v3313_v19 = vadd.f32 1e-05, %v3309_v21  ;;  %v3310_v33 = vsub.f32 %v3302_v27, %v3306_v22 }
 0x38c   :  { %v3314_v47 = vadd.f32 1e-05, %v3310_v33  ;;  %9545 = vrsqrt.f32 %v3313_v19  ;;  %v8887_v33 = vld [vmem:[#allocation6 + $0x448] ss:$16 sps:$4 sm:$0xff]  }
 0x38e   :  { %9547 = vrsqrt.f32 %v3314_v47 }
 0x399   :  { %v9546_v11 = vpop.eup %9545 }
 0x39b   :  { %v9548_v28 = vpop.eup %9547 }
 0x39c   :  { %v3325_v17 = vcombine.low %v9546_v11, %v9548_v28 }
 0x39e   :  { %v3329_v32 = vmul.f32 %v3325_v17, %v9894_v50 }
 0x3a0   :  { %v3344_v46 = vrot.slane %v3329_v32, %v9776_v55  ;;  %v3340_v36 = vrot.slane %v3329_v32, %v9772_v48 }
 0x3a2   :  { %v3364_v49 = vrot.slane %v3344_v46, %v9772_v48  ;;  %v3360_v51 = vrot.slane %v3340_v36, %v9772_v48 }
 0x3a4   :  { %v3374_v52 = vmul.f32 %v3364_v49, %v3332_v35  ;;  %v3373_v53 = vmul.f32 %v3360_v51, %v3331_v43  ;;  %v8901_v51 = vld [vmem:[#allocation6 + $0x40c] ss:$16 sps:$4 sm:$0xff]  }
 0x3a6   :  { %v3416_v41 = vadd.f32 %v3406_v39, %v3374_v52  ;;  %v3415_v57 = vadd.f32 %v3402_v40, %v3373_v53  ;;  %v8893_v39 = vld [vmem:[#allocation6 + $0x428] ss:$16 sps:$4 sm:$0xff]  }
 0x3a8   :  { %v3420_v59 = vmax.f32 %v3416_v41, 0.0  ;;  %v3419_v60 = vmax.f32 %v3415_v57, 0.0 }
 0x3aa   :  { %v3424_v61 = vpack.c.bf16 %v3420_v59, %v3420_v59  ;;  %v9908_v63 = vpack.c.bf16 %v3419_v60, %v3419_v60  ;;  %v8899_v59 = vld [vmem:[#allocation6 + $0x408] ss:$16 sps:$4 sm:$0xff]  }
 0x3ac   :  { %4264 = vmatprep.mubr.bf16.mxu0 %v3424_v61 }
 0x3ad   :  { %4265 = vmatmul.mubr.bf16.vlgmr.msra.gmra.mxu0 %v9908_v63 }
 0x3ae   :  { %4315 = vmatpush1.bf16.msra.mxu0 %v8857_v62  ;;  %4346 = vmatprep.mubr.bf16.mxu0 %v3424_v61  ;;  %v8907_v62 = vld [vmem:[#allocation6 + $0x5ec] ss:$16 sps:$4 sm:$0xff]  }
 0x3af   :  { %4316 = vmatprep.subr.bf16.mxu0 %v8865_v1 }
 0x3b2   :  { %4317 = vmatpush1.bf16.msra.mxu0 %v8863_v54 }
 0x3b3   :  { %4318 = vmatprep.subr.bf16.mxu0 %v8871_v44 }
 0x3b5   :  { %v3197_v3 = vpop.f32.mrf.mxu1 }
 0x3b6   :  { %v9912_v4 = vadd.f32 %v9880_v34, %v3197_v3  ;;  %4319 = vmatpush1.bf16.msra.mxu0 %v8869_v2  ;;  %v8905_v2 = vld [vmem:[#allocation6 + $0x5e8] ss:$16 sps:$4 sm:$0xff]  }
 0x3b7   :  { %v3199_v5 = vpop.f32.mrf.mxu1  ;;  %4320 = vmatprep.subr.bf16.mxu0 %v8877_v30  ;;  %v8913_v30 = vld [vmem:[#allocation6 + $0x5cc] ss:$16 sps:$4 sm:$0xff]  }
 0x3b8   :  { %v3257_v7 = vrot.slane %v9912_v4, 4  ;;  %v3271_v8 = vmul.f32 %v9912_v4, %v9912_v4  ;;  %v9918_v26 = vadd.f32 %v9888_v45, %v3199_v5  ;;  %v8911_v5 = vld [vmem:[#allocation6 + $0x5c8] ss:$16 sps:$4 sm:$0xff]  }
 0x3b9   :  { %v3201_v42 = vpop.f32.mrf.mxu1 }
 0x3ba   :  { %v3258_v10 = vadd.f32 %v3257_v7, %v9912_v4  ;;  %v3285_v23 = vrot.slane %v3271_v8, 4  ;;  %v3263_v34 = vrot.slane %v9918_v26, 4  ;;  %v3272_v12 = vmul.f32 %v9918_v26, %v9918_v26  ;;  %4321 = vmatpush1.bf16.msra.mxu0 %v8875_v6  ;;  %v8919_v6 = vld [vmem:[#allocation6 + $0x5ac] ss:$16 sps:$4 sm:$0xff]   ;;  %v8917_v7 = vld [vmem:[#allocation6 + $0x5a8] ss:$16 sps:$4 sm:$0xff]  }
 0x3bb   :  { %v3202_v13 = vpop.f32.mrf.mxu1  ;;  %4322 = vmatprep.subr.bf16.mxu0 %v8883_v9  ;;  %v8923_v9 = vld [vmem:[#allocation6 + $0x588] ss:$16 sps:$4 sm:$0xff]   ;;  %v8931_v42 = vld [vmem:[#allocation6 + $0x56c] ss:$16 sps:$4 sm:$0xff]  }
 0x3bc   :  { %v3259_v15 = vrot.slane %v3258_v10, 2  ;;  %v3286_v16 = vadd.f32 %v3285_v23, %v3271_v8  ;;  %v3264_v18 = vadd.f32 %v3263_v34, %v9918_v26  ;;  %v3291_v45 = vrot.slane %v3272_v12, 4  ;;  %v8925_v8 = vld [vmem:[#allocation6 + $0x58c] ss:$16 sps:$4 sm:$0xff]   ;;  %v8929_v23 = vld [vmem:[#allocation6 + $0x568] ss:$16 sps:$4 sm:$0xff]  }
 0x3bd   :  { %v9929_v13 = vld [vmem:[#allocation4 + $0x18] sm:$0xff] }
 0x3be   :  { %v3260_v21 = vadd.f32 %v3259_v15, %v3258_v10  ;;  %v3287_v27 = vrot.slane %v3286_v16, 2  ;;  %v3265_v22 = vrot.slane %v3264_v18, 2  ;;  %v3292_v19 = vadd.f32 %v3291_v45, %v3272_v12  ;;  %4323 = vmatpush1.bf16.msra.mxu0 %v8881_v14  ;;  %v8937_v12 = vld [vmem:[#allocation6 + $0x54c] ss:$16 sps:$4 sm:$0xff]  }
 0x3bf   :  { %4324 = vmatprep.subr.bf16.mxu0 %v8889_v20  ;;  %v3394_v15 = vrot.slane %v9929_v13, %v9765_v38  ;;  %v8943_v20 = vld [vmem:[#allocation6 + $0x52c] ss:$16 sps:$4 sm:$0xff]  }
 0x3c0   :  { %v3261_v47 = vrot.slane %v3260_v21, 1  ;;  %v3288_v11 = vadd.f32 %v3287_v27, %v3286_v16  ;;  %v3266_v28 = vadd.f32 %v3265_v22, %v3264_v18  ;;  %v3293_v17 = vrot.slane %v3292_v19, 2  ;;  %v8935_v18 = vld [vmem:[#allocation6 + $0x548] ss:$16 sps:$4 sm:$0xff]  }
 0x3c1   :  { %v3390_v16 = vrot.slane %v9929_v13, %v9762_v37  ;;  %v3414_v22 = vrot.slane %v3394_v15, %v9762_v37  ;;  %v8974_v15 = vld [vmem:[#allocation6 + $0x7e8] ss:$16 sps:$4 sm:$0xff]  }
 0x3c2   :  { %v3262_v31 = vadd.f32 %v3261_v47, %v3260_v21  ;;  %v3289_v32 = vrot.slane %v3288_v11, 1  ;;  %v3267_v46 = vrot.slane %v3266_v28, 1  ;;  %v3294_v36 = vadd.f32 %v3293_v17, %v3292_v19  ;;  %4325 = vmatpush1.bf16.msra.mxu0 %v8887_v33 }
 0x3c3   :  { %4326 = vmatprep.subr.bf16.mxu0 %v8895_v29  ;;  %v3410_v19 = vrot.slane %v3390_v16, %v9762_v37  ;;  %v8949_v29 = vld [vmem:[#allocation6 + $0x50c] ss:$16 sps:$4 sm:$0xff]   ;;  %v9016_v16 = vld [vmem:[#allocation7 + $0x210] ss:$8 sps:$4 sm:$0xff]  }
 0x3c4   :  { %v3290_v40 = vadd.f32 %v3289_v32, %v3288_v11  ;;  %v9925_v43 = vmul.f32 0.125, %v3262_v31  ;;  %v3268_v35 = vadd.f32 %v3267_v46, %v3266_v28  ;;  %v3295_v49 = vrot.slane %v3294_v36, 1  ;;  %v8941_v11 = vld [vmem:[#allocation6 + $0x528] ss:$16 sps:$4 sm:$0xff]  }
 0x3c5   :  { %v8947_v46 = vld [vmem:[#allocation6 + $0x508] ss:$16 sps:$4 sm:$0xff]  }
 0x3c6   :  { %v3303_v52 = vmul.f32 0.125, %v3290_v40  ;;  %v3307_v53 = vmul.f32 %v9925_v43, %v9925_v43  ;;  %v3296_v41 = vadd.f32 %v3295_v49, %v3294_v36  ;;  %v3300_v57 = vmul.f32 0.125, %v3268_v35  ;;  %4327 = vmatpush1.bf16.msra.mxu0 %v8893_v39  ;;  %v8955_v49 = vld [vmem:[#allocation6 + $0x6cc] ss:$16 sps:$4 sm:$0xff]  }
 0x3c7   :  { %4328 = vmatprep.subr.bf16.mxu0 %v8901_v51  ;;  %v3333_v33 = vsub.f32 %v9912_v4, %v9925_v43  ;;  %v8953_v51 = vld [vmem:[#allocation6 + $0x6c8] ss:$16 sps:$4 sm:$0xff]  }
 0x3c8   :  { %v3311_v60 = vsub.f32 %v3303_v52, %v3307_v53  ;;  %v3304_v61 = vmul.f32 0.125, %v3296_v41  ;;  %v3308_v1 = vmul.f32 %v3300_v57, %v3300_v57  ;;  %v3334_v47 = vsub.f32 %v9918_v26, %v3300_v57  ;;  %v8950_v26 = vld [vmem:[#allocation6 + $0x6e8] ss:$16 sps:$4 sm:$0xff]   ;;  %v8958_v52 = vld [vmem:[#allocation6 + $0x6ac] ss:$16 sps:$4 sm:$0xff]  }
 0x3c9   :  { %v8956_v53 = vld [vmem:[#allocation6 + $0x6a8] ss:$16 sps:$4 sm:$0xff]   ;;  %v8961_v41 = vld [vmem:[#allocation6 + $0x68c] ss:$16 sps:$4 sm:$0xff]  }
 0x3ca   :  { %v3315_v54 = vadd.f32 1e-05, %v3311_v60  ;;  %v3312_v44 = vsub.f32 %v3304_v61, %v3308_v1  ;;  %4329 = vmatpush1.bf16.msra.mxu0 %v8899_v59  ;;  %v8998_v57 = vld [vmem:[#allocation7 + $0x270] ss:$8 sps:$4 sm:$0xff]   ;;  %v9000_v59 = vld [vmem:[#allocation7 + $0x274] ss:$8 sps:$4 sm:$0xff]  }
 0x3cb   :  { %4330 = vmatprep.subr.bf16.mxu0 %v8907_v62  ;;  %v9003_v60 = vld [vmem:[#allocation7 + $0x264] ss:$8 sps:$4 sm:$0xff]   ;;  %v8959_v61 = vld [vmem:[#allocation6 + $0x688] ss:$16 sps:$4 sm:$0xff]   ;;  %v9006_v1 = vld [vmem:[#allocation7 + $0x254] ss:$8 sps:$4 sm:$0xff]  }
 0x3cc   :  { %v3316_v3 = vadd.f32 1e-05, %v3312_v44  ;;  %9549 = vrsqrt.f32 %v3315_v54  ;;  %v9001_v62 = vld [vmem:[#allocation7 + $0x260] ss:$8 sps:$4 sm:$0xff]   ;;  %v9004_v44 = vld [vmem:[#allocation7 + $0x250] ss:$8 sps:$4 sm:$0xff]  }
 0x3cd   :  { %v8962_v54 = vld [vmem:[#allocation6 + $0x668] ss:$16 sps:$4 sm:$0xff]  }
 0x3ce   :  { %9551 = vrsqrt.f32 %v3316_v3  ;;  %4331 = vmatpush2.bf16.msra.mxu0 %v8905_v2  ;;  %v8967_v2 = vld [vmem:[#allocation6 + $0x64c] ss:$16 sps:$4 sm:$0xff]   ;;  %v8965_v3 = vld [vmem:[#allocation6 + $0x648] ss:$16 sps:$4 sm:$0xff]  }
 0x3cf   :  { %4332 = vmatprep.subr.bf16.mxu0 %v8913_v30  ;;  %v9009_v30 = vld [vmem:[#allocation7 + $0x244] ss:$8 sps:$4 sm:$0xff]  }
 0x3d2   :  { %4333 = vmatpush2.bf16.msra.mxu0 %v8911_v5  ;;  %v9007_v5 = vld [vmem:[#allocation7 + $0x240] ss:$8 sps:$4 sm:$0xff]  }
 0x3d3   :  { %4334 = vmatprep.subr.bf16.mxu0 %v8919_v6  ;;  %v8970_v6 = vld [vmem:[#allocation6 + $0x62c] ss:$16 sps:$4 sm:$0xff]  }
 0x3d6   :  { %4335 = vmatpush2.bf16.msra.mxu0 %v8917_v7  ;;  %v9012_v7 = vld [vmem:[#allocation7 + $0x234] ss:$8 sps:$4 sm:$0xff]  }
 0x3d7   :  { %4336 = vmatprep.subr.bf16.mxu0 %v8925_v8  ;;  %v8968_v8 = vld [vmem:[#allocation6 + $0x628] ss:$16 sps:$4 sm:$0xff]  }
 0x3d9   :  { %v9550_v10 = vpop.eup %9549 }
 0x3da   :  { %4337 = vmatpush2.bf16.msra.mxu0 %v8923_v9  ;;  %v9010_v9 = vld [vmem:[#allocation7 + $0x230] ss:$8 sps:$4 sm:$0xff]  }
 0x3db   :  { %v9552_v34 = vpop.eup %9551  ;;  %4338 = vmatprep.subr.bf16.mxu0 %v8931_v42  ;;  %v8973_v42 = vld [vmem:[#allocation6 + $0x60c] ss:$16 sps:$4 sm:$0xff]  }
 0x3dc   :  { %v3326_v14 = vcombine.low %v9550_v10, %v9552_v34  ;;  %v9015_v10 = vld [vmem:[#allocation7 + $0x224] ss:$8 sps:$4 sm:$0xff]   ;;  %v9013_v34 = vld [vmem:[#allocation7 + $0x220] ss:$8 sps:$4 sm:$0xff]  }
 0x3de   :  { %4339 = vmatpush2.bf16.msra.mxu0 %v8929_v23  ;;  %v3330_v45 = vmul.f32 %v3326_v14, %v9929_v13  ;;  %v8971_v23 = vld [vmem:[#allocation6 + $0x608] ss:$16 sps:$4 sm:$0xff]   ;;  %v9018_v14 = vld [vmem:[#allocation7 + $0x214] ss:$8 sps:$4 sm:$0xff]  }
 0x3df   :  { %4340 = vmatprep.subr.bf16.mxu0 %v8937_v12  ;;  %v8976_v12 = vld [vmem:[#allocation6 + $0x7ec] ss:$16 sps:$4 sm:$0xff]  }
 0x3e0   :  { %v3352_v21 = vrot.slane %v3330_v45, %v9776_v55  ;;  %v3348_v27 = vrot.slane %v3330_v45, %v9772_v48  ;;  %v9021_v45 = vld [vmem:[#allocation7 + $0x204] ss:$8 sps:$4 sm:$0xff]  }
 0x3e2   :  { %4341 = vmatpush2.bf16.msra.mxu0 %v8935_v18  ;;  %v3372_v28 = vrot.slane %v3352_v21, %v9772_v48  ;;  %v3368_v17 = vrot.slane %v3348_v27, %v9772_v48  ;;  %v8979_v18 = vld [vmem:[#allocation6 + $0x7cc] ss:$16 sps:$4 sm:$0xff]   ;;  %v9019_v21 = vld [vmem:[#allocation7 + $0x200] ss:$8 sps:$4 sm:$0xff]  }
 0x3e3   :  { %4342 = vmatprep.subr.bf16.mxu0 %v8943_v20  ;;  %v8977_v20 = vld [vmem:[#allocation6 + $0x7c8] ss:$16 sps:$4 sm:$0xff]   ;;  %v8982_v27 = vld [vmem:[#allocation6 + $0x7ac] ss:$16 sps:$4 sm:$0xff]  }
 0x3e4   :  { %v3376_v31 = vmul.f32 %v3372_v28, %v3334_v47  ;;  %v3375_v32 = vmul.f32 %v3368_v17, %v3333_v33  ;;  %v9022_v33 = vld [vmem:[#allocation7 + $0x2f0] ss:$8 sps:$4 sm:$0xff]   ;;  %v8985_v47 = vld [vmem:[#allocation6 + $0x78c] ss:$16 sps:$4 sm:$0xff]   ;;  %v9025_v17 = vld [vmem:[#allocation7 + $0x2e0] ss:$8 sps:$4 sm:$0xff]  }
 0x3e5   :  { %v8983_v28 = vld [vmem:[#allocation6 + $0x788] ss:$16 sps:$4 sm:$0xff]  }
 0x3e6   :  { %4343 = vmatpush2.bf16.msra.mxu0 %v8941_v11  ;;  %v3418_v36 = vadd.f32 %v3414_v22, %v3376_v31  ;;  %v3417_v39 = vadd.f32 %v3410_v19, %v3375_v32  ;;  %v9024_v22 = vld [vmem:[#allocation7 + $0x2f4] ss:$8 sps:$4 sm:$0xff]   ;;  %v8980_v19 = vld [vmem:[#allocation6 + $0x7a8] ss:$16 sps:$4 sm:$0xff]   ;;  %v9027_v11 = vld [vmem:[#allocation7 + $0x2e4] ss:$8 sps:$4 sm:$0xff]  }
 0x3e7   :  { %4344 = vmatprep.subr.bf16.mxu0 %v8949_v29  ;;  %v8988_v29 = vld [vmem:[#allocation6 + $0x76c] ss:$16 sps:$4 sm:$0xff]   ;;  %v8986_v32 = vld [vmem:[#allocation6 + $0x768] ss:$16 sps:$4 sm:$0xff]  }
 0x3e8   :  { %v3422_v40 = vmax.f32 %v3418_v36, 0.0  ;;  %v3421_v35 = vmax.f32 %v3417_v39, 0.0  ;;  %v9030_v31 = vld [vmem:[#allocation7 + $0x2d4] ss:$8 sps:$4 sm:$0xff]   ;;  %v9033_v39 = vld [vmem:[#allocation7 + $0x2c4] ss:$8 sps:$4 sm:$0xff]  }
 0x3e9   :  { %v8991_v36 = vld [vmem:[#allocation6 + $0x74c] ss:$16 sps:$4 sm:$0xff]  }
 0x3ea   :  { %4345 = vmatpush2.bf16.msra.mxu0 %v8947_v46  ;;  %v3426_v4 = vpack.c.bf16 %v3422_v40, %v3422_v40  ;;  %v9945_v43 = vpack.c.bf16 %v3421_v35, %v3421_v35  ;;  %v9028_v46 = vld [vmem:[#allocation7 + $0x2d0] ss:$8 sps:$4 sm:$0xff]   ;;  %v9031_v35 = vld [vmem:[#allocation7 + $0x2c0] ss:$8 sps:$4 sm:$0xff]  }
 0x3eb   :  { %4807 = vmatprep.subr.bf16.mxu0 %v9000_v59  ;;  %v8989_v40 = vld [vmem:[#allocation6 + $0x748] ss:$16 sps:$4 sm:$0xff]   ;;  %v9042_v59 = vld [vmem:[#allocation7 + $0x294] ss:$8 sps:$4 sm:$0xff]  }
 0x3ec   :  { %4305 = vmatprep.mubr.bf16.mxu1 %v3426_v4 }
 0x3ed   :  { %4347 = vmatmul.mubr.bf16.vlgmr.msra.gmra.mxu0 %v9908_v63  ;;  %4306 = vmatmul.mubr.bf16.vlgmr.msra.gmra.mxu1 %v9945_v43  ;;  %v8964_v63 = vld [vmem:[#allocation6 + $0x66c] ss:$16 sps:$4 sm:$0xff]  }
 0x3ee   :  { %4356 = vmatpush1.bf16.msra.mxu1 %v8950_v26  ;;  %4387 = vmatprep.mubr.bf16.mxu1 %v3426_v4  ;;  %v8994_v4 = vld [vmem:[#allocation6 + $0x72c] ss:$16 sps:$4 sm:$0xff]  }
 0x3ef   :  { %4357 = vmatprep.subr.bf16.mxu1 %v8955_v49  ;;  %4808 = vmatpush1.bf16.msra.mxu0 %v8998_v57  ;;  %v9036_v26 = vld [vmem:[#allocation7 + $0x2b4] ss:$8 sps:$4 sm:$0xff]   ;;  %v8992_v49 = vld [vmem:[#allocation6 + $0x728] ss:$16 sps:$4 sm:$0xff]  }
 0x3f0   :  { %4809 = vmatprep.subr.bf16.mxu0 %v9003_v60  ;;  %v9037_v57 = vld [vmem:[#allocation7 + $0x2a0] ss:$8 sps:$4 sm:$0xff]   ;;  %v9040_v60 = vld [vmem:[#allocation7 + $0x290] ss:$8 sps:$4 sm:$0xff]  }
 0x3f2   :  { %4358 = vmatpush1.bf16.msra.mxu1 %v8953_v51  ;;  %v9034_v51 = vld [vmem:[#allocation7 + $0x2b0] ss:$8 sps:$4 sm:$0xff]  }
 0x3f3   :  { %4359 = vmatprep.subr.bf16.mxu1 %v8958_v52  ;;  %4810 = vmatpush1.bf16.msra.mxu0 %v9001_v62  ;;  %v8997_v52 = vld [vmem:[#allocation6 + $0x70c] ss:$16 sps:$4 sm:$0xff]   ;;  %v9043_v62 = vld [vmem:[#allocation7 + $0x280] ss:$8 sps:$4 sm:$0xff]  }
 0x3f4   :  { %4811 = vmatprep.subr.bf16.mxu0 %v9006_v1  ;;  %v9048_v1 = vld [vmem:[#allocation7 + $0x374] ss:$8 sps:$4 sm:$0xff]  }
 0x3f6   :  { %4360 = vmatpush1.bf16.msra.mxu1 %v8956_v53  ;;  %v9039_v53 = vld [vmem:[#allocation7 + $0x2a4] ss:$8 sps:$4 sm:$0xff]  }
 0x3f7   :  { %4361 = vmatprep.subr.bf16.mxu1 %v8961_v41  ;;  %4812 = vmatpush1.bf16.msra.mxu0 %v9004_v44  ;;  %v8995_v41 = vld [vmem:[#allocation6 + $0x708] ss:$16 sps:$4 sm:$0xff]   ;;  %v9051_v44 = vld [vmem:[#allocation7 + $0x364] ss:$8 sps:$4 sm:$0xff]  }
 0x3f8   :  { %4813 = vmatprep.subr.bf16.mxu0 %v9009_v30  ;;  %v9052_v30 = vld [vmem:[#allocation7 + $0x350] ss:$8 sps:$4 sm:$0xff]  }
 0x3fa   :  { %4362 = vmatpush1.bf16.msra.mxu1 %v8959_v61  ;;  %v9045_v61 = vld [vmem:[#allocation7 + $0x284] ss:$8 sps:$4 sm:$0xff]  }
 0x3fb   :  { %4363 = vmatprep.subr.bf16.mxu1 %v8964_v63  ;;  %4814 = vmatpush1.bf16.msra.mxu0 %v9007_v5  ;;  %v9046_v63 = vld [vmem:[#allocation7 + $0x370] ss:$8 sps:$4 sm:$0xff]   ;;  %v9055_v5 = vld [vmem:[#allocation7 + $0x340] ss:$8 sps:$4 sm:$0xff]  }
 0x3fc   :  { %4815 = vmatprep.subr.bf16.mxu0 %v9012_v7  ;;  %v9058_v7 = vld [vmem:[#allocation7 + $0x330] ss:$8 sps:$4 sm:$0xff]  }
 0x3fe   :  { %4364 = vmatpush1.bf16.msra.mxu1 %v8962_v54  ;;  %v9049_v54 = vld [vmem:[#allocation7 + $0x360] ss:$8 sps:$4 sm:$0xff]  }
 0x3ff   :  { %4365 = vmatprep.subr.bf16.mxu1 %v8967_v2  ;;  %4816 = vmatpush1.bf16.msra.mxu0 %v9010_v9  ;;  %v9054_v2 = vld [vmem:[#allocation7 + $0x354] ss:$8 sps:$4 sm:$0xff]   ;;  %v9061_v9 = vld [vmem:[#allocation7 + $0x320] ss:$8 sps:$4 sm:$0xff]  }
 0x400   :  { %4817 = vmatprep.subr.bf16.mxu0 %v9015_v10  ;;  %v9064_v10 = vld [vmem:[#allocation7 + $0x310] ss:$8 sps:$4 sm:$0xff]  }
 0x402   :  { %4366 = vmatpush1.bf16.msra.mxu1 %v8965_v3  ;;  %v9075_v3 = vld [vmem:[#allocation2 + $0x6e4] ss:$16 sps:$4 sm:$0xff]  }
 0x403   :  { %4367 = vmatprep.subr.bf16.mxu1 %v8970_v6  ;;  %4818 = vmatpush1.bf16.msra.mxu0 %v9013_v34  ;;  %v9060_v6 = vld [vmem:[#allocation7 + $0x334] ss:$8 sps:$4 sm:$0xff]   ;;  %v9067_v34 = vld [vmem:[#allocation7 + $0x300] ss:$8 sps:$4 sm:$0xff]  }
 0x404   :  { %4819 = vmatprep.subr.bf16.mxu0 %v9018_v14  ;;  %v9070_v14 = vld [vmem:[#allocation7 + $0x3f0] ss:$8 sps:$4 sm:$0xff]  }
 0x406   :  { %4368 = vmatpush1.bf16.msra.mxu1 %v8968_v8  ;;  %v9063_v8 = vld [vmem:[#allocation7 + $0x324] ss:$8 sps:$4 sm:$0xff]  }
 0x407   :  { %4369 = vmatprep.subr.bf16.mxu1 %v8973_v42  ;;  %4820 = vmatpush1.bf16.msra.mxu0 %v9016_v16  ;;  %v9066_v42 = vld [vmem:[#allocation7 + $0x314] ss:$8 sps:$4 sm:$0xff]   ;;  %v9076_v16 = vld [vmem:[#allocation7 + $0x3e0] ss:$8 sps:$4 sm:$0xff]  }
 0x408   :  { %4821 = vmatprep.subr.bf16.mxu0 %v9021_v45  ;;  %v9082_v45 = vld [vmem:[#allocation7 + $0x3d0] ss:$8 sps:$4 sm:$0xff]  }
 0x40a   :  { %4370 = vmatpush1.bf16.msra.mxu1 %v8971_v23  ;;  %v9069_v23 = vld [vmem:[#allocation7 + $0x304] ss:$8 sps:$4 sm:$0xff]  }
 0x40b   :  { %4371 = vmatprep.subr.bf16.mxu1 %v8976_v12  ;;  %4822 = vmatpush1.bf16.msra.mxu0 %v9019_v21  ;;  %v9072_v12 = vld [vmem:[#allocation7 + $0x3f4] ss:$8 sps:$4 sm:$0xff]   ;;  %v9088_v21 = vld [vmem:[#allocation7 + $0x3c0] ss:$8 sps:$4 sm:$0xff]  }
 0x40c   :  { %4823 = vmatprep.subr.bf16.mxu0 %v9024_v22  ;;  %v9094_v22 = vld [vmem:[#allocation7 + $0x3b0] ss:$8 sps:$4 sm:$0xff]  }
 0x40e   :  { %4372 = vmatpush2.bf16.msra.mxu1 %v8974_v15  ;;  %v9078_v15 = vld [vmem:[#allocation7 + $0x3e4] ss:$8 sps:$4 sm:$0xff]  }
 0x40f   :  { %4373 = vmatprep.subr.bf16.mxu1 %v8979_v18  ;;  %4824 = vmatpush2.bf16.msra.mxu0 %v9022_v33  ;;  %v9084_v18 = vld [vmem:[#allocation7 + $0x3d4] ss:$8 sps:$4 sm:$0xff]   ;;  %v9100_v33 = vld [vmem:[#allocation7 + $0x3a0] ss:$8 sps:$4 sm:$0xff]  }
 0x410   :  { %4825 = vmatprep.subr.bf16.mxu0 %v9027_v11 }
 0x412   :  { %4374 = vmatpush2.bf16.msra.mxu1 %v8977_v20  ;;  %v9090_v20 = vld [vmem:[#allocation7 + $0x3c4] ss:$8 sps:$4 sm:$0xff]  }
 0x413   :  { %4375 = vmatprep.subr.bf16.mxu1 %v8982_v27  ;;  %4826 = vmatpush2.bf16.msra.mxu0 %v9025_v17  ;;  %v9096_v27 = vld [vmem:[#allocation7 + $0x3b4] ss:$8 sps:$4 sm:$0xff]  }
 0x414   :  { %4827 = vmatprep.subr.bf16.mxu0 %v9030_v31 }
 0x416   :  { %4376 = vmatpush2.bf16.msra.mxu1 %v8980_v19  ;;  %v9102_v19 = vld [vmem:[#allocation7 + $0x3a4] ss:$8 sps:$4 sm:$0xff]  }
 0x417   :  { %4377 = vmatprep.subr.bf16.mxu1 %v8985_v47  ;;  %4828 = vmatpush2.bf16.msra.mxu0 %v9028_v46  ;;  %v9108_v47 = vld [vmem:[#allocation7 + $0x394] ss:$8 sps:$4 sm:$0xff]  }
 0x418   :  { %4829 = vmatprep.subr.bf16.mxu0 %v9033_v39  ;;  %v3559_v39 = vrot.slane %v9894_v50, %v9819_v24 }
 0x41a   :  { %4378 = vmatpush2.bf16.msra.mxu1 %v8983_v28  ;;  %v9106_v28 = vld [vmem:[#allocation7 + $0x390] ss:$8 sps:$4 sm:$0xff]  }
 0x41b   :  { %4379 = vmatprep.subr.bf16.mxu1 %v8988_v29  ;;  %4830 = vmatpush2.bf16.msra.mxu0 %v9031_v35  ;;  %v9114_v29 = vld [vmem:[#allocation7 + $0x384] ss:$8 sps:$4 sm:$0xff]   ;;  %v3579_v35 = vrot.slane %v3559_v39, %v9819_v24 }
 0x41c   :  { %4831 = vmatprep.subr.bf16.mxu0 %v9036_v26 }
 0x41e   :  { %4380 = vmatpush2.bf16.msra.mxu1 %v8986_v32  ;;  %v9112_v32 = vld [vmem:[#allocation7 + $0x380] ss:$8 sps:$4 sm:$0xff]  }
 0x41f   :  { %4381 = vmatprep.subr.bf16.mxu1 %v8991_v36  ;;  %4832 = vmatpush2.bf16.msra.mxu0 %v9034_v51  ;;  %v9123_v36 = vld [vmem:[#allocation2 + $0x8e4] ss:$16 sps:$4 sm:$0xff]  }
 0x420   :  { %4833 = vmatprep.subr.bf16.mxu0 %v9039_v53 }
 0x422   :  { %4382 = vmatpush2.bf16.msra.mxu1 %v8989_v40  ;;  %v3563_v40 = vrot.slane %v9894_v50, %v9822_v25  ;;  %v9963_v50 = vld [vmem:[%s10096_s0 + $0x18] sm:$0xff] }
 0x423   :  { %4383 = vmatprep.subr.bf16.mxu1 %v8994_v4  ;;  %4834 = vmatpush2.bf16.msra.mxu0 %v9037_v57 }
 0x424   :  { %4835 = vmatprep.subr.bf16.mxu0 %v9042_v59  ;;  %v3583_v4 = vrot.slane %v3563_v40, %v9819_v24  ;;  %v9154_v40 = vld [vmem:[#allocation2 + $0x720] ss:$16 sps:$4 sm:$0xff]  }
 0x426   :  { %4384 = vmatpush2.bf16.msra.mxu1 %v8992_v49 }
 0x427   :  { %4385 = vmatprep.subr.bf16.mxu1 %v8997_v52  ;;  %4836 = vmatpush2.bf16.msra.mxu0 %v9040_v60 }
 0x428   :  { %4837 = vmatprep.subr.bf16.mxu0 %v9045_v61 }
 0x42a   :  { %4386 = vmatpush2.bf16.msra.mxu1 %v8995_v41 }
 0x42b   :  { %4838 = vmatpush2.bf16.msra.mxu0 %v9043_v62  ;;  %4848 = vmatprep.subr.bf16.mxu1 %v9048_v1 }
 0x42c   :  { %5498 = vmatprep.subr.bf16.mxu0 %v9075_v3  ;;  %v9081_v3 = vld [vmem:[#allocation2 + $0x6c4] ss:$16 sps:$4 sm:$0xff]  }
 0x42d   :  { %4388 = vmatmul.mubr.bf16.vlgmr.msra.gmra.mxu1 %v9945_v43  ;;  %v9057_v43 = vld [vmem:[#allocation7 + $0x344] ss:$8 sps:$4 sm:$0xff]  }
 0x42e   :  { %4849 = vmatpush1.bf16.msra.mxu1 %v9046_v63 }
 0x42f   :  { %4850 = vmatprep.subr.bf16.mxu1 %v9051_v44 }
 0x432   :  { %4851 = vmatpush1.bf16.msra.mxu1 %v9049_v54 }
 0x433   :  { %4852 = vmatprep.subr.bf16.mxu1 %v9054_v2  ;;  %v9073_v2 = vld [vmem:[#allocation2 + $0x6e0] ss:$16 sps:$4 sm:$0xff]  }
 0x436   :  { %4853 = vmatpush1.bf16.msra.mxu1 %v9052_v30  ;;  %v9967_v30 = vcombine.high %v9963_v50, %v9963_v50 }
 0x437   :  { %4854 = vmatprep.subr.bf16.mxu1 %v9057_v43 }
 0x43a   :  { %4855 = vmatpush1.bf16.msra.mxu1 %v9055_v5  ;;  %v9079_v5 = vld [vmem:[#allocation2 + $0x6c0] ss:$16 sps:$4 sm:$0xff]  }
 0x43b   :  { %4856 = vmatprep.subr.bf16.mxu1 %v9060_v6  ;;  %v9087_v6 = vld [vmem:[#allocation2 + $0x6a4] ss:$16 sps:$4 sm:$0xff]  }
 0x43e   :  { %4857 = vmatpush1.bf16.msra.mxu1 %v9058_v7  ;;  %v9085_v7 = vld [vmem:[#allocation2 + $0x6a0] ss:$16 sps:$4 sm:$0xff]  }
 0x43f   :  { %4858 = vmatprep.subr.bf16.mxu1 %v9063_v8  ;;  %v9093_v8 = vld [vmem:[#allocation2 + $0x684] ss:$16 sps:$4 sm:$0xff]  }
 0x442   :  { %4859 = vmatpush1.bf16.msra.mxu1 %v9061_v9  ;;  %v9091_v9 = vld [vmem:[#allocation2 + $0x680] ss:$16 sps:$4 sm:$0xff]  }
 0x443   :  { %4860 = vmatprep.subr.bf16.mxu1 %v9066_v42  ;;  %v9099_v42 = vld [vmem:[#allocation2 + $0x664] ss:$16 sps:$4 sm:$0xff]  }
 0x446   :  { %4861 = vmatpush1.bf16.msra.mxu1 %v9064_v10  ;;  %v9097_v10 = vld [vmem:[#allocation2 + $0x660] ss:$16 sps:$4 sm:$0xff]  }
 0x447   :  { %4862 = vmatprep.subr.bf16.mxu1 %v9069_v23  ;;  %v9105_v23 = vld [vmem:[#allocation2 + $0x644] ss:$16 sps:$4 sm:$0xff]  }
 0x44a   :  { %4863 = vmatpush1.bf16.msra.mxu1 %v9067_v34  ;;  %v9103_v34 = vld [vmem:[#allocation2 + $0x640] ss:$16 sps:$4 sm:$0xff]  }
 0x44b   :  { %4864 = vmatprep.subr.bf16.mxu1 %v9072_v12  ;;  %v9111_v12 = vld [vmem:[#allocation2 + $0x624] ss:$16 sps:$4 sm:$0xff]  }
 0x44e   :  { %4865 = vmatpush2.bf16.msra.mxu1 %v9070_v14  ;;  %v9109_v14 = vld [vmem:[#allocation2 + $0x620] ss:$16 sps:$4 sm:$0xff]  }
 0x44f   :  { %4866 = vmatprep.subr.bf16.mxu1 %v9078_v15  ;;  %v9117_v15 = vld [vmem:[#allocation2 + $0x604] ss:$16 sps:$4 sm:$0xff]  }
 0x452   :  { %4867 = vmatpush2.bf16.msra.mxu1 %v9076_v16  ;;  %v9115_v16 = vld [vmem:[#allocation2 + $0x600] ss:$16 sps:$4 sm:$0xff]  }
 0x453   :  { %4868 = vmatprep.subr.bf16.mxu1 %v9084_v18  ;;  %v9120_v18 = vld [vmem:[#allocation2 + $0x7e4] ss:$16 sps:$4 sm:$0xff]  }
 0x456   :  { %4869 = vmatpush2.bf16.msra.mxu1 %v9082_v45  ;;  %v9118_v45 = vld [vmem:[#allocation2 + $0x7e0] ss:$16 sps:$4 sm:$0xff]  }
 0x457   :  { %4870 = vmatprep.subr.bf16.mxu1 %v9090_v20  ;;  %v9126_v20 = vld [vmem:[#allocation2 + $0x7c4] ss:$16 sps:$4 sm:$0xff]  }
 0x45a   :  { %4871 = vmatpush2.bf16.msra.mxu1 %v9088_v21  ;;  %v9124_v21 = vld [vmem:[#allocation2 + $0x7c0] ss:$16 sps:$4 sm:$0xff]  }
 0x45b   :  { %4872 = vmatprep.subr.bf16.mxu1 %v9096_v27  ;;  %v9132_v27 = vld [vmem:[#allocation2 + $0x7a4] ss:$16 sps:$4 sm:$0xff]  }
 0x45e   :  { %4873 = vmatpush2.bf16.msra.mxu1 %v9094_v22  ;;  %v9130_v22 = vld [vmem:[#allocation2 + $0x7a0] ss:$16 sps:$4 sm:$0xff]  }
 0x45f   :  { %4874 = vmatprep.subr.bf16.mxu1 %v9102_v19  ;;  %v9138_v19 = vld [vmem:[#allocation2 + $0x784] ss:$16 sps:$4 sm:$0xff]  }
 0x462   :  { %4875 = vmatpush2.bf16.msra.mxu1 %v9100_v33  ;;  %v9136_v33 = vld [vmem:[#allocation2 + $0x780] ss:$16 sps:$4 sm:$0xff]  }
 0x463   :  { %4876 = vmatprep.subr.bf16.mxu1 %v9108_v47  ;;  %v9144_v47 = vld [vmem:[#allocation2 + $0x764] ss:$16 sps:$4 sm:$0xff]  }
 0x466   :  { %4877 = vmatpush2.bf16.msra.mxu1 %v9106_v28  ;;  %v9142_v28 = vld [vmem:[#allocation2 + $0x760] ss:$16 sps:$4 sm:$0xff]  }
 0x467   :  { %4878 = vmatprep.subr.bf16.mxu1 %v9114_v29  ;;  %v3571_v29 = vrot.slane %v9929_v13, %v9822_v25 }
 0x46a   :  { %4879 = vmatpush2.bf16.msra.mxu1 %v9112_v32  ;;  %v9148_v32 = vld [vmem:[#allocation2 + $0x740] ss:$16 sps:$4 sm:$0xff]  }
 0x46b   :  { %5539 = vmatprep.subr.bf16.mxu1 %v9123_v36  ;;  %v3591_v36 = vrot.slane %v3571_v29, %v9819_v24  ;;  %v9174_v29 = vld [vmem:[#allocation2 + $0x6cc] ss:$16 sps:$4 sm:$0xff]  }
 0x46d   :  { %v4266_v11 = vpop.f32.mrf.mxu0 }
 0x46e   :  { %v4267_v26 = vadd.f32 %v4266_v11, %v3579_v35  ;;  %v3567_v11 = vrot.slane %v9929_v13, %v9819_v24 }
 0x46f   :  { %v4268_v17 = vpop.f32.mrf.mxu0 }
 0x470   :  { %v4269_v52 = vadd.f32 %v4268_v17, %v3583_v4  ;;  %v9150_v17 = vld [vmem:[#allocation2 + $0x744] ss:$16 sps:$4 sm:$0xff]  }
 0x471   :  { %v4270_v31 = vpop.f32.mrf.mxu0  ;;  %v9162_v4 = vld [vmem:[#allocation2 + $0x704] ss:$16 sps:$4 sm:$0xff]  }
 0x472   :  { %v3587_v31 = vrot.slane %v3567_v11, %v9819_v24  ;;  %v9232_v11 = vld [vmem:[#allocation2 + $0x808] ss:$16 sps:$4 sm:$0xff]  }
 0x473   :  { %v4271_v46 = vpop.f32.mrf.mxu0 }
 0x474   :  { %v9156_v46 = vld [vmem:[#allocation2 + $0x724] ss:$16 sps:$4 sm:$0xff]  }
 0x4ad   :  { %v9956_v49 = vpop.f32.mrf.mxu0  ;;  %v4307_v51 = vpop.f32.mrf.mxu1 }
 0x4ae   :  { %v4308_v53 = vadd.f32 %v4307_v51, %v4267_v26  ;;  %v4349_v39 = vadd.f32 %v9956_v49, %v3587_v31  ;;  %v9980_v49 = vcombine.low %v9963_v50, %v9963_v50  ;;  %v9196_v50 = vld [vmem:[#allocation2 + $0x8c8] ss:$16 sps:$4 sm:$0xff]  }
 0x4af   :  { %v9958_v41 = vpop.f32.mrf.mxu0  ;;  %v4309_v57 = vpop.f32.mrf.mxu1  ;;  %v9172_v31 = vld [vmem:[#allocation2 + $0x6c8] ss:$16 sps:$4 sm:$0xff]  }
 0x4b0   :  { %v4310_v59 = vadd.f32 %v4309_v57, %v4269_v52  ;;  %v4396_v60 = vmax.f32 %v4308_v53, 0.0  ;;  %v4351_v26 = vadd.f32 %v9958_v41, %v3591_v36  ;;  %v9160_v53 = vld [vmem:[#allocation2 + $0x700] ss:$16 sps:$4 sm:$0xff]   ;;  %v9129_v41 = vld [vmem:[#allocation2 + $0x8c4] ss:$16 sps:$4 sm:$0xff]  }
 0x4b1   :  { %v4352_v61 = vpop.f32.mrf.mxu0  ;;  %v4311_v62 = vpop.f32.mrf.mxu1  ;;  %v9180_v36 = vld [vmem:[#allocation2 + $0x68c] ss:$16 sps:$4 sm:$0xff]  }
 0x4b2   :  { %v4397_v63 = vmax.f32 %v4310_v59, 0.0  ;;  %v4400_v43 = vpack.c.bf16 %v4396_v60, %v4396_v60  ;;  %v9192_v60 = vld [vmem:[#allocation2 + $0x8ec] ss:$16 sps:$4 sm:$0xff]  }
 0x4b3   :  { %v4353_v1 = vpop.f32.mrf.mxu0  ;;  %v4312_v54 = vpop.f32.mrf.mxu1 }
 0x4b4   :  { %v4401_v44 = vpack.c.bf16 %v4397_v63, %v4397_v63  ;;  %v9121_v1 = vld [vmem:[#allocation2 + $0x8e0] ss:$16 sps:$4 sm:$0xff]  }
 0x4b6   :  { %4839 = vmatprep.mubr.bf16.mxu0 %v4401_v44  ;;  %v9190_v44 = vld [vmem:[#allocation2 + $0x8e8] ss:$16 sps:$4 sm:$0xff]  }
 0x4b7   :  { %4840 = vmatmul.mubr.bf16.vlgmr.msra.gmra.mxu0 %v4400_v43  ;;  %v9127_v43 = vld [vmem:[#allocation2 + $0x8c0] ss:$16 sps:$4 sm:$0xff]  }
 0x4b8   :  { %5499 = vmatpush1.bf16.msra.mxu0 %v9073_v2  ;;  %5530 = vmatprep.mubr.bf16.mxu0 %v9967_v30  ;;  %v9198_v2 = vld [vmem:[#allocation2 + $0x8cc] ss:$16 sps:$4 sm:$0xff]  }
 0x4b9   :  { %5500 = vmatprep.subr.bf16.mxu0 %v9081_v3  ;;  %v9135_v3 = vld [vmem:[#allocation2 + $0x8a4] ss:$16 sps:$4 sm:$0xff]  }
 0x4bc   :  { %5501 = vmatpush1.bf16.msra.mxu0 %v9079_v5  ;;  %v9204_v5 = vld [vmem:[#allocation2 + $0x8ac] ss:$16 sps:$4 sm:$0xff]  }
 0x4bd   :  { %5502 = vmatprep.subr.bf16.mxu0 %v9087_v6  ;;  %v9133_v6 = vld [vmem:[#allocation2 + $0x8a0] ss:$16 sps:$4 sm:$0xff]  }
 0x4c0   :  { %5503 = vmatpush1.bf16.msra.mxu0 %v9085_v7  ;;  %v9141_v7 = vld [vmem:[#allocation2 + $0x884] ss:$16 sps:$4 sm:$0xff]  }
 0x4c1   :  { %5504 = vmatprep.subr.bf16.mxu0 %v9093_v8  ;;  %v9202_v8 = vld [vmem:[#allocation2 + $0x8a8] ss:$16 sps:$4 sm:$0xff]  }
 0x4c4   :  { %5505 = vmatpush1.bf16.msra.mxu0 %v9091_v9  ;;  %v9210_v9 = vld [vmem:[#allocation2 + $0x88c] ss:$16 sps:$4 sm:$0xff]  }
 0x4c5   :  { %5506 = vmatprep.subr.bf16.mxu0 %v9099_v42  ;;  %v9139_v42 = vld [vmem:[#allocation2 + $0x880] ss:$16 sps:$4 sm:$0xff]  }
 0x4c8   :  { %5507 = vmatpush1.bf16.msra.mxu0 %v9097_v10  ;;  %v9147_v10 = vld [vmem:[#allocation2 + $0x864] ss:$16 sps:$4 sm:$0xff]  }
 0x4c9   :  { %5508 = vmatprep.subr.bf16.mxu0 %v9105_v23  ;;  %v9208_v23 = vld [vmem:[#allocation2 + $0x888] ss:$16 sps:$4 sm:$0xff]  }
 0x4cc   :  { %5509 = vmatpush1.bf16.msra.mxu0 %v9103_v34  ;;  %v9216_v34 = vld [vmem:[#allocation2 + $0x86c] ss:$16 sps:$4 sm:$0xff]  }
 0x4cd   :  { %5510 = vmatprep.subr.bf16.mxu0 %v9111_v12  ;;  %v9145_v12 = vld [vmem:[#allocation2 + $0x860] ss:$16 sps:$4 sm:$0xff]  }
 0x4d0   :  { %5511 = vmatpush1.bf16.msra.mxu0 %v9109_v14  ;;  %v9214_v14 = vld [vmem:[#allocation2 + $0x868] ss:$16 sps:$4 sm:$0xff]  }
 0x4d1   :  { %5512 = vmatprep.subr.bf16.mxu0 %v9117_v15  ;;  %v9222_v15 = vld [vmem:[#allocation2 + $0x84c] ss:$16 sps:$4 sm:$0xff]  }
 0x4d4   :  { %5513 = vmatpush1.bf16.msra.mxu0 %v9115_v16  ;;  %v9151_v16 = vld [vmem:[#allocation2 + $0x840] ss:$16 sps:$4 sm:$0xff]  }
 0x4d5   :  { %5514 = vmatprep.subr.bf16.mxu0 %v9120_v18  ;;  %v9159_v18 = vld [vmem:[#allocation2 + $0x824] ss:$16 sps:$4 sm:$0xff]  }
 0x4d8   :  { %5515 = vmatpush2.bf16.msra.mxu0 %v9118_v45  ;;  %v9220_v45 = vld [vmem:[#allocation2 + $0x848] ss:$16 sps:$4 sm:$0xff]  }
 0x4d9   :  { %5516 = vmatprep.subr.bf16.mxu0 %v9126_v20  ;;  %v9228_v20 = vld [vmem:[#allocation2 + $0x82c] ss:$16 sps:$4 sm:$0xff]  }
 0x4dc   :  { %5517 = vmatpush2.bf16.msra.mxu0 %v9124_v21  ;;  %v9157_v21 = vld [vmem:[#allocation2 + $0x820] ss:$16 sps:$4 sm:$0xff]  }
 0x4dd   :  { %5518 = vmatprep.subr.bf16.mxu0 %v9132_v27  ;;  %v9165_v27 = vld [vmem:[#allocation2 + $0x804] ss:$16 sps:$4 sm:$0xff]  }
 0x4e0   :  { %5519 = vmatpush2.bf16.msra.mxu0 %v9130_v22  ;;  %v9226_v22 = vld [vmem:[#allocation2 + $0x828] ss:$16 sps:$4 sm:$0xff]  }
 0x4e1   :  { %5520 = vmatprep.subr.bf16.mxu0 %v9138_v19  ;;  %v9234_v19 = vld [vmem:[#allocation2 + $0x80c] ss:$16 sps:$4 sm:$0xff]  }
 0x4e4   :  { %5521 = vmatpush2.bf16.msra.mxu0 %v9136_v33  ;;  %v9163_v33 = vld [vmem:[#allocation2 + $0x800] ss:$16 sps:$4 sm:$0xff]  }
 0x4e5   :  { %5522 = vmatprep.subr.bf16.mxu0 %v9144_v47  ;;  %v9171_v47 = vld [vmem:[#allocation2 + $0x6ec] ss:$16 sps:$4 sm:$0xff]  }
 0x4e8   :  { %5523 = vmatpush2.bf16.msra.mxu0 %v9142_v28  ;;  %v9168_v28 = vld [vmem:[%s10096_s0 + $0x20] ss:$0 sps:$4 sm:$0xff]  }
 0x4e9   :  { %5524 = vmatprep.subr.bf16.mxu0 %v9150_v17  ;;  %v9169_v17 = vld [vmem:[#allocation2 + $0x6e8] ss:$16 sps:$4 sm:$0xff]  }
 0x4ec   :  { %5525 = vmatpush2.bf16.msra.mxu0 %v9148_v32  ;;  %v9177_v32 = vld [vmem:[#allocation2 + $0x6ac] ss:$16 sps:$4 sm:$0xff]  }
 0x4ed   :  { %v4389_v35 = vpop.f32.mrf.mxu1  ;;  %5526 = vmatprep.subr.bf16.mxu0 %v9156_v46  ;;  %v9175_v46 = vld [vmem:[#allocation2 + $0x6a8] ss:$16 sps:$4 sm:$0xff]  }
 0x4ee   :  { %v4390_v51 = vadd.f32 %v4389_v35, %v4349_v39  ;;  %v9178_v39 = vld [vmem:[#allocation2 + $0x688] ss:$16 sps:$4 sm:$0xff]  }
 0x4ef   :  { %v4391_v52 = vpop.f32.mrf.mxu1  ;;  %v9181_v35 = vld [vmem:[#allocation2 + $0x668] ss:$16 sps:$4 sm:$0xff]  }
 0x4f0   :  { %v4392_v13 = vadd.f32 %v4391_v52, %v4351_v26  ;;  %5527 = vmatpush2.bf16.msra.mxu0 %v9154_v40  ;;  %v4398_v57 = vmax.f32 %v4390_v51, 0.0  ;;  %v9183_v40 = vld [vmem:[#allocation2 + $0x66c] ss:$16 sps:$4 sm:$0xff]   ;;  %v9184_v26 = vld [vmem:[#allocation2 + $0x648] ss:$16 sps:$4 sm:$0xff]  }
 0x4f1   :  { %v4393_v59 = vpop.f32.mrf.mxu1  ;;  %5528 = vmatprep.subr.bf16.mxu0 %v9162_v4  ;;  %v9186_v4 = vld [vmem:[#allocation2 + $0x64c] ss:$16 sps:$4 sm:$0xff]   ;;  %v9187_v52 = vld [vmem:[#allocation2 + $0x628] ss:$16 sps:$4 sm:$0xff]  }
 0x4f2   :  { %v4399_v61 = vmax.f32 %v4392_v13, 0.0  ;;  %v4402_v54 = vpack.c.bf16 %v4398_v57, %v4398_v57  ;;  %v9189_v51 = vld [vmem:[#allocation2 + $0x62c] ss:$16 sps:$4 sm:$0xff]   ;;  %v9193_v13 = vld [vmem:[#allocation2 + $0x608] ss:$16 sps:$4 sm:$0xff]  }
 0x4f3   :  { %v4394_v62 = vpop.f32.mrf.mxu1  ;;  %v9199_v57 = vld [vmem:[#allocation2 + $0x7e8] ss:$16 sps:$4 sm:$0xff]   ;;  %v9207_v59 = vld [vmem:[#allocation2 + $0x7cc] ss:$16 sps:$4 sm:$0xff]  }
 0x4f4   :  { %v4403_v63 = vpack.c.bf16 %v4399_v61, %v4399_v61  ;;  %5529 = vmatpush2.bf16.msra.mxu0 %v9160_v53  ;;  %v9201_v53 = vld [vmem:[#allocation2 + $0x7ec] ss:$16 sps:$4 sm:$0xff]   ;;  %v9211_v62 = vld [vmem:[#allocation2 + $0x7a8] ss:$16 sps:$4 sm:$0xff]  }
 0x4f5   :  { %5621 = vmatprep.subr.bf16.mxu0 %v9192_v60  ;;  %v9205_v60 = vld [vmem:[#allocation2 + $0x7c8] ss:$16 sps:$4 sm:$0xff]   ;;  %v9213_v61 = vld [vmem:[#allocation2 + $0x7ac] ss:$16 sps:$4 sm:$0xff]  }
 0x4f6   :  { %4880 = vmatprep.mubr.bf16.mxu1 %v4403_v63  ;;  %v9219_v63 = vld [vmem:[#allocation2 + $0x78c] ss:$16 sps:$4 sm:$0xff]  }
 0x4f7   :  { %4881 = vmatmul.mubr.bf16.vlgmr.msra.gmra.mxu1 %v4402_v54  ;;  %5531 = vmatmul.mubr.bf16.vlgmr.msra.gmra.mxu0 %v9980_v49  ;;  %v9225_v54 = vld [vmem:[#allocation2 + $0x76c] ss:$16 sps:$4 sm:$0xff]  }
 0x4f8   :  { %5540 = vmatpush1.bf16.msra.mxu1 %v9121_v1  ;;  %5571 = vmatprep.mubr.bf16.mxu1 %v9673_v0  ;;  %v9217_v1 = vld [vmem:[#allocation2 + $0x788] ss:$16 sps:$4 sm:$0xff]  }
 0x4f9   :  { %5541 = vmatprep.subr.bf16.mxu1 %v9129_v41  ;;  %5622 = vmatpush1.bf16.msra.mxu0 %v9190_v44  ;;  %v9223_v41 = vld [vmem:[#allocation2 + $0x768] ss:$16 sps:$4 sm:$0xff]   ;;  %v9231_v44 = vld [vmem:[#allocation2 + $0x74c] ss:$16 sps:$4 sm:$0xff]  }
 0x4fa   :  { %5623 = vmatprep.subr.bf16.mxu0 %v9198_v2  ;;  %5653 = vmatprep.mubr.bf16.mxu0 %v9673_v0  ;;  %v9153_v0 = vld [vmem:[#allocation2 + $0x844] ss:$16 sps:$4 sm:$0xff]   ;;  %v9229_v2 = vld [vmem:[#allocation2 + $0x748] ss:$16 sps:$4 sm:$0xff]  }
 0x4fc   :  { %5542 = vmatpush1.bf16.msra.mxu1 %v9127_v43  ;;  %v9237_v43 = vld [vmem:[#allocation2 + $0x72c] ss:$16 sps:$4 sm:$0xff]  }
 0x4fd   :  { %5543 = vmatprep.subr.bf16.mxu1 %v9135_v3  ;;  %5624 = vmatpush1.bf16.msra.mxu0 %v9196_v50  ;;  %v9235_v3 = vld [vmem:[#allocation2 + $0x728] ss:$16 sps:$4 sm:$0xff]   ;;  %v9243_v50 = vld [vmem:[#allocation6 + $0x8e4] ss:$16 sps:$4 sm:$0xff]  }
 0x4fe   :  { %5625 = vmatprep.subr.bf16.mxu0 %v9204_v5  ;;  %v9240_v5 = vld [vmem:[#allocation2 + $0x70c] ss:$16 sps:$4 sm:$0xff]  }
 0x500   :  { %5544 = vmatpush1.bf16.msra.mxu1 %v9133_v6  ;;  %v9241_v6 = vld [vmem:[#allocation6 + $0x8e0] ss:$16 sps:$4 sm:$0xff]  }
 0x501   :  { %5545 = vmatprep.subr.bf16.mxu1 %v9141_v7  ;;  %5626 = vmatpush1.bf16.msra.mxu0 %v9202_v8  ;;  %v9238_v7 = vld [vmem:[#allocation2 + $0x708] ss:$16 sps:$4 sm:$0xff]   ;;  %v9246_v8 = vld [vmem:[#allocation6 + $0x8c4] ss:$16 sps:$4 sm:$0xff]  }
 0x502   :  { %5627 = vmatprep.subr.bf16.mxu0 %v9210_v9  ;;  %v9244_v9 = vld [vmem:[#allocation6 + $0x8c0] ss:$16 sps:$4 sm:$0xff]  }
 0x504   :  { %5546 = vmatpush1.bf16.msra.mxu1 %v9139_v42  ;;  %v9249_v42 = vld [vmem:[#allocation6 + $0x8a4] ss:$16 sps:$4 sm:$0xff]  }
 0x505   :  { %5547 = vmatprep.subr.bf16.mxu1 %v9147_v10  ;;  %5628 = vmatpush1.bf16.msra.mxu0 %v9208_v23  ;;  %v9247_v10 = vld [vmem:[#allocation6 + $0x8a0] ss:$16 sps:$4 sm:$0xff]   ;;  %v9252_v23 = vld [vmem:[#allocation6 + $0x884] ss:$16 sps:$4 sm:$0xff]  }
 0x506   :  { %5629 = vmatprep.subr.bf16.mxu0 %v9216_v34  ;;  %v9250_v34 = vld [vmem:[#allocation6 + $0x880] ss:$16 sps:$4 sm:$0xff]  }
 0x508   :  { %5548 = vmatpush1.bf16.msra.mxu1 %v9145_v12  ;;  %v9255_v12 = vld [vmem:[#allocation6 + $0x864] ss:$16 sps:$4 sm:$0xff]  }
 0x509   :  { %5549 = vmatprep.subr.bf16.mxu1 %v9153_v0  ;;  %5630 = vmatpush1.bf16.msra.mxu0 %v9214_v14  ;;  %v9253_v0 = vld [vmem:[#allocation6 + $0x860] ss:$16 sps:$4 sm:$0xff]   ;;  %v9258_v14 = vld [vmem:[#allocation6 + $0x844] ss:$16 sps:$4 sm:$0xff]  }
 0x50a   :  { %5631 = vmatprep.subr.bf16.mxu0 %v9222_v15  ;;  %v9256_v15 = vld [vmem:[#allocation6 + $0x840] ss:$16 sps:$4 sm:$0xff]  }
 0x50c   :  { %5550 = vmatpush1.bf16.msra.mxu1 %v9151_v16  ;;  %v9261_v16 = vld [vmem:[#allocation6 + $0x824] ss:$16 sps:$4 sm:$0xff]  }
 0x50d   :  { %5551 = vmatprep.subr.bf16.mxu1 %v9159_v18  ;;  %5632 = vmatpush1.bf16.msra.mxu0 %v9220_v45  ;;  %v9259_v18 = vld [vmem:[#allocation6 + $0x820] ss:$16 sps:$4 sm:$0xff]   ;;  %v9264_v45 = vld [vmem:[#allocation6 + $0x804] ss:$16 sps:$4 sm:$0xff]  }
 0x50e   :  { %5633 = vmatprep.subr.bf16.mxu0 %v9228_v20  ;;  %v9262_v20 = vld [vmem:[#allocation6 + $0x800] ss:$16 sps:$4 sm:$0xff]  }
 0x510   :  { %5552 = vmatpush1.bf16.msra.mxu1 %v9157_v21  ;;  %v9265_v21 = vld [vmem:[#allocation6 + $0x9e0] ss:$16 sps:$4 sm:$0xff]  }
 0x511   :  { %5553 = vmatprep.subr.bf16.mxu1 %v9165_v27  ;;  %5634 = vmatpush1.bf16.msra.mxu0 %v9226_v22  ;;  %v9268_v27 = vld [vmem:[#allocation6 + $0x9c0] ss:$16 sps:$4 sm:$0xff]   ;;  %v9270_v22 = vld [vmem:[#allocation6 + $0x9c4] ss:$16 sps:$4 sm:$0xff]  }
 0x512   :  { %5635 = vmatprep.subr.bf16.mxu0 %v9234_v19  ;;  %v9273_v19 = vld [vmem:[#allocation6 + $0x9a4] ss:$16 sps:$4 sm:$0xff]  }
 0x514   :  { %5554 = vmatpush1.bf16.msra.mxu1 %v9163_v33  ;;  %v9271_v33 = vld [vmem:[#allocation6 + $0x9a0] ss:$16 sps:$4 sm:$0xff]  }
 0x515   :  { %5580 = vmatprep.subr.bf16.mxu1 %v9171_v47  ;;  %5636 = vmatpush1.bf16.msra.mxu0 %v9232_v11  ;;  %v9276_v47 = vld [vmem:[#allocation6 + $0x984] ss:$16 sps:$4 sm:$0xff]  }
 0x516   :  { %6649 = vmatprep.subr.bf16.mxu0 %v9243_v50 }
 0x517   :  { %5572 = vmatmul.mubr.bf16.vlgmr.msra.gmra.mxu1 %v9168_v28 }
 0x518   :  { %5581 = vmatpush1.bf16.msra.mxu1 %v9169_v17  ;;  %5654 = vmatmul.mubr.bf16.vlgmr.msra.gmra.mxu0 %v9168_v28  ;;  %v9274_v28 = vld [vmem:[#allocation6 + $0x980] ss:$16 sps:$4 sm:$0xff]  }
 0x519   :  { %5582 = vmatprep.subr.bf16.mxu1 %v9174_v29  ;;  %5612 = vmatprep.mubr.bf16.mxu1 %v9967_v30  ;;  %v9195_v30 = vld [vmem:[#allocation2 + $0x60c] ss:$16 sps:$4 sm:$0xff]   ;;  %v9279_v29 = vld [vmem:[#allocation6 + $0x964] ss:$16 sps:$4 sm:$0xff]  }
 0x51a   :  { %6650 = vmatpush1.bf16.msra.mxu0 %v9241_v6  ;;  %v9337_v6 = vld [vmem:[#allocation6 + $0xbe0] ss:$16 sps:$4 sm:$0xff]  }
 0x51b   :  { %6651 = vmatprep.subr.bf16.mxu0 %v9246_v8  ;;  %v9343_v8 = vld [vmem:[#allocation6 + $0xbc0] ss:$16 sps:$4 sm:$0xff]  }
 0x51c   :  { %5583 = vmatpush1.bf16.msra.mxu1 %v9172_v31 }
 0x51d   :  { %5584 = vmatprep.subr.bf16.mxu1 %v9177_v32  ;;  %v9277_v32 = vld [vmem:[#allocation6 + $0x960] ss:$16 sps:$4 sm:$0xff]  }
 0x51e   :  { %6652 = vmatpush1.bf16.msra.mxu0 %v9244_v9  ;;  %v9345_v9 = vld [vmem:[#allocation6 + $0xbc4] ss:$16 sps:$4 sm:$0xff]  }
 0x51f   :  { %6653 = vmatprep.subr.bf16.mxu0 %v9249_v42 }
 0x520   :  { %5585 = vmatpush1.bf16.msra.mxu1 %v9175_v46 }
 0x521   :  { %5586 = vmatprep.subr.bf16.mxu1 %v9180_v36  ;;  %v9282_v36 = vld [vmem:[#allocation6 + $0x944] ss:$16 sps:$4 sm:$0xff]  }
 0x522   :  { %6654 = vmatpush1.bf16.msra.mxu0 %v9247_v10 }
 0x523   :  { %6655 = vmatprep.subr.bf16.mxu0 %v9252_v23  ;;  %v9349_v23 = vld [vmem:[#allocation6 + $0xba0] ss:$16 sps:$4 sm:$0xff]  }
 0x524   :  { %5587 = vmatpush1.bf16.msra.mxu1 %v9178_v39  ;;  %v9280_v39 = vld [vmem:[#allocation6 + $0x940] ss:$16 sps:$4 sm:$0xff]  }
 0x525   :  { %5588 = vmatprep.subr.bf16.mxu1 %v9183_v40  ;;  %v9285_v40 = vld [vmem:[#allocation6 + $0x924] ss:$16 sps:$4 sm:$0xff]  }
 0x526   :  { %6656 = vmatpush1.bf16.msra.mxu0 %v9250_v34  ;;  %v9351_v34 = vld [vmem:[#allocation6 + $0xba4] ss:$16 sps:$4 sm:$0xff]  }
 0x527   :  { %6657 = vmatprep.subr.bf16.mxu0 %v9255_v12 }
 0x528   :  { %5589 = vmatpush1.bf16.msra.mxu1 %v9181_v35  ;;  %v9283_v35 = vld [vmem:[#allocation6 + $0x920] ss:$16 sps:$4 sm:$0xff]  }
 0x529   :  { %5590 = vmatprep.subr.bf16.mxu1 %v9186_v4  ;;  %v9288_v4 = vld [vmem:[#allocation6 + $0x904] ss:$16 sps:$4 sm:$0xff]  }
 0x52a   :  { %6658 = vmatpush1.bf16.msra.mxu0 %v9253_v0 }
 0x52b   :  { %6659 = vmatprep.subr.bf16.mxu0 %v9258_v14 }
 0x52c   :  { %5591 = vmatpush1.bf16.msra.mxu1 %v9184_v26  ;;  %v9286_v26 = vld [vmem:[#allocation6 + $0x900] ss:$16 sps:$4 sm:$0xff]  }
 0x52d   :  { %5592 = vmatprep.subr.bf16.mxu1 %v9189_v51  ;;  %v9291_v51 = vld [vmem:[#allocation6 + $0xae4] ss:$16 sps:$4 sm:$0xff]  }
 0x52e   :  { %6660 = vmatpush1.bf16.msra.mxu0 %v9256_v15 }
 0x52f   :  { %6661 = vmatprep.subr.bf16.mxu0 %v9261_v16 }
 0x530   :  { %5593 = vmatpush1.bf16.msra.mxu1 %v9187_v52  ;;  %v9294_v52 = vld [vmem:[#allocation6 + $0x8ec] ss:$16 sps:$4 sm:$0xff]  }
 0x531   :  { %5594 = vmatprep.subr.bf16.mxu1 %v9195_v30  ;;  %v9289_v30 = vld [vmem:[#allocation6 + $0xae0] ss:$16 sps:$4 sm:$0xff]  }
 0x532   :  { %6662 = vmatpush1.bf16.msra.mxu0 %v9259_v18 }
 0x533   :  { %6663 = vmatprep.subr.bf16.mxu0 %v9264_v45 }
 0x534   :  { %5595 = vmatpush1.bf16.msra.mxu1 %v9193_v13  ;;  %v9295_v13 = vld [vmem:[#allocation6 + $0xac0] ss:$16 sps:$4 sm:$0xff]  }
 0x535   :  { %5596 = vmatprep.subr.bf16.mxu1 %v9201_v53  ;;  %v9297_v53 = vld [vmem:[#allocation6 + $0xac4] ss:$16 sps:$4 sm:$0xff]  }
 0x536   :  { %6664 = vmatpush1.bf16.msra.mxu0 %v9262_v20  ;;  %v9355_v20 = vld [vmem:[#allocation6 + $0xb80] ss:$16 sps:$4 sm:$0xff]  }
 0x538   :  { %5597 = vmatpush2.bf16.msra.mxu1 %v9199_v57  ;;  %v9301_v57 = vld [vmem:[#allocation6 + $0xaa0] ss:$16 sps:$4 sm:$0xff]  }
 0x539   :  { %5598 = vmatprep.subr.bf16.mxu1 %v9207_v59  ;;  %v9303_v59 = vld [vmem:[#allocation6 + $0xaa4] ss:$16 sps:$4 sm:$0xff]  }
 0x53c   :  { %5599 = vmatpush2.bf16.msra.mxu1 %v9205_v60  ;;  %v9309_v60 = vld [vmem:[#allocation6 + $0xa84] ss:$16 sps:$4 sm:$0xff]  }
 0x53d   :  { %5600 = vmatprep.subr.bf16.mxu1 %v9213_v61  ;;  %v9307_v61 = vld [vmem:[#allocation6 + $0xa80] ss:$16 sps:$4 sm:$0xff]  }
 0x540   :  { %5601 = vmatpush2.bf16.msra.mxu1 %v9211_v62  ;;  %v9315_v62 = vld [vmem:[#allocation6 + $0xa64] ss:$16 sps:$4 sm:$0xff]  }
 0x541   :  { %5602 = vmatprep.subr.bf16.mxu1 %v9219_v63  ;;  %v9313_v63 = vld [vmem:[#allocation6 + $0xa60] ss:$16 sps:$4 sm:$0xff]  }
 0x544   :  { %5603 = vmatpush2.bf16.msra.mxu1 %v9217_v1  ;;  %v9321_v1 = vld [vmem:[#allocation6 + $0xa44] ss:$16 sps:$4 sm:$0xff]  }
 0x545   :  { %5604 = vmatprep.subr.bf16.mxu1 %v9225_v54  ;;  %v9319_v54 = vld [vmem:[#allocation6 + $0xa40] ss:$16 sps:$4 sm:$0xff]  }
 0x548   :  { %5605 = vmatpush2.bf16.msra.mxu1 %v9223_v41  ;;  %v9327_v41 = vld [vmem:[#allocation6 + $0xa24] ss:$16 sps:$4 sm:$0xff]  }
 0x549   :  { %5606 = vmatprep.subr.bf16.mxu1 %v9231_v44  ;;  %v9325_v44 = vld [vmem:[#allocation6 + $0xa20] ss:$16 sps:$4 sm:$0xff]  }
 0x54c   :  { %5607 = vmatpush2.bf16.msra.mxu1 %v9229_v2  ;;  %v9333_v2 = vld [vmem:[#allocation6 + $0xa04] ss:$16 sps:$4 sm:$0xff]  }
 0x54d   :  { %5608 = vmatprep.subr.bf16.mxu1 %v9237_v43  ;;  %v9331_v43 = vld [vmem:[#allocation6 + $0xa00] ss:$16 sps:$4 sm:$0xff]  }
 0x550   :  { %5609 = vmatpush2.bf16.msra.mxu1 %v9235_v3  ;;  %v9578_v3 = vld [vmem:[#allocation4 + $0x10] sm:$0xff] }
 0x551   :  { %5610 = vmatprep.subr.bf16.mxu1 %v9240_v5  ;;  %v4472_v50 = vrot.slane %v9578_v3, %v9865_v56  ;;  %v9339_v5 = vld [vmem:[#allocation6 + $0xbe4] ss:$16 sps:$4 sm:$0xff]  }
 0x553   :  { %v4482_v42 = vrot.slane %v4472_v50, %v9865_v56 }
 0x554   :  { %5611 = vmatpush2.bf16.msra.mxu1 %v9238_v7  ;;  %v4476_v7 = vrot.slane %v9578_v3, %v9868_v58 }
 0x555   :  { %6690 = vmatprep.subr.bf16.mxu1 %v9291_v51  ;;  %v9387_v51 = vld [vmem:[#allocation6 + $0xaec] ss:$16 sps:$4 sm:$0xff]  }
 0x556   :  { %v4486_v10 = vrot.slane %v4476_v7, %v9865_v56 }
 0x557   :  { %5613 = vmatmul.mubr.bf16.vlgmr.msra.gmra.mxu1 %v9980_v49  ;;  %v9267_v49 = vld [vmem:[#allocation6 + $0x9e4] ss:$16 sps:$4 sm:$0xff]  }
 0x558   :  { %6665 = vmatprep.subr.bf16.mxu0 %v9267_v49  ;;  %6691 = vmatpush1.bf16.msra.mxu1 %v9289_v30  ;;  %v9357_v49 = vld [vmem:[#allocation6 + $0xb84] ss:$16 sps:$4 sm:$0xff]  }
 0x559   :  { %6666 = vmatpush2.bf16.msra.mxu0 %v9265_v21  ;;  %6692 = vmatprep.subr.bf16.mxu1 %v9297_v53 }
 0x55a   :  { %6667 = vmatprep.subr.bf16.mxu0 %v9270_v22 }
 0x55c   :  { %6693 = vmatpush1.bf16.msra.mxu1 %v9295_v13 }
 0x55d   :  { %6668 = vmatpush2.bf16.msra.mxu0 %v9268_v27  ;;  %6694 = vmatprep.subr.bf16.mxu1 %v9303_v59 }
 0x55e   :  { %6669 = vmatprep.subr.bf16.mxu0 %v9273_v19 }
 0x560   :  { %6695 = vmatpush1.bf16.msra.mxu1 %v9301_v57 }
 0x561   :  { %6670 = vmatpush2.bf16.msra.mxu0 %v9271_v33  ;;  %6696 = vmatprep.subr.bf16.mxu1 %v9309_v60 }
 0x562   :  { %6671 = vmatprep.subr.bf16.mxu0 %v9276_v47 }
 0x564   :  { %6697 = vmatpush1.bf16.msra.mxu1 %v9307_v61 }
 0x565   :  { %6672 = vmatpush2.bf16.msra.mxu0 %v9274_v28  ;;  %6698 = vmatprep.subr.bf16.mxu1 %v9315_v62  ;;  %v9361_v28 = vld [vmem:[#allocation6 + $0xb60] ss:$16 sps:$4 sm:$0xff]  }
 0x566   :  { %6673 = vmatprep.subr.bf16.mxu0 %v9279_v29  ;;  %v9363_v29 = vld [vmem:[#allocation6 + $0xb64] ss:$16 sps:$4 sm:$0xff]  }
 0x568   :  { %6699 = vmatpush1.bf16.msra.mxu1 %v9313_v63 }
 0x569   :  { %6674 = vmatpush2.bf16.msra.mxu0 %v9277_v32  ;;  %6700 = vmatprep.subr.bf16.mxu1 %v9321_v1  ;;  %v9373_v32 = vld [vmem:[#allocation6 + $0xb20] ss:$16 sps:$4 sm:$0xff]  }
 0x56a   :  { %6675 = vmatprep.subr.bf16.mxu0 %v9282_v36 }
 0x56c   :  { %6701 = vmatpush1.bf16.msra.mxu1 %v9319_v54 }
 0x56d   :  { %6676 = vmatpush2.bf16.msra.mxu0 %v9280_v39  ;;  %6702 = vmatprep.subr.bf16.mxu1 %v9327_v41  ;;  %v9379_v39 = vld [vmem:[#allocation6 + $0xb00] ss:$16 sps:$4 sm:$0xff]  }
 0x56e   :  { %6677 = vmatprep.subr.bf16.mxu0 %v9285_v40  ;;  %v9381_v40 = vld [vmem:[#allocation6 + $0xb04] ss:$16 sps:$4 sm:$0xff]  }
 0x570   :  { %6703 = vmatpush1.bf16.msra.mxu1 %v9325_v44 }
 0x571   :  { %6678 = vmatpush2.bf16.msra.mxu0 %v9283_v35  ;;  %6704 = vmatprep.subr.bf16.mxu1 %v9333_v2 }
 0x572   :  { %6679 = vmatprep.subr.bf16.mxu0 %v9288_v4 }
 0x574   :  { %6705 = vmatpush1.bf16.msra.mxu1 %v9331_v43 }
 0x575   :  { %6680 = vmatpush2.bf16.msra.mxu0 %v9286_v26  ;;  %6706 = vmatprep.subr.bf16.mxu1 %v9339_v5 }
 0x576   :  { %6731 = vmatprep.subr.bf16.mxu0 %v9294_v52 }
 0x577   :  { %v9990_v11 = vpop.f32.mrf.mxu0 }
 0x578   :  { %6707 = vmatpush2.bf16.msra.mxu1 %v9337_v6  ;;  %v4842_v12 = vadd.f32 %v9990_v11, %v4482_v42 }
 0x579   :  { %v9992_v17 = vpop.f32.mrf.mxu0  ;;  %6708 = vmatprep.subr.bf16.mxu1 %v9345_v9 }
 0x57a   :  { %v4844_v15 = vadd.f32 %v9992_v17, %v4486_v10  ;;  %v9367_v17 = vld [vmem:[#allocation6 + $0xb40] ss:$16 sps:$4 sm:$0xff]  }
 0x57b   :  { %v4845_v31 = vpop.f32.mrf.mxu0 }
 0x57c   :  { %6709 = vmatpush2.bf16.msra.mxu1 %v9343_v8  ;;  %v9369_v31 = vld [vmem:[#allocation6 + $0xb44] ss:$16 sps:$4 sm:$0xff]  }
 0x57d   :  { %v4846_v46 = vpop.f32.mrf.mxu0  ;;  %6710 = vmatprep.subr.bf16.mxu1 %v9351_v34 }
 0x57e   :  { %v9375_v46 = vld [vmem:[#allocation6 + $0xb24] ss:$16 sps:$4 sm:$0xff]  }
 0x580   :  { %6711 = vmatpush2.bf16.msra.mxu1 %v9349_v23 }
 0x581   :  { %6712 = vmatprep.subr.bf16.mxu1 %v9357_v49 }
 0x584   :  { %6713 = vmatpush2.bf16.msra.mxu1 %v9355_v20 }
 0x585   :  { %6714 = vmatprep.subr.bf16.mxu1 %v9363_v29 }
 0x588   :  { %6715 = vmatpush2.bf16.msra.mxu1 %v9361_v28 }
 0x589   :  { %6716 = vmatprep.subr.bf16.mxu1 %v9369_v31 }
 0x58c   :  { %6717 = vmatpush2.bf16.msra.mxu1 %v9367_v17 }
 0x58d   :  { %6718 = vmatprep.subr.bf16.mxu1 %v9375_v46 }
 0x590   :  { %6719 = vmatpush2.bf16.msra.mxu1 %v9373_v32 }
 0x591   :  { %6720 = vmatprep.subr.bf16.mxu1 %v9381_v40 }
 0x594   :  { %6721 = vmatpush2.bf16.msra.mxu1 %v9379_v39  ;;  %v10016_v39 = vld [vmem:[#allocation4 + $0x20] sm:$0xff] }
 0x595   :  { %6772 = vmatprep.subr.bf16.mxu1 %v9387_v51 }
 0x5b7   :  { %v4882_v0 = vpop.f32.mrf.mxu1  ;;  %v5532_v14 = vpop.f32.mrf.mxu0 }
 0x5b8   :  { %v4883_v16 = vadd.f32 %v4882_v0, %v4842_v12 }
 0x5b9   :  { %v4884_v18 = vpop.f32.mrf.mxu1  ;;  %v5534_v45 = vpop.f32.mrf.mxu0 }
 0x5ba   :  { %v7914_v21 = vmul.f32 -1.442695, %v4883_v16  ;;  %v4885_v27 = vadd.f32 %v4884_v18, %v4844_v15 }
 0x5bb   :  { %v4886_v22 = vpop.f32.mrf.mxu1  ;;  %v5536_v19 = vpop.f32.mrf.mxu0 }
 0x5bc   :  { %9553 = vpow2.f32 %v7914_v21  ;;  %v7915_v33 = vmul.f32 -1.442695, %v4885_v27 }
 0x5bd   :  { %v4887_v47 = vpop.f32.mrf.mxu1  ;;  %v5537_v11 = vpop.f32.mrf.mxu0 }
 0x5be   :  { %9555 = vpow2.f32 %v7915_v33 }
 0x5c9   :  { %v9554_v36 = vpop.eup %9553 }
 0x5ca   :  { %v4895_v35 = vadd.f32 1.0, %v9554_v36 }
 0x5cb   :  { %v9556_v4 = vpop.eup %9555 }
 0x5cc   :  { %9557 = vrcp.f32 %v4895_v35  ;;  %v4896_v26 = vadd.f32 1.0, %v9556_v4  ;;  %v5803_v35 = vrot.slane %v10016_v39, %v9765_v38  ;;  %v5799_v4 = vrot.slane %v10016_v39, %v9762_v37 }
 0x5ce   :  { %9559 = vrcp.f32 %v4896_v26 }
 0x5d7   :  { %v5573_v52 = vpop.f32.mrf.mxu1 }
 0x5d8   :  { %v10000_v30 = vadd.f32 %v5573_v52, %v5532_v14  ;;  %v10002_v13 = vpop.f32.mrf.mxu0 }
 0x5d9   :  { %v9558_v53 = vpop.eup %9557  ;;  %v5575_v57 = vpop.f32.mrf.mxu1 }
 0x5da   :  { %7916 = vst [vmem:[%s10101_s5 + $0x10] sm:$0xff] %v9558_v53  ;;  %v5662_v59 = vrot.slane %v10000_v30, 4  ;;  %v5686_v60 = vmul.f32 %v10000_v30, %v10000_v30  ;;  %v5576_v61 = vadd.f32 %v5575_v57, %v5534_v45  ;;  %v10010_v62 = vpop.f32.mrf.mxu0  ;;  %v5823_v53 = vrot.slane %v5803_v35, %v9762_v37 }
 0x5db   :  { %v9560_v63 = vpop.eup %9559  ;;  %v5577_v1 = vpop.f32.mrf.mxu1  ;;  %v5819_v57 = vrot.slane %v5799_v4, %v9762_v37 }
 0x5dc   :  { %7917 = vst [vmem:[%s10101_s5 + $0x18] sm:$0xff] %v9560_v63  ;;  %v5663_v54 = vadd.f32 %v5662_v59, %v10000_v30  ;;  %v5690_v41 = vrot.slane %v5686_v60, 4  ;;  %v5668_v44 = vrot.slane %v5576_v61, 4  ;;  %v5687_v2 = vmul.f32 %v5576_v61, %v5576_v61  ;;  %v5659_v43 = vpop.f32.mrf.mxu0 }
 0x5dd   :  { %v5578_v3 = vpop.f32.mrf.mxu1 }
 0x5de   :  { %v5664_v50 = vrot.slane %v5663_v54, 2  ;;  %v5691_v5 = vadd.f32 %v5690_v41, %v5686_v60  ;;  %v5669_v6 = vadd.f32 %v5668_v44, %v5576_v61  ;;  %v5696_v7 = vrot.slane %v5687_v2, 4  ;;  %v5660_v8 = vpop.f32.mrf.mxu0 }
 0x5df   :  { %v9304_v8 = vld [vmem:[#allocation6 + $0x8a8] ss:$16 sps:$4 sm:$0xff]  }
 0x5e0   :  { %v5665_v9 = vadd.f32 %v5664_v50, %v5663_v54  ;;  %v5692_v42 = vrot.slane %v5691_v5, 2  ;;  %v5670_v10 = vrot.slane %v5669_v6, 2  ;;  %v5697_v23 = vadd.f32 %v5696_v7, %v5687_v2  ;;  %v9300_v7 = vld [vmem:[#allocation6 + $0x8cc] ss:$16 sps:$4 sm:$0xff]  }
 0x5e2   :  { %v5666_v34 = vrot.slane %v5665_v9, 1  ;;  %v5693_v12 = vadd.f32 %v5692_v42, %v5691_v5  ;;  %v5671_v0 = vadd.f32 %v5670_v10, %v5669_v6  ;;  %v5698_v14 = vrot.slane %v5697_v23, 2  ;;  %v9292_v5 = vld [vmem:[#allocation6 + $0x8e8] ss:$16 sps:$4 sm:$0xff]  }
 0x5e4   :  { %v5667_v15 = vadd.f32 %v5666_v34, %v5665_v9  ;;  %v5694_v16 = vrot.slane %v5693_v12, 1  ;;  %v5672_v18 = vrot.slane %v5671_v0, 1  ;;  %v5699_v45 = vadd.f32 %v5698_v14, %v5697_v23  ;;  %v9312_v9 = vld [vmem:[#allocation6 + $0x88c] ss:$16 sps:$4 sm:$0xff]   ;;  %v9310_v34 = vld [vmem:[#allocation6 + $0x888] ss:$16 sps:$4 sm:$0xff]  }
 0x5e6   :  { %v5695_v20 = vadd.f32 %v5694_v16, %v5693_v12  ;;  %v5714_v49 = vmul.f32 0.125, %v5667_v15  ;;  %v5673_v21 = vadd.f32 %v5672_v18, %v5671_v0  ;;  %v5700_v27 = vrot.slane %v5699_v45, 1  ;;  %v9318_v15 = vld [vmem:[#allocation6 + $0x86c] ss:$16 sps:$4 sm:$0xff]  }
 0x5e8   :  { %v5718_v22 = vmul.f32 0.125, %v5695_v20  ;;  %v5722_v19 = vmul.f32 %v5714_v49, %v5714_v49  ;;  %v5701_v33 = vadd.f32 %v5700_v27, %v5699_v45  ;;  %v5715_v47 = vmul.f32 0.125, %v5673_v21  ;;  %v9316_v21 = vld [vmem:[#allocation6 + $0x868] ss:$16 sps:$4 sm:$0xff]  }
 0x5e9   :  { %v5748_v59 = vsub.f32 %v10000_v30, %v5714_v49  ;;  %v9298_v30 = vld [vmem:[#allocation6 + $0x8c8] ss:$16 sps:$4 sm:$0xff]  }
 0x5ea   :  { %v5726_v11 = vsub.f32 %v5718_v22, %v5722_v19  ;;  %v5719_v28 = vmul.f32 0.125, %v5701_v33  ;;  %v5723_v29 = vmul.f32 %v5715_v47, %v5715_v47  ;;  %v5749_v60 = vsub.f32 %v5576_v61, %v5715_v47  ;;  %v9306_v61 = vld [vmem:[#allocation6 + $0x8ac] ss:$16 sps:$4 sm:$0xff]  }
 0x5eb   :  { %v9324_v33 = vld [vmem:[#allocation6 + $0x84c] ss:$16 sps:$4 sm:$0xff]  }
 0x5ec   :  { %v5730_v17 = vadd.f32 1e-05, %v5726_v11  ;;  %v5727_v31 = vsub.f32 %v5719_v28, %v5723_v29 }
 0x5ee   :  { %v5731_v32 = vadd.f32 1e-05, %v5727_v31  ;;  %9561 = vrsqrt.f32 %v5730_v17  ;;  %v9322_v17 = vld [vmem:[#allocation6 + $0x848] ss:$16 sps:$4 sm:$0xff]  }
 0x5f0   :  { %9563 = vrsqrt.f32 %v5731_v32 }
 0x5fb   :  { %v9562_v46 = vpop.eup %9561 }
 0x5fd   :  { %v9564_v36 = vpop.eup %9563 }
 0x5fe   :  { %v5742_v40 = vcombine.low %v9562_v46, %v9564_v36 }
 0x600   :  { %v5746_v26 = vmul.f32 %v5742_v40, %v10016_v39  ;;  %v9330_v40 = vld [vmem:[#allocation6 + $0x82c] ss:$16 sps:$4 sm:$0xff]  }
 0x602   :  { %v5761_v51 = vrot.slane %v5746_v26, %v9776_v55  ;;  %v5757_v52 = vrot.slane %v5746_v26, %v9772_v48 }
 0x604   :  { %v5781_v63 = vrot.slane %v5761_v51, %v9772_v48  ;;  %v5777_v1 = vrot.slane %v5757_v52, %v9772_v48  ;;  %v9328_v52 = vld [vmem:[#allocation6 + $0x828] ss:$16 sps:$4 sm:$0xff]  }
 0x606   :  { %v5791_v54 = vmul.f32 %v5781_v63, %v5749_v60  ;;  %v5790_v41 = vmul.f32 %v5777_v1, %v5748_v59  ;;  %v9336_v63 = vld [vmem:[#allocation6 + $0x80c] ss:$16 sps:$4 sm:$0xff]  }
 0x608   :  { %v5833_v44 = vadd.f32 %v5823_v53, %v5791_v54  ;;  %v5832_v2 = vadd.f32 %v5819_v57, %v5790_v41 }
 0x60a   :  { %v5837_v43 = vmax.f32 %v5833_v44, 0.0  ;;  %v5836_v3 = vmax.f32 %v5832_v2, 0.0  ;;  %v9334_v2 = vld [vmem:[#allocation6 + $0x808] ss:$16 sps:$4 sm:$0xff]  }
 0x60c   :  { %v5841_v50 = vpack.c.bf16 %v5837_v43, %v5837_v43  ;;  %v10030_v6 = vpack.c.bf16 %v5836_v3, %v5836_v3 }
 0x60e   :  { %6681 = vmatprep.mubr.bf16.mxu0 %v5841_v50 }
 0x60f   :  { %6682 = vmatmul.mubr.bf16.vlgmr.msra.gmra.mxu0 %v10030_v6 }
 0x610   :  { %6732 = vmatpush1.bf16.msra.mxu0 %v9292_v5  ;;  %6763 = vmatprep.mubr.bf16.mxu0 %v5841_v50  ;;  %v9342_v50 = vld [vmem:[#allocation6 + $0x9ec] ss:$16 sps:$4 sm:$0xff]  }
 0x611   :  { %6733 = vmatprep.subr.bf16.mxu0 %v9300_v7 }
 0x614   :  { %6734 = vmatpush1.bf16.msra.mxu0 %v9298_v30 }
 0x615   :  { %6735 = vmatprep.subr.bf16.mxu0 %v9306_v61  ;;  %v9340_v61 = vld [vmem:[#allocation6 + $0x9e8] ss:$16 sps:$4 sm:$0xff]  }
 0x617   :  { %v5614_v42 = vpop.f32.mrf.mxu1 }
 0x618   :  { %v10034_v10 = vadd.f32 %v10002_v13, %v5614_v42  ;;  %6736 = vmatpush1.bf16.msra.mxu0 %v9304_v8  ;;  %v9348_v8 = vld [vmem:[#allocation6 + $0x9cc] ss:$16 sps:$4 sm:$0xff]   ;;  %v9346_v42 = vld [vmem:[#allocation6 + $0x9c8] ss:$16 sps:$4 sm:$0xff]  }
 0x619   :  { %v5616_v23 = vpop.f32.mrf.mxu1  ;;  %6737 = vmatprep.subr.bf16.mxu0 %v9312_v9 }
 0x61a   :  { %v5674_v12 = vrot.slane %v10034_v10, 4  ;;  %v5688_v0 = vmul.f32 %v10034_v10, %v10034_v10  ;;  %v10040_v14 = vadd.f32 %v10010_v62, %v5616_v23  ;;  %v9354_v23 = vld [vmem:[#allocation6 + $0x9ac] ss:$16 sps:$4 sm:$0xff]  }
 0x61b   :  { %v5618_v16 = vpop.f32.mrf.mxu1 }
 0x61c   :  { %v5675_v18 = vadd.f32 %v5674_v12, %v10034_v10  ;;  %v5702_v45 = vrot.slane %v5688_v0, 4  ;;  %v5680_v13 = vrot.slane %v10040_v14, 4  ;;  %v5689_v20 = vmul.f32 %v10040_v14, %v10040_v14  ;;  %6738 = vmatpush1.bf16.msra.mxu0 %v9310_v34  ;;  %v9352_v34 = vld [vmem:[#allocation6 + $0x9a8] ss:$16 sps:$4 sm:$0xff]   ;;  %v9360_v12 = vld [vmem:[#allocation6 + $0x98c] ss:$16 sps:$4 sm:$0xff]  }
 0x61d   :  { %v5619_v49 = vpop.f32.mrf.mxu1  ;;  %6739 = vmatprep.subr.bf16.mxu0 %v9318_v15  ;;  %v9366_v15 = vld [vmem:[#allocation6 + $0x96c] ss:$16 sps:$4 sm:$0xff]  }
 0x61e   :  { %v5676_v27 = vrot.slane %v5675_v18, 2  ;;  %v5703_v22 = vadd.f32 %v5702_v45, %v5688_v0  ;;  %v5681_v19 = vadd.f32 %v5680_v13, %v10040_v14  ;;  %v5708_v62 = vrot.slane %v5689_v20, 4  ;;  %v9358_v0 = vld [vmem:[#allocation6 + $0x988] ss:$16 sps:$4 sm:$0xff]   ;;  %v9372_v13 = vld [vmem:[#allocation6 + $0x94c] ss:$16 sps:$4 sm:$0xff]  }
 0x620   :  { %v5677_v47 = vadd.f32 %v5676_v27, %v5675_v18  ;;  %v5704_v11 = vrot.slane %v5703_v22, 2  ;;  %v5682_v28 = vrot.slane %v5681_v19, 2  ;;  %v5709_v29 = vadd.f32 %v5708_v62, %v5689_v20  ;;  %6740 = vmatpush1.bf16.msra.mxu0 %v9316_v21  ;;  %v9364_v18 = vld [vmem:[#allocation6 + $0x968] ss:$16 sps:$4 sm:$0xff]   ;;  %v9378_v62 = vld [vmem:[#allocation6 + $0x92c] ss:$16 sps:$4 sm:$0xff]  }
 0x621   :  { %6741 = vmatprep.subr.bf16.mxu0 %v9324_v33  ;;  %v10051_v20 = vld [vmem:[#allocation4 + $0x28] sm:$0xff] }
 0x622   :  { %v5678_v31 = vrot.slane %v5677_v47, 1  ;;  %v5705_v32 = vadd.f32 %v5704_v11, %v5703_v22  ;;  %v5683_v46 = vadd.f32 %v5682_v28, %v5681_v19  ;;  %v5710_v36 = vrot.slane %v5709_v29, 2  ;;  %v9370_v22 = vld [vmem:[#allocation6 + $0x948] ss:$16 sps:$4 sm:$0xff]  }
 0x623   :  { %v5811_v21 = vrot.slane %v10051_v20, %v9765_v38  ;;  %v5807_v27 = vrot.slane %v10051_v20, %v9762_v37 }
 0x624   :  { %v5679_v35 = vadd.f32 %v5678_v31, %v5677_v47  ;;  %v5706_v4 = vrot.slane %v5705_v32, 1  ;;  %v5684_v26 = vrot.slane %v5683_v46, 1  ;;  %v5711_v51 = vadd.f32 %v5710_v36, %v5709_v29  ;;  %6742 = vmatpush1.bf16.msra.mxu0 %v9322_v17  ;;  %v9376_v17 = vld [vmem:[#allocation6 + $0x928] ss:$16 sps:$4 sm:$0xff]  }
 0x625   :  { %6743 = vmatprep.subr.bf16.mxu0 %v9330_v40  ;;  %v5831_v11 = vrot.slane %v5811_v21, %v9762_v37  ;;  %v5827_v28 = vrot.slane %v5807_v27, %v9762_v37  ;;  %v9382_v40 = vld [vmem:[#allocation6 + $0x908] ss:$16 sps:$4 sm:$0xff]   ;;  %v9417_v27 = vld [vmem:[#allocation6 + $0xbac] ss:$16 sps:$4 sm:$0xff]  }
 0x626   :  { %v5707_v53 = vadd.f32 %v5706_v4, %v5705_v32  ;;  %v10047_v57 = vmul.f32 0.125, %v5679_v35  ;;  %v5685_v59 = vadd.f32 %v5684_v26, %v5683_v46  ;;  %v5712_v60 = vrot.slane %v5711_v51, 1  ;;  %v9384_v46 = vld [vmem:[#allocation6 + $0x90c] ss:$16 sps:$4 sm:$0xff]   ;;  %v9454_v21 = vld [vmem:[#allocation7 + $0x400] ss:$8 sps:$4 sm:$0xff]  }
 0x628   :  { %v5720_v1 = vmul.f32 0.125, %v5707_v53  ;;  %v5724_v54 = vmul.f32 %v10047_v57, %v10047_v57  ;;  %v5713_v41 = vadd.f32 %v5712_v60, %v5711_v51  ;;  %v5717_v44 = vmul.f32 0.125, %v5685_v59  ;;  %6744 = vmatpush1.bf16.msra.mxu0 %v9328_v52  ;;  %v9390_v52 = vld [vmem:[#allocation6 + $0xacc] ss:$16 sps:$4 sm:$0xff]   ;;  %v9433_v60 = vld [vmem:[#allocation7 + $0x470] ss:$8 sps:$4 sm:$0xff]  }
 0x629   :  { %6745 = vmatprep.subr.bf16.mxu0 %v9336_v63  ;;  %v5750_v38 = vsub.f32 %v10034_v10, %v10047_v57  ;;  %v9393_v53 = vld [vmem:[#allocation6 + $0xaac] ss:$16 sps:$4 sm:$0xff]   ;;  %v9391_v57 = vld [vmem:[#allocation6 + $0xaa8] ss:$16 sps:$4 sm:$0xff]  }
 0x62a   :  { %v5728_v43 = vsub.f32 %v5720_v1, %v5724_v54  ;;  %v5721_v3 = vmul.f32 0.125, %v5713_v41  ;;  %v5725_v5 = vmul.f32 %v5717_v44, %v5717_v44  ;;  %v5751_v29 = vsub.f32 %v10040_v14, %v5717_v44  ;;  %v9385_v14 = vld [vmem:[#allocation6 + $0xae8] ss:$16 sps:$4 sm:$0xff]   ;;  %v9396_v59 = vld [vmem:[#allocation6 + $0xa8c] ss:$16 sps:$4 sm:$0xff]  }
 0x62b   :  { %v9435_v63 = vld [vmem:[#allocation7 + $0x474] ss:$8 sps:$4 sm:$0xff]   ;;  %v9438_v1 = vld [vmem:[#allocation7 + $0x464] ss:$8 sps:$4 sm:$0xff]   ;;  %v9394_v54 = vld [vmem:[#allocation6 + $0xa88] ss:$16 sps:$4 sm:$0xff]  }
 0x62c   :  { %v5732_v7 = vadd.f32 1e-05, %v5728_v43  ;;  %v5729_v30 = vsub.f32 %v5721_v3, %v5725_v5  ;;  %6746 = vmatpush1.bf16.msra.mxu0 %v9334_v2  ;;  %v9436_v41 = vld [vmem:[#allocation7 + $0x460] ss:$8 sps:$4 sm:$0xff]   ;;  %v9441_v44 = vld [vmem:[#allocation7 + $0x454] ss:$8 sps:$4 sm:$0xff]  }
 0x62d   :  { %6747 = vmatprep.subr.bf16.mxu0 %v9342_v50  ;;  %v9397_v2 = vld [vmem:[#allocation6 + $0xa68] ss:$16 sps:$4 sm:$0xff]   ;;  %v9402_v3 = vld [vmem:[#allocation6 + $0xa4c] ss:$16 sps:$4 sm:$0xff]  }
 0x62e   :  { %v5733_v9 = vadd.f32 1e-05, %v5729_v30  ;;  %9565 = vrsqrt.f32 %v5732_v7  ;;  %v9439_v43 = vld [vmem:[#allocation7 + $0x450] ss:$8 sps:$4 sm:$0xff]   ;;  %v9444_v50 = vld [vmem:[#allocation7 + $0x444] ss:$8 sps:$4 sm:$0xff]  }
 0x62f   :  { %v9400_v5 = vld [vmem:[#allocation6 + $0xa48] ss:$16 sps:$4 sm:$0xff]   ;;  %v9405_v30 = vld [vmem:[#allocation6 + $0xa2c] ss:$16 sps:$4 sm:$0xff]  }
 0x630   :  { %9567 = vrsqrt.f32 %v5733_v9  ;;  %6748 = vmatpush2.bf16.msra.mxu0 %v9340_v61  ;;  %v9442_v7 = vld [vmem:[#allocation7 + $0x440] ss:$8 sps:$4 sm:$0xff]   ;;  %v9447_v61 = vld [vmem:[#allocation7 + $0x434] ss:$8 sps:$4 sm:$0xff]   ;;  %v9445_v9 = vld [vmem:[#allocation7 + $0x430] ss:$8 sps:$4 sm:$0xff]  }
 0x631   :  { %6749 = vmatprep.subr.bf16.mxu0 %v9348_v8  ;;  %v9403_v8 = vld [vmem:[#allocation6 + $0xa28] ss:$16 sps:$4 sm:$0xff]  }
 0x634   :  { %6750 = vmatpush2.bf16.msra.mxu0 %v9346_v42  ;;  %v9408_v42 = vld [vmem:[#allocation6 + $0xa0c] ss:$16 sps:$4 sm:$0xff]  }
 0x635   :  { %6751 = vmatprep.subr.bf16.mxu0 %v9354_v23  ;;  %v9450_v23 = vld [vmem:[#allocation7 + $0x424] ss:$8 sps:$4 sm:$0xff]  }
 0x638   :  { %6752 = vmatpush2.bf16.msra.mxu0 %v9352_v34  ;;  %v9406_v34 = vld [vmem:[#allocation6 + $0xa08] ss:$16 sps:$4 sm:$0xff]  }
 0x639   :  { %6753 = vmatprep.subr.bf16.mxu0 %v9360_v12  ;;  %v9448_v12 = vld [vmem:[#allocation7 + $0x420] ss:$8 sps:$4 sm:$0xff]  }
 0x63b   :  { %v9566_v16 = vpop.eup %9565 }
 0x63c   :  { %6754 = vmatpush2.bf16.msra.mxu0 %v9358_v0  ;;  %v9411_v0 = vld [vmem:[#allocation6 + $0xbec] ss:$16 sps:$4 sm:$0xff]  }
 0x63d   :  { %v9568_v45 = vpop.eup %9567  ;;  %6755 = vmatprep.subr.bf16.mxu0 %v9366_v15  ;;  %v9453_v15 = vld [vmem:[#allocation7 + $0x414] ss:$8 sps:$4 sm:$0xff]  }
 0x63e   :  { %v5743_v49 = vcombine.low %v9566_v16, %v9568_v45  ;;  %v9409_v16 = vld [vmem:[#allocation6 + $0xbe8] ss:$16 sps:$4 sm:$0xff]   ;;  %v9414_v45 = vld [vmem:[#allocation6 + $0xbcc] ss:$16 sps:$4 sm:$0xff]  }
 0x640   :  { %6756 = vmatpush2.bf16.msra.mxu0 %v9364_v18  ;;  %v5747_v19 = vmul.f32 %v5743_v49, %v10051_v20  ;;  %v9451_v18 = vld [vmem:[#allocation7 + $0x410] ss:$8 sps:$4 sm:$0xff]  }
 0x641   :  { %6757 = vmatprep.subr.bf16.mxu0 %v9372_v13  ;;  %v9456_v13 = vld [vmem:[#allocation7 + $0x404] ss:$8 sps:$4 sm:$0xff]   ;;  %v9412_v49 = vld [vmem:[#allocation6 + $0xbc8] ss:$16 sps:$4 sm:$0xff]  }
 0x642   :  { %v5769_v33 = vrot.slane %v5747_v19, %v9776_v55  ;;  %v5765_v47 = vrot.slane %v5747_v19, %v9772_v48  ;;  %v9415_v19 = vld [vmem:[#allocation6 + $0xba8] ss:$16 sps:$4 sm:$0xff]  }
 0x644   :  { %6758 = vmatpush2.bf16.msra.mxu0 %v9370_v22  ;;  %v5789_v31 = vrot.slane %v5769_v33, %v9772_v48  ;;  %v5785_v32 = vrot.slane %v5765_v47, %v9772_v48  ;;  %v9388_v48 = vld [vmem:[#allocation6 + $0xac8] ss:$16 sps:$4 sm:$0xff]   ;;  %v9459_v22 = vld [vmem:[#allocation7 + $0x4f4] ss:$8 sps:$4 sm:$0xff]   ;;  %v9462_v47 = vld [vmem:[#allocation7 + $0x4e4] ss:$8 sps:$4 sm:$0xff]  }
 0x645   :  { %6759 = vmatprep.subr.bf16.mxu0 %v9378_v62  ;;  %v9457_v62 = vld [vmem:[#allocation7 + $0x4f0] ss:$8 sps:$4 sm:$0xff]   ;;  %v9420_v33 = vld [vmem:[#allocation6 + $0xb8c] ss:$16 sps:$4 sm:$0xff]  }
 0x646   :  { %v5793_v55 = vmul.f32 %v5789_v31, %v5751_v29  ;;  %v5792_v36 = vmul.f32 %v5785_v32, %v5750_v38  ;;  %v9423_v38 = vld [vmem:[#allocation6 + $0xb6c] ss:$16 sps:$4 sm:$0xff]   ;;  %v9463_v31 = vld [vmem:[#allocation7 + $0x4d0] ss:$8 sps:$4 sm:$0xff]  }
 0x647   :  { %v9465_v29 = vld [vmem:[#allocation7 + $0x4d4] ss:$8 sps:$4 sm:$0xff]  }
 0x648   :  { %6760 = vmatpush2.bf16.msra.mxu0 %v9376_v17  ;;  %v5835_v35 = vadd.f32 %v5831_v11, %v5793_v55  ;;  %v5834_v4 = vadd.f32 %v5827_v28, %v5792_v36  ;;  %v9418_v11 = vld [vmem:[#allocation6 + $0xb88] ss:$16 sps:$4 sm:$0xff]   ;;  %v9426_v32 = vld [vmem:[#allocation6 + $0xb4c] ss:$16 sps:$4 sm:$0xff]  }
 0x649   :  { %6761 = vmatprep.subr.bf16.mxu0 %v9384_v46  ;;  %v9460_v28 = vld [vmem:[#allocation7 + $0x4e0] ss:$8 sps:$4 sm:$0xff]   ;;  %v9468_v46 = vld [vmem:[#allocation7 + $0x4c4] ss:$8 sps:$4 sm:$0xff]  }
 0x64a   :  { %v5839_v37 = vmax.f32 %v5835_v35, 0.0  ;;  %v5838_v26 = vmax.f32 %v5834_v4, 0.0  ;;  %v9421_v17 = vld [vmem:[#allocation6 + $0xb68] ss:$16 sps:$4 sm:$0xff]   ;;  %v9471_v35 = vld [vmem:[#allocation7 + $0x4b4] ss:$8 sps:$4 sm:$0xff]  }
 0x64b   :  { %v9424_v55 = vld [vmem:[#allocation6 + $0xb48] ss:$16 sps:$4 sm:$0xff]  }
 0x64c   :  { %6762 = vmatpush2.bf16.msra.mxu0 %v9382_v40  ;;  %v5843_v10 = vpack.c.bf16 %v5839_v37, %v5839_v37  ;;  %v10067_v51 = vpack.c.bf16 %v5838_v26, %v5838_v26  ;;  %v9466_v36 = vld [vmem:[#allocation7 + $0x4c0] ss:$8 sps:$4 sm:$0xff]   ;;  %v9429_v40 = vld [vmem:[#allocation6 + $0xb2c] ss:$16 sps:$4 sm:$0xff]   ;;  %v9469_v37 = vld [vmem:[#allocation7 + $0x4b0] ss:$8 sps:$4 sm:$0xff]  }
 0x64d   :  { %7224 = vmatprep.subr.bf16.mxu0 %v9435_v63  ;;  %v9427_v4 = vld [vmem:[#allocation6 + $0xb28] ss:$16 sps:$4 sm:$0xff]   ;;  %v9432_v26 = vld [vmem:[#allocation6 + $0xb0c] ss:$16 sps:$4 sm:$0xff]  }
 0x64e   :  { %6722 = vmatprep.mubr.bf16.mxu1 %v5843_v10  ;;  %v9481_v63 = vld [vmem:[#allocation7 + $0x570] ss:$8 sps:$4 sm:$0xff]  }
 0x64f   :  { %6764 = vmatmul.mubr.bf16.vlgmr.msra.gmra.mxu0 %v10030_v6  ;;  %6723 = vmatmul.mubr.bf16.vlgmr.msra.gmra.mxu1 %v10067_v51  ;;  %v9399_v6 = vld [vmem:[#allocation6 + $0xa6c] ss:$16 sps:$4 sm:$0xff]  }
 0x650   :  { %6773 = vmatpush1.bf16.msra.mxu1 %v9385_v14  ;;  %6804 = vmatprep.mubr.bf16.mxu1 %v5843_v10  ;;  %v9474_v10 = vld [vmem:[#allocation7 + $0x4a4] ss:$8 sps:$4 sm:$0xff]   ;;  %v9430_v14 = vld [vmem:[#allocation6 + $0xb08] ss:$16 sps:$4 sm:$0xff]  }
 0x651   :  { %6774 = vmatprep.subr.bf16.mxu1 %v9390_v52  ;;  %7225 = vmatpush1.bf16.msra.mxu0 %v9433_v60  ;;  %v9472_v52 = vld [vmem:[#allocation7 + $0x4a0] ss:$8 sps:$4 sm:$0xff]   ;;  %v9483_v60 = vld [vmem:[#allocation7 + $0x574] ss:$8 sps:$4 sm:$0xff]  }
 0x652   :  { %7226 = vmatprep.subr.bf16.mxu0 %v9438_v1  ;;  %v9486_v1 = vld [vmem:[#allocation7 + $0x564] ss:$8 sps:$4 sm:$0xff]  }
 0x654   :  { %6775 = vmatpush1.bf16.msra.mxu1 %v9388_v48  ;;  %v9477_v48 = vld [vmem:[#allocation7 + $0x494] ss:$8 sps:$4 sm:$0xff]  }
 0x655   :  { %6776 = vmatprep.subr.bf16.mxu1 %v9393_v53  ;;  %7227 = vmatpush1.bf16.msra.mxu0 %v9436_v41  ;;  %v9475_v53 = vld [vmem:[#allocation7 + $0x490] ss:$8 sps:$4 sm:$0xff]   ;;  %v9489_v41 = vld [vmem:[#allocation7 + $0x554] ss:$8 sps:$4 sm:$0xff]  }
 0x656   :  { %7228 = vmatprep.subr.bf16.mxu0 %v9441_v44  ;;  %v9490_v44 = vld [vmem:[#allocation7 + $0x540] ss:$8 sps:$4 sm:$0xff]  }
 0x658   :  { %6777 = vmatpush1.bf16.msra.mxu1 %v9391_v57  ;;  %v9480_v57 = vld [vmem:[#allocation7 + $0x484] ss:$8 sps:$4 sm:$0xff]  }
 0x659   :  { %6778 = vmatprep.subr.bf16.mxu1 %v9396_v59  ;;  %7229 = vmatpush1.bf16.msra.mxu0 %v9439_v43  ;;  %v9478_v59 = vld [vmem:[#allocation7 + $0x480] ss:$8 sps:$4 sm:$0xff]   ;;  %v9493_v43 = vld [vmem:[#allocation7 + $0x530] ss:$8 sps:$4 sm:$0xff]  }
 0x65a   :  { %7230 = vmatprep.subr.bf16.mxu0 %v9444_v50  ;;  %v9496_v50 = vld [vmem:[#allocation7 + $0x520] ss:$8 sps:$4 sm:$0xff]  }
 0x65c   :  { %6779 = vmatpush1.bf16.msra.mxu1 %v9394_v54  ;;  %v9484_v54 = vld [vmem:[#allocation7 + $0x560] ss:$8 sps:$4 sm:$0xff]  }
 0x65d   :  { %6780 = vmatprep.subr.bf16.mxu1 %v9399_v6  ;;  %7231 = vmatpush1.bf16.msra.mxu0 %v9442_v7  ;;  %v9487_v6 = vld [vmem:[#allocation7 + $0x550] ss:$8 sps:$4 sm:$0xff]  }
 0x65e   :  { %7232 = vmatprep.subr.bf16.mxu0 %v9447_v61  ;;  %v9499_v7 = vld [vmem:[#allocation7 + $0x510] ss:$8 sps:$4 sm:$0xff]   ;;  %v9502_v61 = vld [vmem:[#allocation7 + $0x500] ss:$8 sps:$4 sm:$0xff]  }
 0x660   :  { %6781 = vmatpush1.bf16.msra.mxu1 %v9397_v2  ;;  %v9495_v2 = vld [vmem:[#allocation7 + $0x534] ss:$8 sps:$4 sm:$0xff]  }
 0x661   :  { %6782 = vmatprep.subr.bf16.mxu1 %v9402_v3  ;;  %7233 = vmatpush1.bf16.msra.mxu0 %v9445_v9  ;;  %v9498_v3 = vld [vmem:[#allocation7 + $0x524] ss:$8 sps:$4 sm:$0xff]   ;;  %v9505_v9 = vld [vmem:[#allocation7 + $0x5f0] ss:$8 sps:$4 sm:$0xff]  }
 0x662   :  { %7234 = vmatprep.subr.bf16.mxu0 %v9450_v23  ;;  %v9508_v23 = vld [vmem:[#allocation7 + $0x5e0] ss:$8 sps:$4 sm:$0xff]  }
 0x664   :  { %6783 = vmatpush1.bf16.msra.mxu1 %v9400_v5  ;;  %v9501_v5 = vld [vmem:[#allocation7 + $0x514] ss:$8 sps:$4 sm:$0xff]  }
 0x665   :  { %6784 = vmatprep.subr.bf16.mxu1 %v9405_v30  ;;  %7235 = vmatpush1.bf16.msra.mxu0 %v9448_v12  ;;  %v9504_v30 = vld [vmem:[#allocation7 + $0x504] ss:$8 sps:$4 sm:$0xff]   ;;  %v9511_v12 = vld [vmem:[#allocation7 + $0x5d0] ss:$8 sps:$4 sm:$0xff]  }
 0x666   :  { %7236 = vmatprep.subr.bf16.mxu0 %v9453_v15  ;;  %v9514_v15 = vld [vmem:[#allocation7 + $0x5c0] ss:$8 sps:$4 sm:$0xff]  }
 0x668   :  { %6785 = vmatpush1.bf16.msra.mxu1 %v9403_v8  ;;  %v9507_v8 = vld [vmem:[#allocation7 + $0x5f4] ss:$8 sps:$4 sm:$0xff]  }
 0x669   :  { %6786 = vmatprep.subr.bf16.mxu1 %v9408_v42  ;;  %7237 = vmatpush1.bf16.msra.mxu0 %v9451_v18  ;;  %v9510_v42 = vld [vmem:[#allocation7 + $0x5e4] ss:$8 sps:$4 sm:$0xff]   ;;  %v9517_v18 = vld [vmem:[#allocation7 + $0x5b0] ss:$8 sps:$4 sm:$0xff]  }
 0x66a   :  { %7238 = vmatprep.subr.bf16.mxu0 %v9456_v13  ;;  %v9520_v13 = vld [vmem:[#allocation7 + $0x5a0] ss:$8 sps:$4 sm:$0xff]  }
 0x66c   :  { %6787 = vmatpush1.bf16.msra.mxu1 %v9406_v34  ;;  %v9513_v34 = vld [vmem:[#allocation7 + $0x5d4] ss:$8 sps:$4 sm:$0xff]  }
 0x66d   :  { %6788 = vmatprep.subr.bf16.mxu1 %v9411_v0  ;;  %7239 = vmatpush1.bf16.msra.mxu0 %v9454_v21  ;;  %v9516_v0 = vld [vmem:[#allocation7 + $0x5c4] ss:$8 sps:$4 sm:$0xff]   ;;  %v9525_v21 = vld [vmem:[#allocation7 + $0x594] ss:$8 sps:$4 sm:$0xff]  }
 0x66e   :  { %7240 = vmatprep.subr.bf16.mxu0 %v9459_v22 }
 0x670   :  { %6789 = vmatpush2.bf16.msra.mxu1 %v9409_v16  ;;  %v9519_v16 = vld [vmem:[#allocation7 + $0x5b4] ss:$8 sps:$4 sm:$0xff]  }
 0x671   :  { %6790 = vmatprep.subr.bf16.mxu1 %v9414_v45  ;;  %7241 = vmatpush2.bf16.msra.mxu0 %v9457_v62  ;;  %v9522_v45 = vld [vmem:[#allocation7 + $0x5a4] ss:$8 sps:$4 sm:$0xff]  }
 0x672   :  { %7242 = vmatprep.subr.bf16.mxu0 %v9462_v47  ;;  %v9528_v62 = vld [vmem:[#allocation7 + $0x584] ss:$8 sps:$4 sm:$0xff]  }
 0x674   :  { %6791 = vmatpush2.bf16.msra.mxu1 %v9412_v49 }
 0x675   :  { %6792 = vmatprep.subr.bf16.mxu1 %v9417_v27  ;;  %7243 = vmatpush2.bf16.msra.mxu0 %v9460_v28  ;;  %v9523_v27 = vld [vmem:[#allocation7 + $0x590] ss:$8 sps:$4 sm:$0xff]   ;;  %v5980_v28 = vrot.slane %v10016_v39, %v9822_v25 }
 0x676   :  { %7244 = vmatprep.subr.bf16.mxu0 %v9465_v29 }
 0x677   :  { %v6000_v29 = vrot.slane %v5980_v28, %v9819_v24 }
 0x678   :  { %6793 = vmatpush2.bf16.msra.mxu1 %v9415_v19 }
 0x679   :  { %6794 = vmatprep.subr.bf16.mxu1 %v9420_v33  ;;  %7245 = vmatpush2.bf16.msra.mxu0 %v9463_v31  ;;  %v9526_v33 = vld [vmem:[#allocation7 + $0x580] ss:$8 sps:$4 sm:$0xff]  }
 0x67a   :  { %7246 = vmatprep.subr.bf16.mxu0 %v9468_v46 }
 0x67c   :  { %6795 = vmatpush2.bf16.msra.mxu1 %v9418_v11  ;;  %v5976_v11 = vrot.slane %v10016_v39, %v9819_v24 }
 0x67d   :  { %6796 = vmatprep.subr.bf16.mxu1 %v9423_v38  ;;  %7247 = vmatpush2.bf16.msra.mxu0 %v9466_v36 }
 0x67e   :  { %7248 = vmatprep.subr.bf16.mxu0 %v9471_v35  ;;  %v5996_v38 = vrot.slane %v5976_v11, %v9819_v24 }
 0x680   :  { %6797 = vmatpush2.bf16.msra.mxu1 %v9421_v17 }
 0x681   :  { %6798 = vmatprep.subr.bf16.mxu1 %v9426_v32  ;;  %7249 = vmatpush2.bf16.msra.mxu0 %v9469_v37 }
 0x682   :  { %7250 = vmatprep.subr.bf16.mxu0 %v9474_v10 }
 0x684   :  { %6799 = vmatpush2.bf16.msra.mxu1 %v9424_v55 }
 0x685   :  { %6800 = vmatprep.subr.bf16.mxu1 %v9429_v40  ;;  %7251 = vmatpush2.bf16.msra.mxu0 %v9472_v52 }
 0x686   :  { %7252 = vmatprep.subr.bf16.mxu0 %v9477_v48 }
 0x688   :  { %6801 = vmatpush2.bf16.msra.mxu1 %v9427_v4 }
 0x689   :  { %6802 = vmatprep.subr.bf16.mxu1 %v9432_v26  ;;  %7253 = vmatpush2.bf16.msra.mxu0 %v9475_v53 }
 0x68a   :  { %7254 = vmatprep.subr.bf16.mxu0 %v9480_v57  ;;  %v5984_v57 = vrot.slane %v10051_v20, %v9819_v24 }
 0x68c   :  { %6803 = vmatpush2.bf16.msra.mxu1 %v9430_v14 }
 0x68d   :  { %7255 = vmatpush2.bf16.msra.mxu0 %v9478_v59  ;;  %7265 = vmatprep.subr.bf16.mxu1 %v9483_v60  ;;  %v5988_v59 = vrot.slane %v10051_v20, %v9822_v25  ;;  %v6004_v60 = vrot.slane %v5984_v57, %v9819_v24 }
 0x68f   :  { %6805 = vmatmul.mubr.bf16.vlgmr.msra.gmra.mxu1 %v10067_v51  ;;  %v9492_v51 = vld [vmem:[#allocation7 + $0x544] ss:$8 sps:$4 sm:$0xff]  }
 0x690   :  { %7266 = vmatpush1.bf16.msra.mxu1 %v9481_v63  ;;  %v6008_v63 = vrot.slane %v5988_v59, %v9819_v24  ;;  %v6889_v24 = vrot.slane %v10016_v39, %v9865_v56 }
 0x691   :  { %7267 = vmatprep.subr.bf16.mxu1 %v9486_v1 }
 0x694   :  { %7268 = vmatpush1.bf16.msra.mxu1 %v9484_v54 }
 0x695   :  { %7269 = vmatprep.subr.bf16.mxu1 %v9489_v41 }
 0x698   :  { %7270 = vmatpush1.bf16.msra.mxu1 %v9487_v6 }
 0x699   :  { %7271 = vmatprep.subr.bf16.mxu1 %v9492_v51 }
 0x69c   :  { %7272 = vmatpush1.bf16.msra.mxu1 %v9490_v44 }
 0x69d   :  { %7273 = vmatprep.subr.bf16.mxu1 %v9495_v2 }
 0x6a0   :  { %7274 = vmatpush1.bf16.msra.mxu1 %v9493_v43 }
 0x6a1   :  { %7275 = vmatprep.subr.bf16.mxu1 %v9498_v3 }
 0x6a4   :  { %7276 = vmatpush1.bf16.msra.mxu1 %v9496_v50 }
 0x6a5   :  { %7277 = vmatprep.subr.bf16.mxu1 %v9501_v5 }
 0x6a8   :  { %7278 = vmatpush1.bf16.msra.mxu1 %v9499_v7 }
 0x6a9   :  { %7279 = vmatprep.subr.bf16.mxu1 %v9504_v30 }
 0x6ac   :  { %7280 = vmatpush1.bf16.msra.mxu1 %v9502_v61 }
 0x6ad   :  { %7281 = vmatprep.subr.bf16.mxu1 %v9507_v8  ;;  %v6893_v8 = vrot.slane %v10016_v39, %v9868_v58 }
 0x6b0   :  { %7282 = vmatpush2.bf16.msra.mxu1 %v9505_v9  ;;  %v6899_v9 = vrot.slane %v6889_v24, %v9865_v56 }
 0x6b1   :  { %7283 = vmatprep.subr.bf16.mxu1 %v9510_v42  ;;  %v6903_v42 = vrot.slane %v6893_v8, %v9865_v56 }
 0x6b4   :  { %7284 = vmatpush2.bf16.msra.mxu1 %v9508_v23 }
 0x6b5   :  { %7285 = vmatprep.subr.bf16.mxu1 %v9513_v34 }
 0x6b8   :  { %7286 = vmatpush2.bf16.msra.mxu1 %v9511_v12 }
 0x6b9   :  { %7287 = vmatprep.subr.bf16.mxu1 %v9516_v0 }
 0x6bc   :  { %7288 = vmatpush2.bf16.msra.mxu1 %v9514_v15 }
 0x6bd   :  { %7289 = vmatprep.subr.bf16.mxu1 %v9519_v16 }
 0x6c0   :  { %7290 = vmatpush2.bf16.msra.mxu1 %v9517_v18 }
 0x6c1   :  { %7291 = vmatprep.subr.bf16.mxu1 %v9522_v45 }
 0x6c4   :  { %7292 = vmatpush2.bf16.msra.mxu1 %v9520_v13 }
 0x6c5   :  { %7293 = vmatprep.subr.bf16.mxu1 %v9525_v21 }
 0x6c8   :  { %7294 = vmatpush2.bf16.msra.mxu1 %v9523_v27 }
 0x6c9   :  { %7295 = vmatprep.subr.bf16.mxu1 %v9528_v62 }
 0x6cc   :  { %7296 = vmatpush2.bf16.msra.mxu1 %v9526_v33 }
 0x6cf   :  { %v6683_v49 = vpop.f32.mrf.mxu0 }
 0x6d0   :  { %v6684_v17 = vadd.f32 %v6683_v49, %v5996_v38 }
 0x6d1   :  { %v6685_v22 = vpop.f32.mrf.mxu0 }
 0x6d2   :  { %v6686_v46 = vadd.f32 %v6685_v22, %v6000_v29 }
 0x6d3   :  { %v6687_v19 = vpop.f32.mrf.mxu0 }
 0x6d5   :  { %v6688_v47 = vpop.f32.mrf.mxu0 }
 0x70f   :  { %v6765_v31 = vpop.f32.mrf.mxu0  ;;  %v6724_v32 = vpop.f32.mrf.mxu1 }
 0x710   :  { %v6725_v55 = vadd.f32 %v6724_v32, %v6684_v17  ;;  %v6766_v1 = vadd.f32 %v6765_v31, %v6004_v60 }
 0x711   :  { %v6767_v36 = vpop.f32.mrf.mxu0  ;;  %v6726_v40 = vpop.f32.mrf.mxu1 }
 0x712   :  { %v6727_v35 = vadd.f32 %v6726_v40, %v6686_v46  ;;  %v6813_v4 = vmax.f32 %v6725_v55, 0.0  ;;  %v6768_v41 = vadd.f32 %v6767_v36, %v6008_v63 }
 0x713   :  { %v6769_v37 = vpop.f32.mrf.mxu0  ;;  %v6728_v26 = vpop.f32.mrf.mxu1 }
 0x714   :  { %v6814_v10 = vmax.f32 %v6727_v35, 0.0  ;;  %v6817_v53 = vpack.c.bf16 %v6813_v4, %v6813_v4 }
 0x715   :  { %v6770_v14 = vpop.f32.mrf.mxu0  ;;  %v6729_v52 = vpop.f32.mrf.mxu1 }
 0x716   :  { %v6818_v48 = vpack.c.bf16 %v6814_v10, %v6814_v10 }
 0x718   :  { %7256 = vmatprep.mubr.bf16.mxu0 %v6818_v48 }
 0x719   :  { %7257 = vmatmul.mubr.bf16.vlgmr.msra.gmra.mxu0 %v6817_v53 }
 0x74f   :  { %v6806_v54 = vpop.f32.mrf.mxu1 }
 0x750   :  { %v6807_v6 = vadd.f32 %v6806_v54, %v6766_v1 }
 0x751   :  { %v6808_v51 = vpop.f32.mrf.mxu1 }
 0x752   :  { %v6809_v44 = vadd.f32 %v6808_v51, %v6768_v41  ;;  %v6815_v2 = vmax.f32 %v6807_v6, 0.0 }
 0x753   :  { %v6810_v43 = vpop.f32.mrf.mxu1 }
 0x754   :  { %v6816_v3 = vmax.f32 %v6809_v44, 0.0  ;;  %v6819_v7 = vpack.c.bf16 %v6815_v2, %v6815_v2 }
 0x755   :  { %v6811_v50 = vpop.f32.mrf.mxu1 }
 0x756   :  { %v6820_v5 = vpack.c.bf16 %v6816_v3, %v6816_v3 }
 0x758   :  { %7297 = vmatprep.mubr.bf16.mxu1 %v6820_v5 }
 0x759   :  { %7298 = vmatmul.mubr.bf16.vlgmr.msra.gmra.mxu1 %v6819_v7 }
 0x7d9   :  { %v7258_v30 = vpop.f32.mrf.mxu0 }
 0x7da   :  { %v7259_v23 = vadd.f32 %v7258_v30, %v6899_v9 }
 0x7db   :  { %v7260_v25 = vpop.f32.mrf.mxu0 }
 0x7dc   :  { %v7261_v12 = vadd.f32 %v7260_v25, %v6903_v42 }
 0x7dd   :  { %v7262_v20 = vpop.f32.mrf.mxu0 }
 0x7df   :  { %v7263_v61 = vpop.f32.mrf.mxu0 }
 0x819   :  { %v7299_v34 = vpop.f32.mrf.mxu1 }
 0x81a   :  { %v7300_v0 = vadd.f32 %v7299_v34, %v7259_v23 }
 0x81b   :  { %v7301_v15 = vpop.f32.mrf.mxu1 }
 0x81c   :  { %v8211_v16 = vmul.f32 -1.442695, %v7300_v0  ;;  %v7302_v18 = vadd.f32 %v7301_v15, %v7261_v12 }
 0x81d   :  { %v7303_v45 = vpop.f32.mrf.mxu1 }
 0x81e   :  { %9569 = vpow2.f32 %v8211_v16  ;;  %v8212_v13 = vmul.f32 -1.442695, %v7302_v18 }
 0x81f   :  { %v7304_v49 = vpop.f32.mrf.mxu1 }
 0x820   :  { %9571 = vpow2.f32 %v8212_v13 }
 0x82b   :  { %v9570_v21 = vpop.eup %9569 }
 0x82c   :  { %v7312_v27 = vadd.f32 1.0, %v9570_v21 }
 0x82d   :  { %v9572_v22 = vpop.eup %9571 }
 0x82e   :  { %9573 = vrcp.f32 %v7312_v27  ;;  %v7313_v58 = vadd.f32 1.0, %v9572_v22 }
 0x830   :  { %9575 = vrcp.f32 %v7313_v58 }
 0x83b   :  { %v9574_v39 = vpop.eup %9573 }
 0x83c   :  { %8213 = vst [vmem:[%s10101_s5 + $0x20] sm:$0xff] %v9574_v39 }
 0x83d   :  { %v9576_v56 = vpop.eup %9575 }
 0x83e   :  { %8214 = vst [vmem:[%s10101_s5 + $0x28] sm:$0xff] %v9576_v56 }
 0x83f   :  { %7325 = vsyncpa [#allocation3], 1 }
 0x840   :  { %7326 = vsyncpa [#allocation5], 1 }
 0x841   :  { %7327 = vsyncpa [#allocation8], 1 }

</bundles_post_ra>
